<compile_context>
chip_gen: v6e
topology: v6e:2x2x1
jax: 0.10.0
libtpu: 0.0.40
codegen_flags: <defaults>
</compile_context>

<pallas_src>
import jax
import jax.numpy as jnp
from jax.experimental import pallas as pl
from jax.experimental.pallas import tpu as pltpu

# module constants (from gpt.py)
n_embd = 384
block_size = 256

NUM_HEADS = 6
HEAD_SIZE = n_embd // NUM_HEADS  # 64

NEG_MASK_VALUE = -1e30


def fused_mha_kernel(x_ref, mask_ref, wqkv_ref, wp_ref, bp_ref, o_ref, cat_ref):
    """Bb batch rows: fused QKV projection + causal attention (all heads) + output proj."""
    Bb, T, C = x_ref.shape

    # One wide lane-dense QKV matmul over all Bb rows at once:
    # (Bb*T, C) @ (C, 3C) -> (Bb*T, 3C), bf16 operands, f32 accumulation.
    # Columns: [Q_h0 .. Q_h5 | K_h0 .. K_h5 | V_h0 .. V_h5]; Q columns are pre-scaled
    # by n_embd**-0.5 in the wrapper.
    x2d = x_ref[...].reshape(Bb * T, C).astype(jnp.bfloat16)
    qkv = jnp.dot(x2d, wqkv_ref[...], preferred_element_type=jnp.float32)

    neg_mask = mask_ref[...]  # (T, T) f32 additive causal mask, resident in VMEM

    for b in range(Bb):
        qkv_b = qkv[b * T:(b + 1) * T, :]
        for h in range(NUM_HEADS):
            q = qkv_b[:, h * HEAD_SIZE:(h + 1) * HEAD_SIZE].astype(jnp.bfloat16)
            k = qkv_b[:, C + h * HEAD_SIZE:C + (h + 1) * HEAD_SIZE].astype(jnp.bfloat16)
            v = qkv_b[:, 2 * C + h * HEAD_SIZE:2 * C + (h + 1) * HEAD_SIZE].astype(jnp.bfloat16)

            # q @ k.T without materializing a transpose; f32 scores.
            scores = jax.lax.dot_general(
                q, k, dimension_numbers=(((1,), (1,)), ((), ())),
                preferred_element_type=jnp.float32)                       # (T, T)
            scores = scores + neg_mask

            # Softmax math stays in f32 (no bf16 VPU/EUP on v5e).
            m = jnp.max(scores, axis=-1, keepdims=True)
            p = jnp.exp(scores - m)
            denom = jnp.sum(p, axis=-1, keepdims=True)

            out_h = jnp.dot(p.astype(jnp.bfloat16), v,
                            preferred_element_type=jnp.float32)           # (T, hs) f32
            # Deferred normalization on the (T, hs) output; approx reciprocal -> EUP.
            out_h = out_h * pl.reciprocal(denom, approx=True)

            # Write into the concat scratch; projection done once after the loop.
            cat_ref[b * T:(b + 1) * T,
                    h * HEAD_SIZE:(h + 1) * HEAD_SIZE] = out_h.astype(jnp.bfloat16)

    # Single K=384 output projection for the whole block (+ bias).
    proj = jnp.dot(cat_ref[...], wp_ref[...], preferred_element_type=jnp.float32)
    o_ref[...] = (proj + bp_ref[...]).reshape(Bb, T, C).astype(o_ref.dtype)


def _choose_batch_block(B, T):
    """Rows per grid step: keep >=2 grid steps (v7x megacore) and Bb*T <= 1024 (VMEM)."""
    for bb in (8, 4, 2):
        if B % bb == 0 and B // bb >= 2 and bb * T <= 1024:
            return bb
    return 1


def multi_head_attention(x, wq, wk, wv, wp, bp):
    """x: (B, T, C); wq/wk/wv: (H, C, hs); wp: (C, C); bp: (C,)."""
    B, T, C = x.shape
    H, _, hs = wq.shape
    Bb = _choose_batch_block(B, T)

    # Stack per-head QKV weights into one (C, 3*C) matrix; fold the 1/sqrt(n_embd)
    # attention scale into the Q columns; cast weights to bf16 once here.
    scale = jnp.float32(C) ** jnp.float32(-0.5)
    wq_all = jnp.transpose(wq, (1, 0, 2)).reshape(C, H * hs) * scale
    wk_all = jnp.transpose(wk, (1, 0, 2)).reshape(C, H * hs)
    wv_all = jnp.transpose(wv, (1, 0, 2)).reshape(C, H * hs)
    wqkv = jnp.concatenate([wq_all, wk_all, wv_all], axis=-1).astype(jnp.bfloat16)
    wp_bf16 = wp.astype(jnp.bfloat16)

    # Additive causal mask, precomputed once (constant index_map -> stays resident).
    row = jax.lax.broadcasted_iota(jnp.int32, (T, T), 0)
    col = jax.lax.broadcasted_iota(jnp.int32, (T, T), 1)
    neg_mask = jnp.where(row >= col, 0.0, NEG_MASK_VALUE).astype(jnp.float32)

    out = pl.pallas_call(
        fused_mha_kernel,
        out_shape=jax.ShapeDtypeStruct((B, T, C), x.dtype),
        grid=(B // Bb,),
        in_specs=[
            pl.BlockSpec((Bb, T, C), lambda b: (b, 0, 0)),
            pl.BlockSpec((T, T), lambda b: (0, 0)),
            pl.BlockSpec((C, 3 * C), lambda b: (0, 0)),
            pl.BlockSpec((C, C), lambda b: (0, 0)),
            pl.BlockSpec((1, C), lambda b: (0, 0)),
        ],
        out_specs=pl.BlockSpec((Bb, T, C), lambda b: (b, 0, 0)),
        scratch_shapes=[pltpu.VMEM((Bb * T, C), jnp.bfloat16)],
        compiler_params=pltpu.CompilerParams(
            dimension_semantics=("parallel",)),
    )(x, neg_mask, wqkv, wp_bf16, bp.reshape(1, C))
    return out


def reference_mha(x, wq, wk, wv, wp, bp):
    """Plain-JAX f32 reference mirroring the PyTorch forward (eval mode)."""
    B, T, C = x.shape
    q = jnp.einsum('btc,hcd->bhtd', x, wq)
    k = jnp.einsum('btc,hcd->bhtd', x, wk)
    v = jnp.einsum('btc,hcd->bhtd', x, wv)
    wei = jnp.einsum('bhtd,bhsd->bhts', q, k) * (C ** -0.5)
    mask = jnp.tril(jnp.ones((T, T), dtype=bool))
    wei = jnp.where(mask, wei, -jnp.inf)
    wei = jax.nn.softmax(wei, axis=-1)
    out = jnp.einsum('bhts,bhsd->bhtd', wei, v)
    cat = jnp.transpose(out, (0, 2, 1, 3)).reshape(B, T, C)
    return cat @ wp + bp


if __name__ == "__main__":
    B, T = 2, 64          # T <= block_size
    H, hs, C = NUM_HEADS, HEAD_SIZE, n_embd

    key = jax.random.PRNGKey(0)
    kx, kq, kk, kv, kw, kb = jax.random.split(key, 6)

    bound = 1.0 / (C ** 0.5)  # nn.Linear default init scale
    x = jax.random.normal(kx, (B, T, C), dtype=jnp.float32)
    wq = jax.random.uniform(kq, (H, C, hs), jnp.float32, -bound, bound)
    wk = jax.random.uniform(kk, (H, C, hs), jnp.float32, -bound, bound)
    wv = jax.random.uniform(kv, (H, C, hs), jnp.float32, -bound, bound)
    wp = jax.random.uniform(kw, (C, C), jnp.float32, -bound, bound)
    bp = jax.random.uniform(kb, (C,), jnp.float32, -bound, bound)

    out = multi_head_attention(x, wq, wk, wv, wp, bp)
    out = jax.block_until_ready(out)

    ref = reference_mha(x, wq, wk, wv, wp, bp)
    assert out.shape == (B, T, C)
    # bf16 MXU operands + approx reciprocal -> relaxed tolerance vs. f32 reference.
    assert jnp.allclose(out, ref, rtol=2e-2, atol=2e-2), "mismatch vs reference"

    print("KERNEL_OK")
</pallas_src>

<mosaic_0001>
module attributes {stable_mosaic.version = 11 : i64} {
  func.func @fused_mha_kernel(%arg0: i32, %arg1: memref<1x64x384xf32, #tpu.memory_space<vmem>>, %arg2: memref<64x64xf32, #tpu.memory_space<vmem>>, %arg3: memref<384x1152xbf16, #tpu.memory_space<vmem>>, %arg4: memref<384x384xbf16, #tpu.memory_space<vmem>>, %arg5: memref<1x384xf32, #tpu.memory_space<vmem>>, %arg6: memref<1x64x384xf32, #tpu.memory_space<vmem>>, %arg7: memref<64x384xbf16, #tpu.memory_space<vmem>>) attributes {dimension_semantics = [#tpu.dimension_semantics<parallel>], iteration_bounds = array<i64: 2>, scalar_prefetch = 0 : i64, scratch_operands = 1 : i64, tpu.core_type = #tpu.core_type<tc>, window_params = [{transform_indices = @transform_0, window_bounds = array<i64: 1, 64, 384>}, {pipeline_mode = #tpu.pipeline_mode<synchronous>, transform_indices = @transform_1, window_bounds = array<i64: 64, 64>}, {pipeline_mode = #tpu.pipeline_mode<synchronous>, transform_indices = @transform_2, window_bounds = array<i64: 384, 1152>}, {pipeline_mode = #tpu.pipeline_mode<synchronous>, transform_indices = @transform_3, window_bounds = array<i64: 384, 384>}, {pipeline_mode = #tpu.pipeline_mode<synchronous>, transform_indices = @transform_4, window_bounds = array<i64: 1, 384>}, {transform_indices = @transform_5, window_bounds = array<i64: 1, 64, 384>}]} {
    %c0 = arith.constant 0 : index
    %c0_0 = arith.constant 0 : index
    %c0_1 = arith.constant 0 : index
    %0 = vector.load %arg1[%c0, %c0_0, %c0_1] : memref<1x64x384xf32, #tpu.memory_space<vmem>>, vector<1x64x384xf32>
    %1 = vector.shape_cast %0 : vector<1x64x384xf32> to vector<64x384xf32>
    %2 = arith.truncf %1 : vector<64x384xf32> to vector<64x384xbf16>
    %c0_2 = arith.constant 0 : index
    %c0_3 = arith.constant 0 : index
    %3 = vector.load %arg3[%c0_2, %c0_3] : memref<384x1152xbf16, #tpu.memory_space<vmem>>, vector<384x1152xbf16>
    %cst = arith.constant dense<0.000000e+00> : vector<64x1152xf32>
    %4 = tpu.matmul %2, %3, %cst {dimension_numbers = #tpu.dot_dimension_numbers<[1], [0], [0], [1], [0, 0, 1, 1], [], []>} : vector<64x384xbf16>, vector<384x1152xbf16>, vector<64x1152xf32> -> vector<64x1152xf32>
    %c0_4 = arith.constant 0 : index
    %c0_5 = arith.constant 0 : index
    %5 = vector.load %arg2[%c0_4, %c0_5] : memref<64x64xf32, #tpu.memory_space<vmem>>, vector<64x64xf32>
    %6 = vector.extract_strided_slice %4 {offsets = [0, 0], sizes = [64, 64], strides = [1, 1]} : vector<64x1152xf32> to vector<64x64xf32>
    %7 = arith.truncf %6 : vector<64x64xf32> to vector<64x64xbf16>
    %8 = vector.extract_strided_slice %4 {offsets = [0, 384], sizes = [64, 64], strides = [1, 1]} : vector<64x1152xf32> to vector<64x64xf32>
    %9 = arith.truncf %8 : vector<64x64xf32> to vector<64x64xbf16>
    %10 = vector.extract_strided_slice %4 {offsets = [0, 768], sizes = [64, 64], strides = [1, 1]} : vector<64x1152xf32> to vector<64x64xf32>
    %11 = arith.truncf %10 : vector<64x64xf32> to vector<64x64xbf16>
    %cst_6 = arith.constant dense<0.000000e+00> : vector<64x64xf32>
    %12 = tpu.matmul %7, %9, %cst_6 {dimension_numbers = #tpu.dot_dimension_numbers<[1], [1], [0], [0], [0, 0, 1, 0], [], []>} : vector<64x64xbf16>, vector<64x64xbf16>, vector<64x64xf32> -> vector<64x64xf32>
    %13 = arith.addf %12, %5 : vector<64x64xf32>
    %cst_7 = arith.constant dense<0xFF800000> : vector<64xf32>
    %14 = vector.multi_reduction <maximumf>, %13, %cst_7 [1] : vector<64x64xf32> to vector<64xf32>
    %15 = vector.shape_cast %14 : vector<64xf32> to vector<64x1xf32>
    %16 = vector.broadcast %15 : vector<64x1xf32> to vector<64x64xf32>
    %17 = arith.subf %13, %16 : vector<64x64xf32>
    %18 = math.exp %17 : vector<64x64xf32>
    %cst_8 = arith.constant dense<0.000000e+00> : vector<64xf32>
    %19 = vector.multi_reduction <add>, %18, %cst_8 [1] : vector<64x64xf32> to vector<64xf32>
    %20 = vector.shape_cast %19 : vector<64xf32> to vector<64x1xf32>
    %21 = arith.truncf %18 : vector<64x64xf32> to vector<64x64xbf16>
    %cst_9 = arith.constant dense<0.000000e+00> : vector<64x64xf32>
    %22 = tpu.matmul %21, %11, %cst_9 {dimension_numbers = #tpu.dot_dimension_numbers<[1], [0], [0], [1], [0, 0, 1, 1], [], []>} : vector<64x64xbf16>, vector<64x64xbf16>, vector<64x64xf32> -> vector<64x64xf32>
    %23 = tpu.reciprocal %20 {approx = true} : vector<64x1xf32> -> vector<64x1xf32>
    %24 = vector.broadcast %23 : vector<64x1xf32> to vector<64x64xf32>
    %25 = arith.mulf %22, %24 : vector<64x64xf32>
    %26 = arith.truncf %25 : vector<64x64xf32> to vector<64x64xbf16>
    %c0_10 = arith.constant 0 : index
    %c0_11 = arith.constant 0 : index
    %27 = vector.load %arg7[%c0_10, %c0_11] : memref<64x384xbf16, #tpu.memory_space<vmem>>, vector<64x64xbf16>
    tpu.vector_store %arg7[%c0_10, %c0_11], %26 {strides = array<i32>} : memref<64x384xbf16, #tpu.memory_space<vmem>>, vector<64x64xbf16>,
    %28 = vector.extract_strided_slice %4 {offsets = [0, 64], sizes = [64, 64], strides = [1, 1]} : vector<64x1152xf32> to vector<64x64xf32>
    %29 = arith.truncf %28 : vector<64x64xf32> to vector<64x64xbf16>
    %30 = vector.extract_strided_slice %4 {offsets = [0, 448], sizes = [64, 64], strides = [1, 1]} : vector<64x1152xf32> to vector<64x64xf32>
    %31 = arith.truncf %30 : vector<64x64xf32> to vector<64x64xbf16>
    %32 = vector.extract_strided_slice %4 {offsets = [0, 832], sizes = [64, 64], strides = [1, 1]} : vector<64x1152xf32> to vector<64x64xf32>
    %33 = arith.truncf %32 : vector<64x64xf32> to vector<64x64xbf16>
    %cst_12 = arith.constant dense<0.000000e+00> : vector<64x64xf32>
    %34 = tpu.matmul %29, %31, %cst_12 {dimension_numbers = #tpu.dot_dimension_numbers<[1], [1], [0], [0], [0, 0, 1, 0], [], []>} : vector<64x64xbf16>, vector<64x64xbf16>, vector<64x64xf32> -> vector<64x64xf32>
    %35 = arith.addf %34, %5 : vector<64x64xf32>
    %cst_13 = arith.constant dense<0xFF800000> : vector<64xf32>
    %36 = vector.multi_reduction <maximumf>, %35, %cst_13 [1] : vector<64x64xf32> to vector<64xf32>
    %37 = vector.shape_cast %36 : vector<64xf32> to vector<64x1xf32>
    %38 = vector.broadcast %37 : vector<64x1xf32> to vector<64x64xf32>
    %39 = arith.subf %35, %38 : vector<64x64xf32>
    %40 = math.exp %39 : vector<64x64xf32>
    %cst_14 = arith.constant dense<0.000000e+00> : vector<64xf32>
    %41 = vector.multi_reduction <add>, %40, %cst_14 [1] : vector<64x64xf32> to vector<64xf32>
    %42 = vector.shape_cast %41 : vector<64xf32> to vector<64x1xf32>
    %43 = arith.truncf %40 : vector<64x64xf32> to vector<64x64xbf16>
    %cst_15 = arith.constant dense<0.000000e+00> : vector<64x64xf32>
    %44 = tpu.matmul %43, %33, %cst_15 {dimension_numbers = #tpu.dot_dimension_numbers<[1], [0], [0], [1], [0, 0, 1, 1], [], []>} : vector<64x64xbf16>, vector<64x64xbf16>, vector<64x64xf32> -> vector<64x64xf32>
    %45 = tpu.reciprocal %42 {approx = true} : vector<64x1xf32> -> vector<64x1xf32>
    %46 = vector.broadcast %45 : vector<64x1xf32> to vector<64x64xf32>
    %47 = arith.mulf %44, %46 : vector<64x64xf32>
    %48 = arith.truncf %47 : vector<64x64xf32> to vector<64x64xbf16>
    %c0_16 = arith.constant 0 : index
    %c64 = arith.constant 64 : index
    %49 = vector.load %arg7[%c0_16, %c64] : memref<64x384xbf16, #tpu.memory_space<vmem>>, vector<64x64xbf16>
    tpu.vector_store %arg7[%c0_16, %c64], %48 {strides = array<i32>} : memref<64x384xbf16, #tpu.memory_space<vmem>>, vector<64x64xbf16>,
    %50 = vector.extract_strided_slice %4 {offsets = [0, 128], sizes = [64, 64], strides = [1, 1]} : vector<64x1152xf32> to vector<64x64xf32>
    %51 = arith.truncf %50 : vector<64x64xf32> to vector<64x64xbf16>
    %52 = vector.extract_strided_slice %4 {offsets = [0, 512], sizes = [64, 64], strides = [1, 1]} : vector<64x1152xf32> to vector<64x64xf32>
    %53 = arith.truncf %52 : vector<64x64xf32> to vector<64x64xbf16>
    %54 = vector.extract_strided_slice %4 {offsets = [0, 896], sizes = [64, 64], strides = [1, 1]} : vector<64x1152xf32> to vector<64x64xf32>
    %55 = arith.truncf %54 : vector<64x64xf32> to vector<64x64xbf16>
    %cst_17 = arith.constant dense<0.000000e+00> : vector<64x64xf32>
    %56 = tpu.matmul %51, %53, %cst_17 {dimension_numbers = #tpu.dot_dimension_numbers<[1], [1], [0], [0], [0, 0, 1, 0], [], []>} : vector<64x64xbf16>, vector<64x64xbf16>, vector<64x64xf32> -> vector<64x64xf32>
    %57 = arith.addf %56, %5 : vector<64x64xf32>
    %cst_18 = arith.constant dense<0xFF800000> : vector<64xf32>
    %58 = vector.multi_reduction <maximumf>, %57, %cst_18 [1] : vector<64x64xf32> to vector<64xf32>
    %59 = vector.shape_cast %58 : vector<64xf32> to vector<64x1xf32>
    %60 = vector.broadcast %59 : vector<64x1xf32> to vector<64x64xf32>
    %61 = arith.subf %57, %60 : vector<64x64xf32>
    %62 = math.exp %61 : vector<64x64xf32>
    %cst_19 = arith.constant dense<0.000000e+00> : vector<64xf32>
    %63 = vector.multi_reduction <add>, %62, %cst_19 [1] : vector<64x64xf32> to vector<64xf32>
    %64 = vector.shape_cast %63 : vector<64xf32> to vector<64x1xf32>
    %65 = arith.truncf %62 : vector<64x64xf32> to vector<64x64xbf16>
    %cst_20 = arith.constant dense<0.000000e+00> : vector<64x64xf32>
    %66 = tpu.matmul %65, %55, %cst_20 {dimension_numbers = #tpu.dot_dimension_numbers<[1], [0], [0], [1], [0, 0, 1, 1], [], []>} : vector<64x64xbf16>, vector<64x64xbf16>, vector<64x64xf32> -> vector<64x64xf32>
    %67 = tpu.reciprocal %64 {approx = true} : vector<64x1xf32> -> vector<64x1xf32>
    %68 = vector.broadcast %67 : vector<64x1xf32> to vector<64x64xf32>
    %69 = arith.mulf %66, %68 : vector<64x64xf32>
    %70 = arith.truncf %69 : vector<64x64xf32> to vector<64x64xbf16>
    %c0_21 = arith.constant 0 : index
    %c128 = arith.constant 128 : index
    %71 = vector.load %arg7[%c0_21, %c128] : memref<64x384xbf16, #tpu.memory_space<vmem>>, vector<64x64xbf16>
    tpu.vector_store %arg7[%c0_21, %c128], %70 {strides = array<i32>} : memref<64x384xbf16, #tpu.memory_space<vmem>>, vector<64x64xbf16>,
    %72 = vector.extract_strided_slice %4 {offsets = [0, 192], sizes = [64, 64], strides = [1, 1]} : vector<64x1152xf32> to vector<64x64xf32>
    %73 = arith.truncf %72 : vector<64x64xf32> to vector<64x64xbf16>
    %74 = vector.extract_strided_slice %4 {offsets = [0, 576], sizes = [64, 64], strides = [1, 1]} : vector<64x1152xf32> to vector<64x64xf32>
    %75 = arith.truncf %74 : vector<64x64xf32> to vector<64x64xbf16>
    %76 = vector.extract_strided_slice %4 {offsets = [0, 960], sizes = [64, 64], strides = [1, 1]} : vector<64x1152xf32> to vector<64x64xf32>
    %77 = arith.truncf %76 : vector<64x64xf32> to vector<64x64xbf16>
    %cst_22 = arith.constant dense<0.000000e+00> : vector<64x64xf32>
    %78 = tpu.matmul %73, %75, %cst_22 {dimension_numbers = #tpu.dot_dimension_numbers<[1], [1], [0], [0], [0, 0, 1, 0], [], []>} : vector<64x64xbf16>, vector<64x64xbf16>, vector<64x64xf32> -> vector<64x64xf32>
    %79 = arith.addf %78, %5 : vector<64x64xf32>
    %cst_23 = arith.constant dense<0xFF800000> : vector<64xf32>
    %80 = vector.multi_reduction <maximumf>, %79, %cst_23 [1] : vector<64x64xf32> to vector<64xf32>
    %81 = vector.shape_cast %80 : vector<64xf32> to vector<64x1xf32>
    %82 = vector.broadcast %81 : vector<64x1xf32> to vector<64x64xf32>
    %83 = arith.subf %79, %82 : vector<64x64xf32>
    %84 = math.exp %83 : vector<64x64xf32>
    %cst_24 = arith.constant dense<0.000000e+00> : vector<64xf32>
    %85 = vector.multi_reduction <add>, %84, %cst_24 [1] : vector<64x64xf32> to vector<64xf32>
    %86 = vector.shape_cast %85 : vector<64xf32> to vector<64x1xf32>
    %87 = arith.truncf %84 : vector<64x64xf32> to vector<64x64xbf16>
    %cst_25 = arith.constant dense<0.000000e+00> : vector<64x64xf32>
    %88 = tpu.matmul %87, %77, %cst_25 {dimension_numbers = #tpu.dot_dimension_numbers<[1], [0], [0], [1], [0, 0, 1, 1], [], []>} : vector<64x64xbf16>, vector<64x64xbf16>, vector<64x64xf32> -> vector<64x64xf32>
    %89 = tpu.reciprocal %86 {approx = true} : vector<64x1xf32> -> vector<64x1xf32>
    %90 = vector.broadcast %89 : vector<64x1xf32> to vector<64x64xf32>
    %91 = arith.mulf %88, %90 : vector<64x64xf32>
    %92 = arith.truncf %91 : vector<64x64xf32> to vector<64x64xbf16>
    %c0_26 = arith.constant 0 : index
    %c192 = arith.constant 192 : index
    %93 = vector.load %arg7[%c0_26, %c192] : memref<64x384xbf16, #tpu.memory_space<vmem>>, vector<64x64xbf16>
    tpu.vector_store %arg7[%c0_26, %c192], %92 {strides = array<i32>} : memref<64x384xbf16, #tpu.memory_space<vmem>>, vector<64x64xbf16>,
    %94 = vector.extract_strided_slice %4 {offsets = [0, 256], sizes = [64, 64], strides = [1, 1]} : vector<64x1152xf32> to vector<64x64xf32>
    %95 = arith.truncf %94 : vector<64x64xf32> to vector<64x64xbf16>
    %96 = vector.extract_strided_slice %4 {offsets = [0, 640], sizes = [64, 64], strides = [1, 1]} : vector<64x1152xf32> to vector<64x64xf32>
    %97 = arith.truncf %96 : vector<64x64xf32> to vector<64x64xbf16>
    %98 = vector.extract_strided_slice %4 {offsets = [0, 1024], sizes = [64, 64], strides = [1, 1]} : vector<64x1152xf32> to vector<64x64xf32>
    %99 = arith.truncf %98 : vector<64x64xf32> to vector<64x64xbf16>
    %cst_27 = arith.constant dense<0.000000e+00> : vector<64x64xf32>
    %100 = tpu.matmul %95, %97, %cst_27 {dimension_numbers = #tpu.dot_dimension_numbers<[1], [1], [0], [0], [0, 0, 1, 0], [], []>} : vector<64x64xbf16>, vector<64x64xbf16>, vector<64x64xf32> -> vector<64x64xf32>
    %101 = arith.addf %100, %5 : vector<64x64xf32>
    %cst_28 = arith.constant dense<0xFF800000> : vector<64xf32>
    %102 = vector.multi_reduction <maximumf>, %101, %cst_28 [1] : vector<64x64xf32> to vector<64xf32>
    %103 = vector.shape_cast %102 : vector<64xf32> to vector<64x1xf32>
    %104 = vector.broadcast %103 : vector<64x1xf32> to vector<64x64xf32>
    %105 = arith.subf %101, %104 : vector<64x64xf32>
    %106 = math.exp %105 : vector<64x64xf32>
    %cst_29 = arith.constant dense<0.000000e+00> : vector<64xf32>
    %107 = vector.multi_reduction <add>, %106, %cst_29 [1] : vector<64x64xf32> to vector<64xf32>
    %108 = vector.shape_cast %107 : vector<64xf32> to vector<64x1xf32>
    %109 = arith.truncf %106 : vector<64x64xf32> to vector<64x64xbf16>
    %cst_30 = arith.constant dense<0.000000e+00> : vector<64x64xf32>
    %110 = tpu.matmul %109, %99, %cst_30 {dimension_numbers = #tpu.dot_dimension_numbers<[1], [0], [0], [1], [0, 0, 1, 1], [], []>} : vector<64x64xbf16>, vector<64x64xbf16>, vector<64x64xf32> -> vector<64x64xf32>
    %111 = tpu.reciprocal %108 {approx = true} : vector<64x1xf32> -> vector<64x1xf32>
    %112 = vector.broadcast %111 : vector<64x1xf32> to vector<64x64xf32>
    %113 = arith.mulf %110, %112 : vector<64x64xf32>
    %114 = arith.truncf %113 : vector<64x64xf32> to vector<64x64xbf16>
    %c0_31 = arith.constant 0 : index
    %c256 = arith.constant 256 : index
    %115 = vector.load %arg7[%c0_31, %c256] : memref<64x384xbf16, #tpu.memory_space<vmem>>, vector<64x64xbf16>
    tpu.vector_store %arg7[%c0_31, %c256], %114 {strides = array<i32>} : memref<64x384xbf16, #tpu.memory_space<vmem>>, vector<64x64xbf16>,
    %116 = vector.extract_strided_slice %4 {offsets = [0, 320], sizes = [64, 64], strides = [1, 1]} : vector<64x1152xf32> to vector<64x64xf32>
    %117 = arith.truncf %116 : vector<64x64xf32> to vector<64x64xbf16>
    %118 = vector.extract_strided_slice %4 {offsets = [0, 704], sizes = [64, 64], strides = [1, 1]} : vector<64x1152xf32> to vector<64x64xf32>
    %119 = arith.truncf %118 : vector<64x64xf32> to vector<64x64xbf16>
    %120 = vector.extract_strided_slice %4 {offsets = [0, 1088], sizes = [64, 64], strides = [1, 1]} : vector<64x1152xf32> to vector<64x64xf32>
    %121 = arith.truncf %120 : vector<64x64xf32> to vector<64x64xbf16>
    %cst_32 = arith.constant dense<0.000000e+00> : vector<64x64xf32>
    %122 = tpu.matmul %117, %119, %cst_32 {dimension_numbers = #tpu.dot_dimension_numbers<[1], [1], [0], [0], [0, 0, 1, 0], [], []>} : vector<64x64xbf16>, vector<64x64xbf16>, vector<64x64xf32> -> vector<64x64xf32>
    %123 = arith.addf %122, %5 : vector<64x64xf32>
    %cst_33 = arith.constant dense<0xFF800000> : vector<64xf32>
    %124 = vector.multi_reduction <maximumf>, %123, %cst_33 [1] : vector<64x64xf32> to vector<64xf32>
    %125 = vector.shape_cast %124 : vector<64xf32> to vector<64x1xf32>
    %126 = vector.broadcast %125 : vector<64x1xf32> to vector<64x64xf32>
    %127 = arith.subf %123, %126 : vector<64x64xf32>
    %128 = math.exp %127 : vector<64x64xf32>
    %cst_34 = arith.constant dense<0.000000e+00> : vector<64xf32>
    %129 = vector.multi_reduction <add>, %128, %cst_34 [1] : vector<64x64xf32> to vector<64xf32>
    %130 = vector.shape_cast %129 : vector<64xf32> to vector<64x1xf32>
    %131 = arith.truncf %128 : vector<64x64xf32> to vector<64x64xbf16>
    %cst_35 = arith.constant dense<0.000000e+00> : vector<64x64xf32>
    %132 = tpu.matmul %131, %121, %cst_35 {dimension_numbers = #tpu.dot_dimension_numbers<[1], [0], [0], [1], [0, 0, 1, 1], [], []>} : vector<64x64xbf16>, vector<64x64xbf16>, vector<64x64xf32> -> vector<64x64xf32>
    %133 = tpu.reciprocal %130 {approx = true} : vector<64x1xf32> -> vector<64x1xf32>
    %134 = vector.broadcast %133 : vector<64x1xf32> to vector<64x64xf32>
    %135 = arith.mulf %132, %134 : vector<64x64xf32>
    %136 = arith.truncf %135 : vector<64x64xf32> to vector<64x64xbf16>
    %c0_36 = arith.constant 0 : index
    %c320 = arith.constant 320 : index
    %137 = vector.load %arg7[%c0_36, %c320] : memref<64x384xbf16, #tpu.memory_space<vmem>>, vector<64x64xbf16>
    tpu.vector_store %arg7[%c0_36, %c320], %136 {strides = array<i32>} : memref<64x384xbf16, #tpu.memory_space<vmem>>, vector<64x64xbf16>,
    %c0_37 = arith.constant 0 : index
    %c0_38 = arith.constant 0 : index
    %138 = vector.load %arg7[%c0_37, %c0_38] : memref<64x384xbf16, #tpu.memory_space<vmem>>, vector<64x384xbf16>
    %c0_39 = arith.constant 0 : index
    %c0_40 = arith.constant 0 : index
    %139 = vector.load %arg4[%c0_39, %c0_40] : memref<384x384xbf16, #tpu.memory_space<vmem>>, vector<384x384xbf16>
    %cst_41 = arith.constant dense<0.000000e+00> : vector<64x384xf32>
    %140 = tpu.matmul %138, %139, %cst_41 {dimension_numbers = #tpu.dot_dimension_numbers<[1], [0], [0], [1], [0, 0, 1, 1], [], []>} : vector<64x384xbf16>, vector<384x384xbf16>, vector<64x384xf32> -> vector<64x384xf32>
    %c0_42 = arith.constant 0 : index
    %c0_43 = arith.constant 0 : index
    %141 = vector.load %arg5[%c0_42, %c0_43] : memref<1x384xf32, #tpu.memory_space<vmem>>, vector<1x384xf32>
    %142 = vector.broadcast %141 : vector<1x384xf32> to vector<64x384xf32>
    %143 = arith.addf %140, %142 : vector<64x384xf32>
    %144 = vector.shape_cast %143 : vector<64x384xf32> to vector<1x64x384xf32>
    %c0_44 = arith.constant 0 : index
    %c0_45 = arith.constant 0 : index
    %c0_46 = arith.constant 0 : index
    %145 = vector.load %arg6[%c0_44, %c0_45, %c0_46] : memref<1x64x384xf32, #tpu.memory_space<vmem>>, vector<1x64x384xf32>
    tpu.vector_store %arg6[%c0_44, %c0_45, %c0_46], %144 {strides = array<i32>} : memref<1x64x384xf32, #tpu.memory_space<vmem>>, vector<1x64x384xf32>,
    return
  }
  func.func @transform_0(%arg0: i32) -> (i32, i32, i32) {
    %c0_i32 = arith.constant 0 : i32
    %c0_i32_0 = arith.constant 0 : i32
    %c0_i32_1 = arith.constant 0 : i32
    return %arg0, %c0_i32, %c0_i32_0 : i32, i32, i32
  }
  func.func @transform_1(%arg0: i32) -> (i32, i32) {
    %c0_i32 = arith.constant 0 : i32
    %c0_i32_0 = arith.constant 0 : i32
    %c0_i32_1 = arith.constant 0 : i32
    return %c0_i32, %c0_i32_0 : i32, i32
  }
  func.func @transform_2(%arg0: i32) -> (i32, i32) {
    %c0_i32 = arith.constant 0 : i32
    %c0_i32_0 = arith.constant 0 : i32
    %c0_i32_1 = arith.constant 0 : i32
    return %c0_i32, %c0_i32_0 : i32, i32
  }
  func.func @transform_3(%arg0: i32) -> (i32, i32) {
    %c0_i32 = arith.constant 0 : i32
    %c0_i32_0 = arith.constant 0 : i32
    %c0_i32_1 = arith.constant 0 : i32
    return %c0_i32, %c0_i32_0 : i32, i32
  }
  func.func @transform_4(%arg0: i32) -> (i32, i32) {
    %c0_i32 = arith.constant 0 : i32
    %c0_i32_0 = arith.constant 0 : i32
    %c0_i32_1 = arith.constant 0 : i32
    return %c0_i32, %c0_i32_0 : i32, i32
  }
  func.func @transform_5(%arg0: i32) -> (i32, i32, i32) {
    %c0_i32 = arith.constant 0 : i32
    %c0_i32_0 = arith.constant 0 : i32
    %c0_i32_1 = arith.constant 0 : i32
    return %arg0, %c0_i32, %c0_i32_0 : i32, i32, i32
  }
}

</mosaic_0001>

<bundles_post_ra>
// kernel: tpu_custom_call.1
= control target key start
LH: loop header
LB: loop body
LE: loop exit
PB: predicated region body
PF: predicated region fallthrough
CT: control target
= control target key end

     0   :  { %10 = vsyncpa [#allocation4], 0  ;;  %s8678_s0 = inlined_call_operand.hbm [shape: f32[2,64,384], index: 0, kind: input, shape index: {}]   ;;  %s8679_s1 = inlined_call_operand.hbm [shape: f32[64,64], index: 1, kind: input, shape index: {}]   ;;  %s8680_s2 = inlined_call_operand.hbm [shape: bf16[384,1152], index: 2, kind: input, shape index: {}]   ;;  %s8681_s3 = inlined_call_operand.hbm [shape: bf16[384,384], index: 3, kind: input, shape index: {}]   ;;  %s8682_s4 = inlined_call_operand.vmem [shape: f32[1,384], index: 4, kind: input, shape index: {}]   ;;  %s8683_s5 = inlined_call_operand.hbm [shape: f32[2,64,384], index: 5, kind: output, shape index: {}]  }
   0x1   :  { %12 = vsyncpa [#allocation4 + $0x1], 0 }
   0x2   :  { %13 = vsyncpa [#allocation7], 0 }
   0x3   :  { %14 = vsyncpa [#allocation10], 0 }
   0x4   :  { %15 = vsyncpa [#allocation5], 0 }
   0x5   :  { %17 = vsyncpa [#allocation5 + $0x1], 0  ;;  %s7260_s18 = smov 0   ;;  %s7262_s19 = smov 0  }
   0x6   :  { %s7264_s20 = smov 0   ;;  %s7266_s21 = smov 0  }
   0x7 LB: > { %s7281_s22 = sadd.s32 4294967295, %s7211_s21   ;;  %s5378_s23 = sadd.s32 4294967294, %s7211_s21   ;;  %s7211_s21 = sphi %s7266_s21, %s8801_s21   ;;  %s7207_s20 = sphi %s7264_s20, %s8800_s20   ;;  %s7203_s19 = sphi %s7262_s19, %s8799_s19   ;;  %s7199_s18 = sphi %s7260_s18, %s8798_s18  }
   0x8   : > { %p43_p0 = scmp.ne.s32.totalorder %s7203_s19, %s7199_s18  ;;  %p8684_p1 = scmp.eq.s32.totalorder %s7281_s22, 0 }
   0x9   : > { %p157_p3 = scmp.eq.s32.totalorder %s5378_s23, 1  ;;  %p5379_p5 = scmp.ge.s32.totalorder %s7211_s21, 1 }
   0xa   : > { %p7290_p4 = por %p8684_p1, %p43_p0  ;;  %p164_p7 = scmp.lt.s32.totalorder %s7211_s21, 3 }
   0xb   : > { %p7295_p6 = por %p157_p3, %p43_p0  ;;  %s7213_s27 = smov [#allocation6]  }
   0xc   : > { %s8700_s24 = scalar_select %p7290_p4, 1, 0 }
   0xd   : > { %s8701_s25 = scalar_select %p7295_p6, 1, 0 }
   0xe   : > { %p7300_p8 = pnand %p5379_p5, %p164_p7  ;;  %s176_s28 = sshll.u32 %s7213_s27, 4  ;;  %s177_s28 = int_to_ptr.vmem [resolvable:$true] %s176_s28 }
   0xf   : > { %s7214_s30 = smov [#allocation8]   ;;  %s7044_s7 = scalar_lea.vmem %s177_s28, 1024 }
  0x10   : > { %s8702_s26 = scalar_select %p7300_p8, 1, 0 }
  0x11   : > { %p6336_p9 = pneg %p7300_p8  ;;  %s189_s6 = sshll.u32 %s7214_s30, 4  ;;  %s190_s6 = int_to_ptr.vmem [resolvable:$true] %s189_s6 }
  0x12   : > { %p7045_p13 = scmp.ne.s32.totalorder %s177_s28, %s7044_s7  ;;  %p7052_p5 = scmp.lt.s32.totalorder %s177_s28, %s177_s28 }
  0x13   : > { %p7309_p11 = pnand %p6336_p9, %p8684_p1  ;;  %p7053_p7 = scmp.lt.s32.totalorder %s7044_s7, %s7044_s7 }
  0x15   : > { %p7035_p12 = pneg %p7309_p11  ;;  %p7054_p10 = por %p7053_p7, %p7052_p5 }
  0x17   : > { %p7047_p0 = pnand %p7045_p13, %p7035_p12 }
  0x19   : > { %p7048_p3 = pneg %p7047_p0 }
  0x1b   : > { %p7055_p9 = pnand %p7054_p10, %p7048_p3 }
  0x1d   : > { %7058 = shalt.err (!%p7055_p9)
}
  0x1e   : > { %s7215_s8 = smov 128   ;;  %s7216_s9 = smov 8  }
  0x1f   : > { %6339 = dma.hbm_to_vmem [thread:$0]  (!%p7309_p11), %s8679_s1, 1024, %s177_s28, [#allocation7], %s7215_s8, %s7215_s8, %s7216_s9  }
  0x20   : > { %s7070_s12 = scalar_lea.vmem %s190_s6, 27648  ;;  %p7078_p2 = scmp.lt.s32.totalorder %s190_s6, %s190_s6 }
  0x21   : > { %p7071_p1 = scmp.ne.s32.totalorder %s190_s6, %s7070_s12  ;;  %p7079_p6 = scmp.lt.s32.totalorder %s7070_s12, %s7070_s12 }
  0x23   : > { %p7073_p13 = pnand %p7071_p1, %p7035_p12  ;;  %p7080_p5 = por %p7079_p6, %p7078_p2 }
  0x25   : > { %p7074_p0 = pneg %p7073_p13 }
  0x27   : > { %p7081_p10 = pnand %p7080_p5, %p7074_p0 }
  0x29   : > { %7084 = shalt.err (!%p7081_p10)
}
  0x2a   : > { %s7217_s13 = smov 576   ;;  %s7218_s14 = smov 36  }
  0x2b   : > { %6342 = dma.hbm_to_vmem [thread:$0]  (!%p7309_p11), %s8680_s2, 27648, %s190_s6, [#allocation7], %s7217_s13, %s7217_s13, %s7218_s14  }
  0x2c   : > { %s7219_s17 = smov [#allocation9]  }
  0x2d   : > { %s202_s23 = sshll.u32 %s7219_s17, 4  ;;  %s203_s23 = int_to_ptr.vmem [resolvable:$true] %s202_s23 }
  0x2e   : > { %s7096_s27 = scalar_lea.vmem %s203_s23, 9216  ;;  %p7104_p6 = scmp.lt.s32.totalorder %s203_s23, %s203_s23 }
  0x2f   : > { %p7097_p1 = scmp.ne.s32.totalorder %s203_s23, %s7096_s27  ;;  %p7105_p7 = scmp.lt.s32.totalorder %s7096_s27, %s7096_s27 }
  0x31   : > { %p7099_p3 = pnand %p7097_p1, %p7035_p12  ;;  %p7106_p9 = por %p7105_p7, %p7104_p6 }
  0x33   : > { %p7100_p2 = pneg %p7099_p3 }
  0x35   : > { %p7107_p13 = pnand %p7106_p9, %p7100_p2 }
  0x37   : > { %7110 = shalt.err (!%p7107_p13)
}
  0x38   : > { %s7220_s28 = smov 192   ;;  %s7221_s30 = smov 12  }
  0x39   : > { %6345 = dma.hbm_to_vmem [thread:$0]  (!%p7309_p11), %s8681_s3, 9216, %s203_s23, [#allocation10], %s7220_s28, %s7220_s28, %s7221_s30  }
  0x3a   : > { %s7340_s8 = sadd.s32 1, %s7211_s21   ;;  %s30_s10 = sadd.s32 1, %s7207_s20 }
  0x3b   : > { %s27_s9 = ssub.s32 %s7211_s21, %s7340_s8  ;;  %p37_p0 = scmp.ne.s32.totalorder %s7207_s20, %s7203_s19 }
  0x3c   : > { %p28_p12 = scmp.eq.s32.totalorder %s27_s9, 0  ;;  %p38_p5 = scmp.eq.s32.totalorder %s7211_s21, 0 }
  0x3d   : > { %p6357_p10 = scmp.lt.s32.totalorder %s7211_s21, 2  ;;  %p8704_p3 = scmp.eq.s32.totalorder %s7281_s22, 1 }
  0x3e   : > { %s7350_s11 = scalar_select %p28_p12, %s7207_s20, %s30_s10  }
  0x3f   : > { %p39_p1 = por %p38_p5, %p37_p0  ;;  %p7354_p2 = por %p8704_p3, %p37_p0 }
  0x40   : > { %s219_s29 = sand.u32 1, %s7207_s20   ;;  %s6317_s13 = smul.u32 3072, %s7211_s21 }
  0x41   : > { %s8705_s12 = scalar_select %p7354_p2, 1, 0 }
  0x42   : > { %s6316_s14 = smul.u32 192, %s219_s29  ;;  %s7363_s17 = scalar_lea.hbm %s8678_s0, %s6317_s13 }
  0x43   : > { %p7365_p11 = pnand %p6357_p10, %p39_p1  ;;  %s7371_s30 = scalar_lea.sflag [#allocation4], %s219_s29 }
  0x44   : > { %s223_s27 = scalar_lea.vmem [#allocation3], %s6316_s14  ;;  %s7111_s6 = scalar_lea.hbm %s7363_s17, 3072 }
  0x45   : > { %s230_s28 = sshll.u32 %s223_s27, 4  ;;  %p7112_p6 = scmp.ne.s32.totalorder %s7363_s17, %s7111_s6  ;;  %s7369_s28 = int_to_ptr.vmem [resolvable:$true] %s230_s28 }
  0x46   : > { %p7113_p7 = pneg %p7365_p11  ;;  %s7116_s10 = scalar_lea.hbm %s8678_s0, 6144 }
  0x47   : > { %p7117_p12 = scmp.lt.s32.totalorder %s7363_s17, %s8678_s0  ;;  %p7118_p0 = scmp.lt.s32.totalorder %s7116_s10, %s7111_s6 }
  0x48   : > { %p7114_p9 = pnand %p7113_p7, %p7112_p6 }
  0x49   : > { %p7119_p5 = por %p7118_p0, %p7117_p12 }
  0x4a   : > { %p7115_p13 = pneg %p7114_p9 }
  0x4c   : > { %p7120_p10 = pnand %p7119_p5, %p7115_p13 }
  0x4e   : > { %7123 = shalt.err (!%p7120_p10)
}
  0x4f   : > { %s7124_s29 = scalar_lea.vmem %s7369_s28, 3072  ;;  %s7222_s14 = smov [#allocation3]  }
  0x50   : > { %p7125_p1 = scmp.ne.s32.totalorder %s7369_s28, %s7124_s29  ;;  %s7129_s16 = sshll.u32 %s7222_s14, 4  ;;  %s7130_s16 = int_to_ptr.vmem [resolvable:$false] %s7129_s16 }
  0x51   : > { %s7131_s27 = scalar_lea.vmem %s7130_s16, 6144  ;;  %p7132_p9 = scmp.lt.s32.totalorder %s7369_s28, %s7130_s16 }
  0x52   : > { %p7127_p3 = pnand %p7125_p1, %p7113_p7  ;;  %p7133_p2 = scmp.lt.s32.totalorder %s7131_s27, %s7124_s29 }
  0x54   : > { %p7128_p6 = pneg %p7127_p3  ;;  %p7134_p4 = por %p7133_p2, %p7132_p9 }
  0x56   : > { %p7135_p8 = pnand %p7134_p4, %p7128_p6 }
  0x58   : > { %7138 = shalt.err (!%p7135_p8)
}
  0x59   : > { %s7223_s6 = smov 384   ;;  %s7224_s7 = smov 24  }
  0x5a   : > { %6349 = dma.hbm_to_vmem [thread:$0]  (!%p7365_p11), %s7363_s17, 3072, %s7369_s28, %s7371_s30, %s7223_s6, %s7223_s6, %s7224_s7  }
  0x5b   : > { %p8707_p7 = scmp.ne.s32.totalorder %s8702_s26, 0 }
  0x5d   : > { %242 = sbr.rel (%p8707_p7) target bundleno = 3610 (0xe1a), region = 40 }
  0x62   : > { %s7395_s9 = sand.u32 1, %s7203_s19   ;;  %p8708_p4 = scmp.ne.s32.totalorder %s8700_s24, 0 }
  0x63   : > { %s6318_s10 = smul.u32 192, %s7395_s9  ;;  %s245_s13 = scalar_lea.sflag [#allocation4], %s7395_s9 }
  0x65   : > { %s7401_s15 = scalar_lea.vmem [#allocation3], %s6318_s10 }
  0x66   : > { %7182 = dma.done.wait (%p8708_p4), %s245_s13, 3072  }
  0x67   : > { %7184 = vsyncadd (%p8708_p4), %s245_s13, 4294964224  ;;  %p8709_p8 = scmp.eq.s32.totalorder %s7281_s22, 0 }
  0x69   : > { %7186 = dma.done.wait (%p8709_p8), [#allocation7], 28672   ;;  %p8710_p2 = pmov %p8709_p8 }
  0x6b   : > { %7188 = vsyncadd (%p8710_p2), [#allocation7], 4294938624  ;;  %p8711_p11 = pmov %p8710_p2 }
  0x6c   : > { %p8712_p13 = pmov %p8710_p2 }
  0x6d   : > { %7190 = dma.done.wait (%p8711_p11), [#allocation10], 9216  }
  0x6e   : > { %7192 = vsyncadd (%p8712_p13), [#allocation10], 4294958080  ;;  %v8688_v0 = vmov 0   ;;  %v6409_v1 = vld [vmem:[#allocation8 + $0x1fc] ss:$36 sps:$4 sm:$0xff]   ;;  %v290_v33 = vld [vmem:[%s7401_s15 + $0x10] sm:$0xff] }
  0x6f   : > { %1773 = vmatprep.mubr.bf16.mxu1 %v8688_v0  ;;  %v6411_v2 = vld [vmem:[#allocation8 + $0x67c] ss:$36 sps:$4 sm:$0xff]   ;;  %1668 = vmatprep.subr.bf16.mxu0 %v6409_v1  ;;  %v6415_v5 = vld [vmem:[#allocation8 + $0x1b4] ss:$36 sps:$4 sm:$0xff]   ;;  %v6421_v9 = vld [vmem:[#allocation8 + $0x16c] ss:$36 sps:$4 sm:$0xff]  }
  0x70   : > { %v6413_v3 = vld [vmem:[#allocation8 + $0x1f8] ss:$36 sps:$4 sm:$0xff]   ;;  %1741 = vmatprep.subr.bf16.mxu1 %v6411_v2  ;;  %v6419_v7 = vld [vmem:[#allocation8 + $0x1b0] ss:$36 sps:$4 sm:$0xff]   ;;  %v6425_v11 = vld [vmem:[#allocation8 + $0x168] ss:$36 sps:$4 sm:$0xff]  }
  0x71   : > { %v6414_v4 = vld [vmem:[#allocation8 + $0x678] ss:$36 sps:$4 sm:$0xff]   ;;  %1669 = vmatpush1.bf16.msra.mxu0 %v6413_v3  ;;  %v6420_v8 = vld [vmem:[#allocation8 + $0x630] ss:$36 sps:$4 sm:$0xff]   ;;  %v6426_v12 = vld [vmem:[#allocation8 + $0x5e8] ss:$36 sps:$4 sm:$0xff]  }
  0x72   : > { %1742 = vmatpush1.bf16.msra.mxu1 %v6414_v4  ;;  %v6417_v6 = vld [vmem:[#allocation8 + $0x634] ss:$36 sps:$4 sm:$0xff]   ;;  %1670 = vmatprep.subr.bf16.mxu0 %v6415_v5  ;;  %v6423_v10 = vld [vmem:[#allocation8 + $0x5ec] ss:$36 sps:$4 sm:$0xff]   ;;  %v6427_v13 = vld [vmem:[#allocation8 + $0x124] ss:$36 sps:$4 sm:$0xff]  }
  0x73   : > { %1743 = vmatprep.subr.bf16.mxu1 %v6417_v6  ;;  %v6429_v14 = vld [vmem:[#allocation8 + $0x5a4] ss:$36 sps:$4 sm:$0xff]   ;;  %v6433_v17 = vld [vmem:[#allocation8 + $0xdc] ss:$36 sps:$4 sm:$0xff]   ;;  %v6439_v21 = vld [vmem:[#allocation8 + $0x94] ss:$36 sps:$4 sm:$0xff]  }
  0x74   : > { %v6431_v15 = vld [vmem:[#allocation8 + $0x120] ss:$36 sps:$4 sm:$0xff]   ;;  %v6437_v19 = vld [vmem:[#allocation8 + $0xd8] ss:$36 sps:$4 sm:$0xff]   ;;  %v6443_v23 = vld [vmem:[#allocation8 + $0x90] ss:$36 sps:$4 sm:$0xff]  }
  0x75   : > { %1671 = vmatpush1.bf16.msra.mxu0 %v6419_v7  ;;  %v6432_v16 = vld [vmem:[#allocation8 + $0x5a0] ss:$36 sps:$4 sm:$0xff]   ;;  %v6438_v20 = vld [vmem:[#allocation8 + $0x558] ss:$36 sps:$4 sm:$0xff]   ;;  %v6444_v24 = vld [vmem:[#allocation8 + $0x510] ss:$36 sps:$4 sm:$0xff]  }
  0x76   : > { %1744 = vmatpush1.bf16.msra.mxu1 %v6420_v8  ;;  %1672 = vmatprep.subr.bf16.mxu0 %v6421_v9  ;;  %v6435_v18 = vld [vmem:[#allocation8 + $0x55c] ss:$36 sps:$4 sm:$0xff]   ;;  %v6441_v22 = vld [vmem:[#allocation8 + $0x514] ss:$36 sps:$4 sm:$0xff]   ;;  %v6445_v25 = vld [vmem:[#allocation8 + $0x4c] ss:$36 sps:$4 sm:$0xff]  }
  0x77   : > { %1745 = vmatprep.subr.bf16.mxu1 %v6423_v10  ;;  %v6447_v26 = vld [vmem:[#allocation8 + $0x4cc] ss:$36 sps:$4 sm:$0xff]   ;;  %v6451_v29 = vld [vmem:[#allocation8 + $0x4] ss:$36 sps:$4 sm:$0xff]   ;;  %v6457_v35 = vld [vmem:[#allocation8 + $0x43c] ss:$36 sps:$4 sm:$0xff]  }
  0x78   : > { %v6449_v27 = vld [vmem:[#allocation8 + $0x48] ss:$36 sps:$4 sm:$0xff]   ;;  %v6455_v31 = vld [vmem:[#allocation8] ss:$36 sps:$4 sm:$0xff]   ;;  %v6462_v39 = vld [vmem:[#allocation8 + $0x438] ss:$36 sps:$4 sm:$0xff]  }
  0x79   : > { %1673 = vmatpush1.bf16.msra.mxu0 %v6425_v11  ;;  %v6450_v28 = vld [vmem:[#allocation8 + $0x4c8] ss:$36 sps:$4 sm:$0xff]   ;;  %v6456_v32 = vld [vmem:[#allocation8 + $0x480] ss:$36 sps:$4 sm:$0xff]   ;;  %v6463_v40 = vld [vmem:[#allocation8 + $0x3f4] ss:$36 sps:$4 sm:$0xff]  }
  0x7a   : > { %1746 = vmatpush1.bf16.msra.mxu1 %v6426_v12  ;;  %1674 = vmatprep.subr.bf16.mxu0 %v6427_v13  ;;  %v6453_v30 = vld [vmem:[#allocation8 + $0x484] ss:$36 sps:$4 sm:$0xff]   ;;  %v6467_v41 = vld [vmem:[#allocation8 + $0x1bc] ss:$36 sps:$4 sm:$0xff]   ;;  %v6468_v43 = vld [vmem:[#allocation8 + $0x3f0] ss:$36 sps:$4 sm:$0xff]  }
  0x7b   : > { %1747 = vmatprep.subr.bf16.mxu1 %v6429_v14  ;;  %v293_v34 = vld [vmem:[%s7401_s15 + $0x28] sm:$0xff]  ;;  %v6459_v38 = vld [vmem:[#allocation8 + $0x200] ss:$36 sps:$4 sm:$0xff]   ;;  %v6465_v42 = vld [vmem:[#allocation8 + $0x1b8] ss:$36 sps:$4 sm:$0xff]   ;;  %vm2402_vm0 = vcmask 523264  }
  0x7c   : > { %v6461_v36 = vld [vmem:[#allocation8 + $0x204] ss:$36 sps:$4 sm:$0xff]   ;;  %v7418_v37 = vpack.c.bf16 %v293_v34, %v290_v33  ;;  %v6469_v44 = vld [vmem:[#allocation8 + $0x3ac] ss:$36 sps:$4 sm:$0xff]   ;;  %v6473_v45 = vld [vmem:[#allocation8 + $0x174] ss:$36 sps:$4 sm:$0xff]  }
  0x7d   : > { %1675 = vmatpush1.bf16.msra.mxu0 %v6431_v15  ;;  %v6471_v46 = vld [vmem:[#allocation8 + $0x170] ss:$36 sps:$4 sm:$0xff]   ;;  %v6474_v47 = vld [vmem:[#allocation8 + $0x3a8] ss:$36 sps:$4 sm:$0xff]   ;;  %v292_v51 = vld [vmem:[%s7401_s15 + $0x20] sm:$0xff]  ;;  %s7226_s24 = smov 64  }
  0x7e   : > { %1748 = vmatpush1.bf16.msra.mxu1 %v6432_v16  ;;  %1676 = vmatprep.subr.bf16.mxu0 %v6433_v17  ;;  %v6475_v48 = vld [vmem:[#allocation8 + $0x364] ss:$36 sps:$4 sm:$0xff]   ;;  %v6479_v49 = vld [vmem:[#allocation8 + $0x12c] ss:$36 sps:$4 sm:$0xff]   ;;  %v6481_v55 = vld [vmem:[#allocation8 + $0x31c] ss:$36 sps:$4 sm:$0xff]  }
  0x7f   : > { %1749 = vmatprep.subr.bf16.mxu1 %v6435_v18  ;;  %v289_v50 = vld [vmem:[%s7401_s15 + $0x8] sm:$0xff]  ;;  %v6480_v53 = vld [vmem:[#allocation8 + $0x360] ss:$36 sps:$4 sm:$0xff]   ;;  %v6486_v58 = vld [vmem:[#allocation8 + $0x318] ss:$36 sps:$4 sm:$0xff]   ;;  %vm2693_vm1 = vcmask 519168  }
  0x80   : > { %v6477_v52 = vld [vmem:[#allocation8 + $0x128] ss:$36 sps:$4 sm:$0xff]   ;;  %v7424_v54 = vpack.c.bf16 %v292_v51, %v289_v50  ;;  %v6483_v57 = vld [vmem:[#allocation8 + $0xe0] ss:$36 sps:$4 sm:$0xff]   ;;  %v299_v60 = vld [vmem:[%s7401_s15 + $0x58] sm:$0xff]  ;;  %vm3048_vm2 = vcmask 1043968  }
  0x81   : > { %1677 = vmatpush1.bf16.msra.mxu0 %v6437_v19  ;;  %v6485_v56 = vld [vmem:[#allocation8 + $0xe4] ss:$36 sps:$4 sm:$0xff]   ;;  %v6487_v61 = vld [vmem:[#allocation8 + $0x2d4] ss:$36 sps:$4 sm:$0xff]   ;;  %v6491_v63 = vld [vmem:[#allocation8 + $0x9c] ss:$36 sps:$4 sm:$0xff]  }
  0x82   : > { %1750 = vmatpush1.bf16.msra.mxu1 %v6438_v20  ;;  %1678 = vmatprep.subr.bf16.mxu0 %v6439_v21  ;;  %v296_v59 = vld [vmem:[%s7401_s15 + $0x40] sm:$0xff]  ;;  %v6489_v1 = vld [vmem:[#allocation8 + $0x98] ss:$36 sps:$4 sm:$0xff]   ;;  %v6492_v2 = vld [vmem:[#allocation8 + $0x2d0] ss:$36 sps:$4 sm:$0xff]   ;;  %s8573_s23 = scalar_lea.vmem [#allocation11], %s6318_s10 }
  0x83   : > { %1751 = vmatprep.subr.bf16.mxu1 %v6441_v22  ;;  %1700 = vmatprep.mubr.bf16.mxu0 %v7424_v54  ;;  %v7429_v62 = vpack.c.bf16 %v299_v60, %v296_v59  ;;  %v6493_v3 = vld [vmem:[#allocation8 + $0x28c] ss:$36 sps:$4 sm:$0xff]   ;;  %v6497_v4 = vld [vmem:[#allocation8 + $0x54] ss:$36 sps:$4 sm:$0xff]   ;;  %v6499_v10 = vld [vmem:[#allocation8 + $0x244] ss:$36 sps:$4 sm:$0xff]  }
  0x84   : > { %v302_v5 = vld [vmem:[%s7401_s15 + $0x70] sm:$0xff]  ;;  %v305_v6 = vld [vmem:[%s7401_s15 + $0x88] sm:$0xff]  ;;  %v6504_v13 = vld [vmem:[#allocation8 + $0x240] ss:$36 sps:$4 sm:$0xff]   ;;  %s6319_s28 = smul.u32 3072, %s7281_s22  ;;  %s5276_s30 = sshll.u32 %s8573_s23, 4  ;;  %s8631_s30 = int_to_ptr.vmem [resolvable:$true] %s5276_s30 }
  0x85   : > { %1679 = vmatpush1.bf16.msra.mxu0 %v6443_v23  ;;  %v6495_v7 = vld [vmem:[#allocation8 + $0x50] ss:$36 sps:$4 sm:$0xff]   ;;  %v6498_v8 = vld [vmem:[#allocation8 + $0x288] ss:$36 sps:$4 sm:$0xff]   ;;  %v7435_v9 = vpack.c.bf16 %v305_v6, %v302_v5  ;;  %v288_v14 = vld [vmem:[%s7401_s15] sm:$0xff]  ;;  %s5263_s16 = scalar_lea.sflag [#allocation5], %s7395_s9 }
  0x86   : > { %1752 = vmatpush1.bf16.msra.mxu1 %v6444_v24  ;;  %1680 = vmatprep.subr.bf16.mxu0 %v6445_v25  ;;  %v6503_v11 = vld [vmem:[#allocation8 + $0xc] ss:$36 sps:$4 sm:$0xff]   ;;  %v291_v15 = vld [vmem:[%s7401_s15 + $0x18] sm:$0xff]  ;;  %v6507_v16 = vld [vmem:[#allocation8 + $0x444] ss:$36 sps:$4 sm:$0xff]   ;;  %s8629_s14 = scalar_lea.hbm %s8683_s5, %s6319_s28  ;;  %s7139_s27 = scalar_lea.vmem %s8631_s30, 3072 }
  0x87   : > { %1753 = vmatprep.subr.bf16.mxu1 %v6447_v26  ;;  %v6501_v12 = vld [vmem:[#allocation8 + $0x8] ss:$36 sps:$4 sm:$0xff]   ;;  %v6505_v18 = vld [vmem:[#allocation8 + $0x440] ss:$36 sps:$4 sm:$0xff]   ;;  %v311_v20 = vld [vmem:[%s7401_s15 + $0xb8] sm:$0xff]  ;;  %v7443_v21 = vpack.c.bf16 %v291_v15, %v288_v14  ;;  %p7140_p12 = scmp.ne.s32.totalorder %s8631_s30, %s7139_s27  ;;  %p8795_p0 = scmp.ne.s32.totalorder %s8705_s12, 0 }
  0x88   : > { %v6510_v17 = vld [vmem:[#allocation8 + $0x684] ss:$36 sps:$4 sm:$0xff]   ;;  %v295_v22 = vld [vmem:[%s7401_s15 + $0x38] sm:$0xff]  ;;  %v298_v23 = vld [vmem:[%s7401_s15 + $0x50] sm:$0xff]  ;;  %s7227_s6 = smov [#allocation11]  }
  0x89   : > { %1681 = vmatpush1.bf16.msra.mxu0 %v6449_v27  ;;  %v308_v19 = vld [vmem:[%s7401_s15 + $0xa0] sm:$0xff]  ;;  %v6519_v33 = vld [vmem:[#allocation8 + $0x3b4] ss:$36 sps:$4 sm:$0xff]   ;;  %v6549_v6 = vld [vmem:[#allocation8 + $0x24c] ss:$36 sps:$4 sm:$0xff]   ;;  %p7141_p5 = pnand %p7140_p12, %p8795_p0  ;;  %s7143_s7 = sshll.u32 %s7227_s6, 4  ;;  %s7144_s7 = int_to_ptr.vmem [resolvable:$false] %s7143_s7 }
  0x8a   : > { %1754 = vmatpush1.bf16.msra.mxu1 %v6450_v28  ;;  %1682 = vmatprep.subr.bf16.mxu0 %v6451_v29  ;;  %v7447_v24 = vpack.c.bf16 %v311_v20, %v308_v19  ;;  %v6508_v25 = vld [vmem:[#allocation8 + $0x680] ss:$36 sps:$4 sm:$0xff]   ;;  %v6511_v28 = vld [vmem:[#allocation8 + $0x3f8] ss:$36 sps:$4 sm:$0xff]   ;;  %v6544_v5 = vld [vmem:[#allocation8 + $0x4d0] ss:$36 sps:$4 sm:$0xff]   ;;  %p7146_p1 = scmp.lt.s32.totalorder %s8631_s30, %s7144_s7 }
  0x8b   : > { %1755 = vmatprep.subr.bf16.mxu1 %v6453_v30  ;;  %v6513_v26 = vld [vmem:[#allocation8 + $0x3fc] ss:$36 sps:$4 sm:$0xff]   ;;  %v7449_v30 = vpack.c.bf16 %v298_v23, %v295_v22  ;;  %v6522_v34 = vld [vmem:[#allocation8 + $0x5f4] ss:$36 sps:$4 sm:$0xff]   ;;  %v6586_v14 = vld [vmem:[#allocation8 + $0x688] ss:$36 sps:$4 sm:$0xff]   ;;  %p7142_p10 = pneg %p7141_p5 }
  0x8c   : > { %v6516_v27 = vld [vmem:[#allocation8 + $0x63c] ss:$36 sps:$4 sm:$0xff]   ;;  %v6558_v15 = vld [vmem:[#allocation8 + $0x1c4] ss:$36 sps:$4 sm:$0xff]   ;;  %s7145_s10 = scalar_lea.vmem %s7144_s7, 6144 }
  0x8d   : > { %1683 = vmatpush1.bf16.msra.mxu0 %v6455_v31  ;;  %v6514_v29 = vld [vmem:[#allocation8 + $0x638] ss:$36 sps:$4 sm:$0xff]   ;;  %v294_v31 = vld [vmem:[%s7401_s15 + $0x30] sm:$0xff]  ;;  %v6529_v50 = vld [vmem:[#allocation8 + $0x320] ss:$36 sps:$4 sm:$0xff]   ;;  %p7147_p3 = scmp.lt.s32.totalorder %s7145_s10, %s7139_s27 }
  0x8e   : > { %1756 = vmatpush1.bf16.msra.mxu1 %v6456_v32  ;;  %1684 = vmatprep.subr.bf16.mxu0 %v6457_v35  ;;  %v297_v32 = vld [vmem:[%s7401_s15 + $0x48] sm:$0xff]  ;;  %v6517_v35 = vld [vmem:[#allocation8 + $0x3b0] ss:$36 sps:$4 sm:$0xff]   ;;  %v6532_v51 = vld [vmem:[#allocation8 + $0x560] ss:$36 sps:$4 sm:$0xff]  }
  0x8f   : > { %1814 = vmatprep.subr.bf16.mxu1 %v6461_v36  ;;  %v6520_v36 = vld [vmem:[#allocation8 + $0x5f0] ss:$36 sps:$4 sm:$0xff]   ;;  %v6538_v59 = vld [vmem:[#allocation8 + $0x518] ss:$36 sps:$4 sm:$0xff]   ;;  %p7148_p6 = por %p7147_p3, %p7146_p1 }
  0x90   : > { %v6561_v19 = vld [vmem:[#allocation8 + $0x17c] ss:$36 sps:$4 sm:$0xff]  }
  0x91   : > { %1774 = vmatmul.mubr.bf16.vlgmr.msra.gmra.mxu1 %v7418_v37  ;;  %1685 = vmatpush2.bf16.msra.mxu0 %v6462_v39  ;;  %v301_v39 = vld [vmem:[%s7401_s15 + $0x68] sm:$0xff]  ;;  %v6600_v20 = vld [vmem:[#allocation8 + $0x5fc] ss:$36 sps:$4 sm:$0xff]   ;;  %p7149_p9 = pnand %p7148_p6, %p7142_p10 }
  0x92   : > { %1815 = vmatpush1.bf16.msra.mxu1 %v6459_v38  ;;  %1686 = vmatprep.subr.bf16.mxu0 %v6463_v40  ;;  %v7457_v38 = vpack.c.bf16 %v297_v32, %v294_v31  ;;  %v304_v40 = vld [vmem:[%s7401_s15 + $0x80] sm:$0xff]  ;;  %v6559_v22 = vld [vmem:[#allocation8 + $0x178] ss:$36 sps:$4 sm:$0xff]   ;;  %v6612_v31 = vld [vmem:[#allocation8 + $0x56c] ss:$36 sps:$4 sm:$0xff]  }
  0x93   : > { %1816 = vmatprep.subr.bf16.mxu1 %v6467_v41  ;;  %1783 = vmatprep.mubr.bf16.mxu1 %v8688_v0  ;;  %v6525_v41 = vld [vmem:[#allocation8 + $0x36c] ss:$36 sps:$4 sm:$0xff]   ;;  %v6598_v23 = vld [vmem:[#allocation8 + $0x5f8] ss:$36 sps:$4 sm:$0xff]  }
  0x94   : > { %v6565_v32 = vld [vmem:[#allocation8 + $0xe8] ss:$36 sps:$4 sm:$0xff]  }
  0x95   : > { %1687 = vmatpush2.bf16.msra.mxu0 %v6468_v43  ;;  %v6523_v43 = vld [vmem:[#allocation8 + $0x368] ss:$36 sps:$4 sm:$0xff]  }
  0x96   : > { %1817 = vmatpush1.bf16.msra.mxu1 %v6465_v42  ;;  %1688 = vmatprep.subr.bf16.mxu0 %v6469_v44  ;;  %v6528_v42 = vld [vmem:[#allocation8 + $0x5ac] ss:$36 sps:$4 sm:$0xff]  }
  0x97   : > { %1818 = vmatprep.subr.bf16.mxu1 %v6473_v45  ;;  %v6526_v44 = vld [vmem:[#allocation8 + $0x5a8] ss:$36 sps:$4 sm:$0xff]   ;;  %v7461_v45 = vpack.c.bf16 %v304_v40, %v301_v39  ;;  %v6616_v39 = vld [vmem:[#allocation8 + $0x520] ss:$36 sps:$4 sm:$0xff]  }
  0x98   : > { %v6573_v40 = vld [vmem:[#allocation8 + $0x5c] ss:$36 sps:$4 sm:$0xff]  }
  0x99   : > { %1689 = vmatpush2.bf16.msra.mxu0 %v6474_v47  ;;  %1784 = vmatmul.mubr.bf16.gmra.mxu1 %v7429_v62  ;;  %v303_v47 = vld [vmem:[%s7401_s15 + $0x78] sm:$0xff] }
  0x9a   : > { %1819 = vmatpush1.bf16.msra.mxu1 %v6471_v46  ;;  %1690 = vmatprep.subr.bf16.mxu0 %v6475_v48  ;;  %v300_v46 = vld [vmem:[%s7401_s15 + $0x60] sm:$0xff] }
  0x9b   : > { %1820 = vmatprep.subr.bf16.mxu1 %v6479_v49  ;;  %1793 = vmatprep.mubr.bf16.mxu1 %v8688_v0  ;;  %v6531_v48 = vld [vmem:[#allocation8 + $0x324] ss:$36 sps:$4 sm:$0xff]  }
  0x9c   : > { %v6534_v49 = vld [vmem:[#allocation8 + $0x564] ss:$36 sps:$4 sm:$0xff]  }
  0x9d   : > { %1691 = vmatpush2.bf16.msra.mxu0 %v6480_v53  ;;  %v307_v53 = vld [vmem:[%s7401_s15 + $0x98] sm:$0xff] }
  0x9e   : > { %1821 = vmatpush1.bf16.msra.mxu1 %v6477_v52  ;;  %1692 = vmatprep.subr.bf16.mxu0 %v6481_v55  ;;  %v7467_v52 = vpack.c.bf16 %v303_v47, %v300_v46  ;;  %v310_v55 = vld [vmem:[%s7401_s15 + $0xb0] sm:$0xff] }
  0x9f   : > { %1822 = vmatprep.subr.bf16.mxu1 %v6485_v56  ;;  %v6537_v56 = vld [vmem:[#allocation8 + $0x2dc] ss:$36 sps:$4 sm:$0xff]   ;;  %v7471_v60 = vpack.c.bf16 %v310_v55, %v307_v53  ;;  %v6630_v46 = vld [vmem:[#allocation8 + $0x494] ss:$36 sps:$4 sm:$0xff]   ;;  %v6582_v53 = vld [vmem:[#allocation8 + $0x404] ss:$36 sps:$4 sm:$0xff]  }
  0xa0   : > { %v6574_v47 = vld [vmem:[#allocation8 + $0x10] ss:$36 sps:$4 sm:$0xff]  }
  0xa1   : > { %1693 = vmatpush2.bf16.msra.mxu0 %v6486_v58  ;;  %1794 = vmatmul.mubr.bf16.gmra.mxu1 %v7435_v9  ;;  %v6535_v58 = vld [vmem:[#allocation8 + $0x2d8] ss:$36 sps:$4 sm:$0xff]   ;;  %v6634_v55 = vld [vmem:[#allocation8 + $0x210] ss:$36 sps:$4 sm:$0xff]  }
  0xa2   : > { %1823 = vmatpush1.bf16.msra.mxu1 %v6483_v57  ;;  %1694 = vmatprep.subr.bf16.mxu0 %v6487_v61  ;;  %v6540_v57 = vld [vmem:[#allocation8 + $0x51c] ss:$36 sps:$4 sm:$0xff]   ;;  %v306_v61 = vld [vmem:[%s7401_s15 + $0x90] sm:$0xff] }
  0xa3   : > { %1824 = vmatprep.subr.bf16.mxu1 %v6491_v63  ;;  %1803 = vmatprep.mubr.bf16.mxu1 %v8688_v0  ;;  %v309_v63 = vld [vmem:[%s7401_s15 + $0xa8] sm:$0xff] }
  0xa5   : > { %1695 = vmatpush2.bf16.msra.mxu0 %v6492_v2  ;;  %v6546_v2 = vld [vmem:[#allocation8 + $0x4d4] ss:$36 sps:$4 sm:$0xff]  }
  0xa6   : > { %1825 = vmatpush1.bf16.msra.mxu1 %v6489_v1  ;;  %1696 = vmatprep.subr.bf16.mxu0 %v6493_v3  ;;  %v6543_v1 = vld [vmem:[#allocation8 + $0x294] ss:$36 sps:$4 sm:$0xff]   ;;  %v7477_v3 = vpack.c.bf16 %v309_v63, %v306_v61  ;;  %v6648_v61 = vld [vmem:[#allocation8 + $0x184] ss:$36 sps:$4 sm:$0xff]  }
  0xa7   : > { %1826 = vmatprep.subr.bf16.mxu1 %v6497_v4  ;;  %v6541_v4 = vld [vmem:[#allocation8 + $0x290] ss:$36 sps:$4 sm:$0xff]   ;;  %v6583_v63 = vld [vmem:[#allocation8 + $0x3b8] ss:$36 sps:$4 sm:$0xff]  }
  0xa9   : > { %1697 = vmatpush2.bf16.msra.mxu0 %v6498_v8  ;;  %1804 = vmatmul.mubr.bf16.gmra.mxu1 %v7447_v24  ;;  %v6547_v8 = vld [vmem:[#allocation8 + $0x248] ss:$36 sps:$4 sm:$0xff]  }
  0xaa   : > { %1827 = vmatpush1.bf16.msra.mxu1 %v6495_v7  ;;  %1698 = vmatprep.subr.bf16.mxu0 %v6499_v10  ;;  %v6552_v7 = vld [vmem:[#allocation8 + $0x48c] ss:$36 sps:$4 sm:$0xff]  }
  0xab   : > { %1828 = vmatprep.subr.bf16.mxu1 %v6503_v11  ;;  %1846 = vmatprep.mubr.bf16.mxu1 %v7424_v54  ;;  %v6550_v10 = vld [vmem:[#allocation8 + $0x488] ss:$36 sps:$4 sm:$0xff]  }
  0xac   : > { %v6555_v11 = vld [vmem:[#allocation8 + $0x20c] ss:$36 sps:$4 sm:$0xff]  }
  0xad   : > { %1699 = vmatpush2.bf16.msra.mxu0 %v6504_v13  ;;  %v6553_v13 = vld [vmem:[#allocation8 + $0x208] ss:$36 sps:$4 sm:$0xff]  }
  0xae   : > { %1829 = vmatpush1.bf16.msra.mxu1 %v6501_v12  ;;  %1887 = vmatprep.subr.bf16.mxu0 %v6510_v17  ;;  %v6588_v12 = vld [vmem:[#allocation8 + $0x68c] ss:$36 sps:$4 sm:$0xff]   ;;  %v6556_v17 = vld [vmem:[#allocation8 + $0x1c0] ss:$36 sps:$4 sm:$0xff]  }
  0xaf   : > { %1830 = vmatprep.subr.bf16.mxu1 %v6507_v16  ;;  %v6594_v16 = vld [vmem:[#allocation8 + $0x644] ss:$36 sps:$4 sm:$0xff]  }
  0xb0   : > { %1701 = vmatmul.mubr.bf16.vlgmr.msra.gmra.mxu0 %v7443_v21 }
  0xb1   : > { %1888 = vmatpush1.bf16.msra.mxu0 %v6508_v25  ;;  %1710 = vmatprep.mubr.bf16.mxu0 %v7449_v30  ;;  %v6564_v25 = vld [vmem:[#allocation8 + $0x134] ss:$36 sps:$4 sm:$0xff]  }
  0xb2   : > { %1831 = vmatpush2.bf16.msra.mxu1 %v6505_v18  ;;  %1889 = vmatprep.subr.bf16.mxu0 %v6516_v27  ;;  %v6592_v18 = vld [vmem:[#allocation8 + $0x640] ss:$36 sps:$4 sm:$0xff]   ;;  %v6562_v27 = vld [vmem:[#allocation8 + $0x130] ss:$36 sps:$4 sm:$0xff]  }
  0xb3   : > { %1832 = vmatprep.subr.bf16.mxu1 %v6513_v26  ;;  %v6606_v26 = vld [vmem:[#allocation8 + $0x5b4] ss:$36 sps:$4 sm:$0xff]  }
  0xb5   : > { %1890 = vmatpush1.bf16.msra.mxu0 %v6514_v29  ;;  %v6567_v29 = vld [vmem:[#allocation8 + $0xec] ss:$36 sps:$4 sm:$0xff]  }
  0xb6   : > { %1833 = vmatpush2.bf16.msra.mxu1 %v6511_v28  ;;  %1891 = vmatprep.subr.bf16.mxu0 %v6522_v34  ;;  %v6604_v28 = vld [vmem:[#allocation8 + $0x5b0] ss:$36 sps:$4 sm:$0xff]   ;;  %v6570_v34 = vld [vmem:[#allocation8 + $0xa4] ss:$36 sps:$4 sm:$0xff]  }
  0xb7   : > { %1834 = vmatprep.subr.bf16.mxu1 %v6519_v33  ;;  %v6610_v33 = vld [vmem:[#allocation8 + $0x568] ss:$36 sps:$4 sm:$0xff]  }
  0xb8   : > { %1711 = vmatmul.mubr.bf16.gmra.mxu0 %v7457_v38 }
  0xb9   : > { %1892 = vmatpush1.bf16.msra.mxu0 %v6520_v36  ;;  %1720 = vmatprep.mubr.bf16.mxu0 %v7461_v45  ;;  %v6568_v36 = vld [vmem:[#allocation8 + $0xa0] ss:$36 sps:$4 sm:$0xff]  }
  0xba   : > { %1835 = vmatpush2.bf16.msra.mxu1 %v6517_v35  ;;  %1893 = vmatprep.subr.bf16.mxu0 %v6528_v42  ;;  %v6618_v35 = vld [vmem:[#allocation8 + $0x524] ss:$36 sps:$4 sm:$0xff]   ;;  %v6571_v42 = vld [vmem:[#allocation8 + $0x58] ss:$36 sps:$4 sm:$0xff]  }
  0xbb   : > { %1836 = vmatprep.subr.bf16.mxu1 %v6525_v41  ;;  %v6624_v41 = vld [vmem:[#allocation8 + $0x4dc] ss:$36 sps:$4 sm:$0xff]  }
  0xbd   : > { %1894 = vmatpush1.bf16.msra.mxu0 %v6526_v44  ;;  %v6576_v44 = vld [vmem:[#allocation8 + $0x14] ss:$36 sps:$4 sm:$0xff]  }
  0xbe   : > { %1837 = vmatpush2.bf16.msra.mxu1 %v6523_v43  ;;  %1895 = vmatprep.subr.bf16.mxu0 %v6534_v49  ;;  %v6622_v43 = vld [vmem:[#allocation8 + $0x4d8] ss:$36 sps:$4 sm:$0xff]   ;;  %v6628_v49 = vld [vmem:[#allocation8 + $0x490] ss:$36 sps:$4 sm:$0xff]  }
  0xbf   : > { %1838 = vmatprep.subr.bf16.mxu1 %v6531_v48  ;;  %v6579_v48 = vld [vmem:[#allocation8 + $0x44c] ss:$36 sps:$4 sm:$0xff]  }
  0xc0   : > { %1721 = vmatmul.mubr.bf16.gmra.mxu0 %v7467_v52 }
  0xc1   : > { %1896 = vmatpush1.bf16.msra.mxu0 %v6532_v51  ;;  %1730 = vmatprep.mubr.bf16.mxu0 %v7471_v60  ;;  %v6577_v51 = vld [vmem:[#allocation8 + $0x448] ss:$36 sps:$4 sm:$0xff]  }
  0xc2   : > { %1839 = vmatpush2.bf16.msra.mxu1 %v6529_v50  ;;  %1897 = vmatprep.subr.bf16.mxu0 %v6540_v57  ;;  %v6636_v50 = vld [vmem:[#allocation8 + $0x214] ss:$36 sps:$4 sm:$0xff]   ;;  %v6580_v57 = vld [vmem:[#allocation8 + $0x400] ss:$36 sps:$4 sm:$0xff]  }
  0xc3   : > { %1840 = vmatprep.subr.bf16.mxu1 %v6537_v56  ;;  %v6642_v56 = vld [vmem:[#allocation8 + $0x1cc] ss:$36 sps:$4 sm:$0xff]  }
  0xc5   : > { %1898 = vmatpush1.bf16.msra.mxu0 %v6538_v59  ;;  %v6640_v59 = vld [vmem:[#allocation8 + $0x1c8] ss:$36 sps:$4 sm:$0xff]  }
  0xc6   : > { %1841 = vmatpush2.bf16.msra.mxu1 %v6535_v58  ;;  %1899 = vmatprep.subr.bf16.mxu0 %v6546_v2  ;;  %v6585_v58 = vld [vmem:[#allocation8 + $0x3bc] ss:$36 sps:$4 sm:$0xff]  }
  0xc7   : > { %1842 = vmatprep.subr.bf16.mxu1 %v6543_v1  ;;  %v6591_v1 = vld [vmem:[#allocation8 + $0x374] ss:$36 sps:$4 sm:$0xff]   ;;  %v6646_v2 = vld [vmem:[#allocation8 + $0x180] ss:$36 sps:$4 sm:$0xff]  }
  0xc8   : > { %1731 = vmatmul.mubr.bf16.gmra.mxu0 %v7477_v3 }
  0xc9   : > { %1900 = vmatpush1.bf16.msra.mxu0 %v6544_v5  ;;  %1919 = vmatprep.mubr.bf16.mxu0 %v8688_v0  ;;  %v6589_v5 = vld [vmem:[#allocation8 + $0x370] ss:$36 sps:$4 sm:$0xff]  }
  0xca   : > { %1843 = vmatpush2.bf16.msra.mxu1 %v6541_v4  ;;  %1901 = vmatprep.subr.bf16.mxu0 %v6552_v7  ;;  %v6654_v4 = vld [vmem:[#allocation8 + $0x13c] ss:$36 sps:$4 sm:$0xff]   ;;  %v6597_v7 = vld [vmem:[#allocation8 + $0x32c] ss:$36 sps:$4 sm:$0xff]  }
  0xcb   : > { %1844 = vmatprep.subr.bf16.mxu1 %v6549_v6  ;;  %v6652_v6 = vld [vmem:[#allocation8 + $0x138] ss:$36 sps:$4 sm:$0xff]  }
  0xcd   : > { %1902 = vmatpush1.bf16.msra.mxu0 %v6550_v10  ;;  %v6595_v10 = vld [vmem:[#allocation8 + $0x328] ss:$36 sps:$4 sm:$0xff]  }
  0xce   : > { %1845 = vmatpush2.bf16.msra.mxu1 %v6547_v8  ;;  %1960 = vmatprep.subr.bf16.mxu0 %v6555_v11  ;;  %v6660_v8 = vld [vmem:[#allocation8 + $0xf4] ss:$36 sps:$4 sm:$0xff]   ;;  %v6603_v11 = vld [vmem:[#allocation8 + $0x2e4] ss:$36 sps:$4 sm:$0xff]  }
  0xcf   : > { %2033 = vmatprep.subr.bf16.mxu1 %v6588_v12  ;;  %v6658_v12 = vld [vmem:[#allocation8 + $0xf0] ss:$36 sps:$4 sm:$0xff]  }
  0xd0   : > { %1920 = vmatmul.mubr.bf16.vlgmr.msra.gmra.mxu0 %v7418_v37 }
  0xd1   : > { %1847 = vmatmul.mubr.bf16.vlgmr.msra.gmra.mxu1 %v7443_v21  ;;  %1929 = vmatprep.mubr.bf16.mxu0 %v8688_v0 }
  0xd2   : > { %1856 = vmatprep.mubr.bf16.mxu1 %v7449_v30  ;;  %1961 = vmatpush1.bf16.msra.mxu0 %v6553_v13  ;;  %v6666_v13 = vld [vmem:[#allocation8 + $0xac] ss:$36 sps:$4 sm:$0xff]  }
  0xd3   : > { %2034 = vmatpush1.bf16.msra.mxu1 %v6586_v14  ;;  %1962 = vmatprep.subr.bf16.mxu0 %v6558_v15  ;;  %v6601_v14 = vld [vmem:[#allocation8 + $0x2e0] ss:$36 sps:$4 sm:$0xff]   ;;  %v6664_v15 = vld [vmem:[#allocation8 + $0xa8] ss:$36 sps:$4 sm:$0xff]  }
  0xd4   : > { %2035 = vmatprep.subr.bf16.mxu1 %v6594_v16  ;;  %v6609_v16 = vld [vmem:[#allocation8 + $0x29c] ss:$36 sps:$4 sm:$0xff]  }
  0xd6   : > { %1963 = vmatpush1.bf16.msra.mxu0 %v6556_v17  ;;  %v6671_v17 = vld [vmem:[#allocation8 + $0x64] ss:$36 sps:$4 sm:$0xff]  }
  0xd7   : > { %2036 = vmatpush1.bf16.msra.mxu1 %v6592_v18  ;;  %1964 = vmatprep.subr.bf16.mxu0 %v6561_v19  ;;  %v6607_v18 = vld [vmem:[#allocation8 + $0x298] ss:$36 sps:$4 sm:$0xff]   ;;  %v6669_v19 = vld [vmem:[#allocation8 + $0x60] ss:$36 sps:$4 sm:$0xff]  }
  0xd8   : > { %2037 = vmatprep.subr.bf16.mxu1 %v6600_v20  ;;  %1930 = vmatmul.mubr.bf16.gmra.mxu0 %v7429_v62  ;;  %v6615_v20 = vld [vmem:[#allocation8 + $0x254] ss:$36 sps:$4 sm:$0xff]  }
  0xd9   : > { %1857 = vmatmul.mubr.bf16.gmra.mxu1 %v7457_v38  ;;  %1939 = vmatprep.mubr.bf16.mxu0 %v8688_v0 }
  0xda   : > { %1866 = vmatprep.mubr.bf16.mxu1 %v7461_v45  ;;  %1965 = vmatpush1.bf16.msra.mxu0 %v6559_v22  ;;  %v6676_v22 = vld [vmem:[#allocation8 + $0x1c] ss:$36 sps:$4 sm:$0xff]  }
  0xdb   : > { %2038 = vmatpush1.bf16.msra.mxu1 %v6598_v23  ;;  %1966 = vmatprep.subr.bf16.mxu0 %v6564_v25  ;;  %v6613_v23 = vld [vmem:[#allocation8 + $0x250] ss:$36 sps:$4 sm:$0xff]   ;;  %v6674_v25 = vld [vmem:[#allocation8 + $0x18] ss:$36 sps:$4 sm:$0xff]  }
  0xdc   : > { %2039 = vmatprep.subr.bf16.mxu1 %v6606_v26  ;;  %v6621_v26 = vld [vmem:[#allocation8 + $0x694] ss:$36 sps:$4 sm:$0xff]  }
  0xde   : > { %1967 = vmatpush1.bf16.msra.mxu0 %v6562_v27  ;;  %v6681_v27 = vld [vmem:[#allocation8 + $0x454] ss:$36 sps:$4 sm:$0xff]  }
  0xdf   : > { %2040 = vmatpush1.bf16.msra.mxu1 %v6604_v28  ;;  %1968 = vmatprep.subr.bf16.mxu0 %v6567_v29  ;;  %v6619_v28 = vld [vmem:[#allocation8 + $0x690] ss:$36 sps:$4 sm:$0xff]  }
  0xe0   : > { %2041 = vmatprep.subr.bf16.mxu1 %v6612_v31  ;;  %1940 = vmatmul.mubr.bf16.gmra.mxu0 %v7435_v9  ;;  %v6627_v29 = vld [vmem:[#allocation8 + $0x64c] ss:$36 sps:$4 sm:$0xff]  }
  0xe1   : > { %1867 = vmatmul.mubr.bf16.gmra.mxu1 %v7467_v52  ;;  %1949 = vmatprep.mubr.bf16.mxu0 %v8688_v0  ;;  %v6679_v31 = vld [vmem:[#allocation8 + $0x450] ss:$36 sps:$4 sm:$0xff]  }
  0xe2   : > { %1876 = vmatprep.mubr.bf16.mxu1 %v7471_v60  ;;  %1969 = vmatpush1.bf16.msra.mxu0 %v6565_v32  ;;  %v6686_v32 = vld [vmem:[#allocation8 + $0x40c] ss:$36 sps:$4 sm:$0xff]  }
  0xe3   : > { %2042 = vmatpush1.bf16.msra.mxu1 %v6610_v33  ;;  %1970 = vmatprep.subr.bf16.mxu0 %v6570_v34  ;;  %v6625_v33 = vld [vmem:[#allocation8 + $0x648] ss:$36 sps:$4 sm:$0xff]  }
  0xe4   : > { %2043 = vmatprep.subr.bf16.mxu1 %v6618_v35  ;;  %v6633_v34 = vld [vmem:[#allocation8 + $0x604] ss:$36 sps:$4 sm:$0xff]  }
  0xe5   : > { %v6684_v35 = vld [vmem:[#allocation8 + $0x408] ss:$36 sps:$4 sm:$0xff]  }
  0xe6   : > { %1971 = vmatpush1.bf16.msra.mxu0 %v6568_v36  ;;  %v6691_v36 = vld [vmem:[#allocation8 + $0x3c4] ss:$36 sps:$4 sm:$0xff]  }
  0xe7   : > { %2044 = vmatpush1.bf16.msra.mxu1 %v6616_v39  ;;  %1972 = vmatprep.subr.bf16.mxu0 %v6573_v40  ;;  %v6631_v39 = vld [vmem:[#allocation8 + $0x600] ss:$36 sps:$4 sm:$0xff]  }
  0xe8   : > { %2045 = vmatprep.subr.bf16.mxu1 %v6624_v41  ;;  %1950 = vmatmul.mubr.bf16.gmra.mxu0 %v7447_v24  ;;  %v6639_v40 = vld [vmem:[#allocation8 + $0x5bc] ss:$36 sps:$4 sm:$0xff]  }
  0xe9   : > { %1877 = vmatmul.mubr.bf16.gmra.mxu1 %v7477_v3  ;;  %1992 = vmatprep.mubr.bf16.mxu0 %v7424_v54  ;;  %v6689_v41 = vld [vmem:[#allocation8 + $0x3c0] ss:$36 sps:$4 sm:$0xff]  }
  0xea   : > { %2065 = vmatprep.mubr.bf16.mxu1 %v8688_v0  ;;  %1973 = vmatpush1.bf16.msra.mxu0 %v6571_v42  ;;  %v6696_v42 = vld [vmem:[#allocation8 + $0x37c] ss:$36 sps:$4 sm:$0xff]  }
  0xeb   : > { %2046 = vmatpush1.bf16.msra.mxu1 %v6622_v43  ;;  %1974 = vmatprep.subr.bf16.mxu0 %v6576_v44  ;;  %v6637_v43 = vld [vmem:[#allocation8 + $0x5b8] ss:$36 sps:$4 sm:$0xff]  }
  0xec   : > { %2047 = vmatprep.subr.bf16.mxu1 %v6630_v46  ;;  %v6645_v44 = vld [vmem:[#allocation8 + $0x574] ss:$36 sps:$4 sm:$0xff]  }
  0xed   : > { %v6694_v46 = vld [vmem:[#allocation8 + $0x378] ss:$36 sps:$4 sm:$0xff]  }
  0xee   : > { %1975 = vmatpush1.bf16.msra.mxu0 %v6574_v47  ;;  %v6701_v47 = vld [vmem:[#allocation8 + $0x334] ss:$36 sps:$4 sm:$0xff]  }
  0xef   : > { %2048 = vmatpush1.bf16.msra.mxu1 %v6628_v49  ;;  %1976 = vmatprep.subr.bf16.mxu0 %v6579_v48  ;;  %v6643_v48 = vld [vmem:[#allocation8 + $0x570] ss:$36 sps:$4 sm:$0xff]  }
  0xf0   : > { %2106 = vmatprep.subr.bf16.mxu1 %v6636_v50  ;;  %v6651_v49 = vld [vmem:[#allocation8 + $0x52c] ss:$36 sps:$4 sm:$0xff]  }
  0xf1   : > { %v6699_v50 = vld [vmem:[#allocation8 + $0x330] ss:$36 sps:$4 sm:$0xff]  }
  0xf2   : > { %2066 = vmatmul.mubr.bf16.vlgmr.msra.gmra.mxu1 %v7418_v37  ;;  %1977 = vmatpush2.bf16.msra.mxu0 %v6577_v51  ;;  %v6706_v51 = vld [vmem:[#allocation8 + $0x2ec] ss:$36 sps:$4 sm:$0xff]  }
  0xf3   : > { %2107 = vmatpush1.bf16.msra.mxu1 %v6634_v55  ;;  %1978 = vmatprep.subr.bf16.mxu0 %v6582_v53  ;;  %v6649_v53 = vld [vmem:[#allocation8 + $0x528] ss:$36 sps:$4 sm:$0xff]  }
  0xf4   : > { %2108 = vmatprep.subr.bf16.mxu1 %v6642_v56  ;;  %2075 = vmatprep.mubr.bf16.mxu1 %v8688_v0  ;;  %v6657_v55 = vld [vmem:[#allocation8 + $0x4e4] ss:$36 sps:$4 sm:$0xff]  }
  0xf5   : > { %v6704_v56 = vld [vmem:[#allocation8 + $0x2e8] ss:$36 sps:$4 sm:$0xff]  }
  0xf6   : > { %1979 = vmatpush2.bf16.msra.mxu0 %v6580_v57  ;;  %v6709_v57 = vld [vmem:[#allocation8 + $0x2a4] ss:$36 sps:$4 sm:$0xff]  }
  0xf7   : > { %2109 = vmatpush1.bf16.msra.mxu1 %v6640_v59  ;;  %1980 = vmatprep.subr.bf16.mxu0 %v6585_v58  ;;  %v6655_v58 = vld [vmem:[#allocation8 + $0x4e0] ss:$36 sps:$4 sm:$0xff]  }
  0xf8   : > { %2110 = vmatprep.subr.bf16.mxu1 %v6648_v61  ;;  %v6663_v59 = vld [vmem:[#allocation8 + $0x49c] ss:$36 sps:$4 sm:$0xff]  }
  0xf9   : > { %v6707_v61 = vld [vmem:[#allocation8 + $0x2a0] ss:$36 sps:$4 sm:$0xff]  }
  0xfa   : > { %2076 = vmatmul.mubr.bf16.gmra.mxu1 %v7429_v62  ;;  %1981 = vmatpush2.bf16.msra.mxu0 %v6583_v63  ;;  %v6712_v63 = vld [vmem:[#allocation8 + $0x25c] ss:$36 sps:$4 sm:$0xff]  }
  0xfb   : > { %2111 = vmatpush1.bf16.msra.mxu1 %v6646_v2  ;;  %1982 = vmatprep.subr.bf16.mxu0 %v6591_v1  ;;  %v6661_v1 = vld [vmem:[#allocation8 + $0x498] ss:$36 sps:$4 sm:$0xff]  }
  0xfc   : > { %2112 = vmatprep.subr.bf16.mxu1 %v6654_v4  ;;  %2085 = vmatprep.mubr.bf16.mxu1 %v8688_v0  ;;  %v6667_v2 = vld [vmem:[#allocation8 + $0x458] ss:$36 sps:$4 sm:$0xff]  }
  0xfd   : > { %v6710_v4 = vld [vmem:[#allocation8 + $0x258] ss:$36 sps:$4 sm:$0xff]  }
  0xfe   : > { %1983 = vmatpush2.bf16.msra.mxu0 %v6589_v5  ;;  %v6713_v5 = vld [vmem:[#allocation8 + $0x698] ss:$36 sps:$4 sm:$0xff]  }
  0xff   : > { %2113 = vmatpush1.bf16.msra.mxu1 %v6652_v6  ;;  %1984 = vmatprep.subr.bf16.mxu0 %v6597_v7  ;;  %v6668_v6 = vld [vmem:[#allocation8 + $0x218] ss:$36 sps:$4 sm:$0xff]   ;;  %v6672_v7 = vld [vmem:[#allocation8 + $0x410] ss:$36 sps:$4 sm:$0xff]  }
 0x100   : > { %2114 = vmatprep.subr.bf16.mxu1 %v6660_v8  ;;  %v6714_v8 = vld [vmem:[#allocation8 + $0x650] ss:$36 sps:$4 sm:$0xff]  }
 0x102   : > { %2086 = vmatmul.mubr.bf16.gmra.mxu1 %v7435_v9  ;;  %1985 = vmatpush2.bf16.msra.mxu0 %v6595_v10  ;;  %v6673_v10 = vld [vmem:[#allocation8 + $0x1d0] ss:$36 sps:$4 sm:$0xff]  }
 0x103   : > { %2115 = vmatpush1.bf16.msra.mxu1 %v6658_v12  ;;  %1986 = vmatprep.subr.bf16.mxu0 %v6603_v11  ;;  %v6677_v11 = vld [vmem:[#allocation8 + $0x3c8] ss:$36 sps:$4 sm:$0xff]  }
 0x104   : > { %2116 = vmatprep.subr.bf16.mxu1 %v6666_v13  ;;  %2095 = vmatprep.mubr.bf16.mxu1 %v8688_v0  ;;  %v6715_v12 = vld [vmem:[#allocation8 + $0x608] ss:$36 sps:$4 sm:$0xff]  }
 0x105   : > { %v6678_v13 = vld [vmem:[#allocation8 + $0x188] ss:$36 sps:$4 sm:$0xff]  }
 0x106   : > { %1987 = vmatpush2.bf16.msra.mxu0 %v6601_v14  ;;  %v6682_v14 = vld [vmem:[#allocation8 + $0x380] ss:$36 sps:$4 sm:$0xff]  }
 0x107   : > { %2117 = vmatpush1.bf16.msra.mxu1 %v6664_v15  ;;  %1988 = vmatprep.subr.bf16.mxu0 %v6609_v16  ;;  %v6716_v15 = vld [vmem:[#allocation8 + $0x5c0] ss:$36 sps:$4 sm:$0xff]  }
 0x108   : > { %2118 = vmatprep.subr.bf16.mxu1 %v6671_v17  ;;  %v6683_v16 = vld [vmem:[#allocation8 + $0x140] ss:$36 sps:$4 sm:$0xff]   ;;  %v6687_v17 = vld [vmem:[#allocation8 + $0x338] ss:$36 sps:$4 sm:$0xff]  }
 0x10a   : > { %2096 = vmatmul.mubr.bf16.gmra.mxu1 %v7447_v24  ;;  %1989 = vmatpush2.bf16.msra.mxu0 %v6607_v18  ;;  %v6717_v18 = vld [vmem:[#allocation8 + $0x578] ss:$36 sps:$4 sm:$0xff]  }
 0x10b   : > { %2119 = vmatpush1.bf16.msra.mxu1 %v6669_v19  ;;  %1990 = vmatprep.subr.bf16.mxu0 %v6615_v20  ;;  %v6688_v19 = vld [vmem:[#allocation8 + $0xf8] ss:$36 sps:$4 sm:$0xff]   ;;  %v6692_v20 = vld [vmem:[#allocation8 + $0x2f0] ss:$36 sps:$4 sm:$0xff]  }
 0x10c   : > { %2120 = vmatprep.subr.bf16.mxu1 %v6676_v22  ;;  %2138 = vmatprep.mubr.bf16.mxu1 %v7424_v54  ;;  %v6718_v22 = vld [vmem:[#allocation8 + $0x530] ss:$36 sps:$4 sm:$0xff]  }
 0x10e   : > { %1991 = vmatpush2.bf16.msra.mxu0 %v6613_v23  ;;  %v6693_v23 = vld [vmem:[#allocation8 + $0xb0] ss:$36 sps:$4 sm:$0xff]  }
 0x10f   : > { %2121 = vmatpush1.bf16.msra.mxu1 %v6674_v25  ;;  %2179 = vmatprep.subr.bf16.mxu0 %v6621_v26  ;;  %v6697_v25 = vld [vmem:[#allocation8 + $0x2a8] ss:$36 sps:$4 sm:$0xff]  }
 0x110   : > { %2122 = vmatprep.subr.bf16.mxu1 %v6681_v27  ;;  %v6719_v26 = vld [vmem:[#allocation8 + $0x4e8] ss:$36 sps:$4 sm:$0xff]  }
 0x111   : > { %1993 = vmatmul.mubr.bf16.vlgmr.msra.gmra.mxu0 %v7443_v21  ;;  %v6698_v27 = vld [vmem:[#allocation8 + $0x68] ss:$36 sps:$4 sm:$0xff]  }
 0x112   : > { %2180 = vmatpush1.bf16.msra.mxu0 %v6619_v28  ;;  %2002 = vmatprep.mubr.bf16.mxu0 %v7449_v30  ;;  %v6702_v28 = vld [vmem:[#allocation8 + $0x260] ss:$36 sps:$4 sm:$0xff]  }
 0x113   : > { %2181 = vmatprep.subr.bf16.mxu0 %v6627_v29  ;;  %2123 = vmatpush2.bf16.msra.mxu1 %v6679_v31  ;;  %v6720_v29 = vld [vmem:[#allocation8 + $0x4a0] ss:$36 sps:$4 sm:$0xff]  }
 0x114   : > { %2124 = vmatprep.subr.bf16.mxu1 %v6686_v32  ;;  %v6703_v31 = vld [vmem:[#allocation8 + $0x20] ss:$36 sps:$4 sm:$0xff]  }
 0x116   : > { %2182 = vmatpush1.bf16.msra.mxu0 %v6625_v33 }
 0x117   : > { %2183 = vmatprep.subr.bf16.mxu0 %v6633_v34  ;;  %2125 = vmatpush2.bf16.msra.mxu1 %v6684_v35 }
 0x118   : > { %2126 = vmatprep.subr.bf16.mxu1 %v6691_v36 }
 0x119   : > { %2003 = vmatmul.mubr.bf16.gmra.mxu0 %v7457_v38 }
 0x11a   : > { %2184 = vmatpush1.bf16.msra.mxu0 %v6631_v39  ;;  %2012 = vmatprep.mubr.bf16.mxu0 %v7461_v45 }
 0x11b   : > { %2185 = vmatprep.subr.bf16.mxu0 %v6639_v40  ;;  %2127 = vmatpush2.bf16.msra.mxu1 %v6689_v41 }
 0x11c   : > { %2128 = vmatprep.subr.bf16.mxu1 %v6696_v42 }
 0x11e   : > { %2186 = vmatpush1.bf16.msra.mxu0 %v6637_v43 }
 0x11f   : > { %2187 = vmatprep.subr.bf16.mxu0 %v6645_v44  ;;  %2129 = vmatpush2.bf16.msra.mxu1 %v6694_v46 }
 0x120   : > { %2130 = vmatprep.subr.bf16.mxu1 %v6701_v47 }
 0x121   : > { %2013 = vmatmul.mubr.bf16.gmra.mxu0 %v7467_v52 }
 0x122   : > { %2188 = vmatpush1.bf16.msra.mxu0 %v6643_v48  ;;  %2022 = vmatprep.mubr.bf16.mxu0 %v7471_v60 }
 0x123   : > { %2189 = vmatprep.subr.bf16.mxu0 %v6651_v49  ;;  %2131 = vmatpush2.bf16.msra.mxu1 %v6699_v50 }
 0x124   : > { %2132 = vmatprep.subr.bf16.mxu1 %v6706_v51 }
 0x126   : > { %2190 = vmatpush1.bf16.msra.mxu0 %v6649_v53 }
 0x127   : > { %2191 = vmatprep.subr.bf16.mxu0 %v6657_v55  ;;  %2133 = vmatpush2.bf16.msra.mxu1 %v6704_v56 }
 0x128   : > { %2134 = vmatprep.subr.bf16.mxu1 %v6709_v57 }
 0x129   : > { %2023 = vmatmul.mubr.bf16.gmra.mxu0 %v7477_v3 }
 0x12a   : > { %2192 = vmatpush1.bf16.msra.mxu0 %v6655_v58  ;;  %2211 = vmatprep.mubr.bf16.mxu0 %v8688_v0 }
 0x12b   : > { %2193 = vmatprep.subr.bf16.mxu0 %v6663_v59  ;;  %2135 = vmatpush2.bf16.msra.mxu1 %v6707_v61 }
 0x12c   : > { %2136 = vmatprep.subr.bf16.mxu1 %v6712_v63 }
 0x12e   : > { %2194 = vmatpush1.bf16.msra.mxu0 %v6661_v1 }
 0x12f   : > { %5836 = vmatprep.subr.bf16.mxu0 %v6667_v2  ;;  %2137 = vmatpush2.bf16.msra.mxu1 %v6710_v4 }
 0x130   : > { %6036 = vmatprep.subr.bf16.mxu1 %v6713_v5 }
 0x131   : > { %2212 = vmatmul.mubr.bf16.vlgmr.msra.gmra.mxu0 %v7418_v37 }
 0x132   : > { %5837 = vmatpush3.bf16.msra.mxu0 %v6668_v6  ;;  %2221 = vmatprep.mubr.bf16.mxu0 %v8688_v0 }
 0x133   : > { %5838 = vmatprep.subr.bf16.mxu0 %v6672_v7  ;;  %2139 = vmatmul.mubr.bf16.vlgmr.msra.gmra.mxu1 %v7443_v21 }
 0x134   : > { %2148 = vmatprep.mubr.bf16.mxu1 %v7449_v30  ;;  %6037 = vmatpush3.bf16.msra.mxu1 %v6713_v5 }
 0x135   : > { %6038 = vmatprep.subr.bf16.mxu1 %v6714_v8 }
 0x136   : > { %5839 = vmatpush3.bf16.msra.mxu0 %v6673_v10 }
 0x137   : > { %5840 = vmatprep.subr.bf16.mxu0 %v6677_v11 }
 0x138   : > { %6039 = vmatpush3.bf16.msra.mxu1 %v6714_v8 }
 0x139   : > { %2222 = vmatmul.mubr.bf16.gmra.mxu0 %v7429_v62  ;;  %6040 = vmatprep.subr.bf16.mxu1 %v6715_v12 }
 0x13a   : > { %5841 = vmatpush3.bf16.msra.mxu0 %v6678_v13  ;;  %2231 = vmatprep.mubr.bf16.mxu0 %v8688_v0 }
 0x13b   : > { %5842 = vmatprep.subr.bf16.mxu0 %v6682_v14  ;;  %2149 = vmatmul.mubr.bf16.gmra.mxu1 %v7457_v38 }
 0x13c   : > { %2158 = vmatprep.mubr.bf16.mxu1 %v7461_v45  ;;  %6041 = vmatpush3.bf16.msra.mxu1 %v6715_v12 }
 0x13d   : > { %6042 = vmatprep.subr.bf16.mxu1 %v6716_v15 }
 0x13e   : > { %5843 = vmatpush3.bf16.msra.mxu0 %v6683_v16 }
 0x13f   : > { %5844 = vmatprep.subr.bf16.mxu0 %v6687_v17 }
 0x140   : > { %6043 = vmatpush3.bf16.msra.mxu1 %v6716_v15 }
 0x141   : > { %2232 = vmatmul.mubr.bf16.gmra.mxu0 %v7435_v9  ;;  %6044 = vmatprep.subr.bf16.mxu1 %v6717_v18 }
 0x142   : > { %5845 = vmatpush3.bf16.msra.mxu0 %v6688_v19  ;;  %2241 = vmatprep.mubr.bf16.mxu0 %v8688_v0 }
 0x143   : > { %5846 = vmatprep.subr.bf16.mxu0 %v6692_v20  ;;  %2159 = vmatmul.mubr.bf16.gmra.mxu1 %v7467_v52 }
 0x144   : > { %2168 = vmatprep.mubr.bf16.mxu1 %v7471_v60  ;;  %6045 = vmatpush3.bf16.msra.mxu1 %v6717_v18 }
 0x145   : > { %6046 = vmatprep.subr.bf16.mxu1 %v6718_v22 }
 0x146   : > { %5847 = vmatpush3.bf16.msra.mxu0 %v6693_v23 }
 0x147   : > { %5848 = vmatprep.subr.bf16.mxu0 %v6697_v25 }
 0x148   : > { %6047 = vmatpush3.bf16.msra.mxu1 %v6718_v22 }
 0x149   : > { %2242 = vmatmul.mubr.bf16.gmra.mxu0 %v7447_v24  ;;  %6048 = vmatprep.subr.bf16.mxu1 %v6719_v26 }
 0x14a   : > { %5849 = vmatpush3.bf16.msra.mxu0 %v6698_v27  ;;  %2284 = vmatprep.mubr.bf16.mxu0 %v7424_v54 }
 0x14b   : > { %5850 = vmatprep.subr.bf16.mxu0 %v6702_v28  ;;  %2169 = vmatmul.mubr.bf16.gmra.mxu1 %v7477_v3 }
 0x14c   : > { %6049 = vmatpush3.bf16.msra.mxu1 %v6719_v26  ;;  %6052 = vmatprep.mubr.bf16.mxu1 %v7418_v37 }
 0x14d   : > { %6050 = vmatprep.subr.bf16.mxu1 %v6720_v29 }
 0x14e   : > { %5851 = vmatpush3.bf16.msra.mxu0 %v6703_v31 }
 0x150   : > { %6051 = vmatpush3.bf16.msra.mxu1 %v6720_v29 }
 0x151   : > { %2285 = vmatmul.mubr.bf16.vlgmr.msra.gmra.mxu0 %v7443_v21  ;;  %v1775_v32 = vpop.f32.mrf.mxu1 }
 0x152   : > { %2292 = vmatprep.mubr.bf16.mxu0 %v7449_v30 }
 0x153   : > { %6053 = vmatmul.mubr.bf16.vlgmr.msra.gmra.mxu1 %v7429_v62  ;;  %v1777_v33 = vpop.f32.mrf.mxu1 }
 0x154   : > { %6056 = vmatprep.mubr.bf16.mxu1 %v7435_v9 }
 0x155   : > { %v1779_v37 = vpop.f32.mrf.mxu1 }
 0x157   : > { %v7536_v54 = vpop.f32.mrf.mxu1 }
 0x159   : > { %2293 = vmatmul.mubr.bf16.gmra.mxu0 %v7457_v38  ;;  %v1785_v21 = vpop.f32.mrf.mxu1 }
 0x15a   : > { %2300 = vmatprep.mubr.bf16.mxu0 %v7461_v45 }
 0x15b   : > { %6057 = vmatmul.mubr.bf16.gmra.mxu1 %v7447_v24  ;;  %v1787_v30 = vpop.f32.mrf.mxu1 }
 0x15d   : > { %v1789_v62 = vpop.f32.mrf.mxu1 }
 0x15f   : > { %v7541_v9 = vpop.f32.mrf.mxu1 }
 0x161   : > { %2301 = vmatmul.mubr.bf16.gmra.mxu0 %v7467_v52  ;;  %v1795_v35 = vpop.f32.mrf.mxu1 }
 0x162   : > { %2308 = vmatprep.mubr.bf16.mxu0 %v7471_v60 }
 0x163   : > { %v1797_v52 = vpop.f32.mrf.mxu1 }
 0x165   : > { %v1799_v43 = vpop.f32.mrf.mxu1 }
 0x167   : > { %v7555_v49 = vpop.f32.mrf.mxu1 }
 0x169   : > { %2309 = vmatmul.mubr.bf16.gmra.mxu0 %v7477_v3  ;;  %v1805_v56 = vpop.f32.mrf.mxu1 }
 0x16b   : > { %v1807_v61 = vpop.f32.mrf.mxu1 }
 0x16d   : > { %v1809_v5 = vpop.f32.mrf.mxu1 }
 0x16f   : > { %v7567_v11 = vpop.f32.mrf.mxu1 }
 0x170   : > { %v1702_v34 = vpop.f32.mrf.mxu0 }
 0x171   : > { %v1776_v36 = vadd.f32 %v1775_v32, %v1702_v34 }
 0x172   : > { %v1704_v38 = vpop.f32.mrf.mxu0 }
 0x173   : > { %v7543_v45 = vadd.f32 %v1777_v33, %v1704_v38 }
 0x174   : > { %v1706_v24 = vpop.f32.mrf.mxu0 }
 0x175   : > { %v1780_v39 = vadd.f32 %v1779_v37, %v1706_v24 }
 0x176   : > { %v7545_v40 = vpop.f32.mrf.mxu0 }
 0x177   : > { %v7547_v41 = vpack.c.bf16 %v1780_v39, %v1776_v36 }
 0x178   : > { %v1712_v60 = vpop.f32.mrf.mxu0 }
 0x179   : > { %v1786_v42 = vadd.f32 %v1785_v21, %v1712_v60  ;;  %6068 = vmatprep.mubr.msk.bf16.mxu0 %vm2402_vm0, %v7547_v41 }
 0x17a   : > { %v1714_v3 = vpop.f32.mrf.mxu0 }
 0x17b   : > { %v7551_v44 = vadd.f32 %v1787_v30, %v1714_v3 }
 0x17c   : > { %v1716_v46 = vpop.f32.mrf.mxu0 }
 0x17d   : > { %v1790_v47 = vadd.f32 %v1789_v62, %v1716_v46 }
 0x17e   : > { %v7553_v48 = vpop.f32.mrf.mxu0 }
 0x17f   : > { %v7557_v50 = vpack.c.bf16 %v1790_v47, %v1786_v42 }
 0x180   : > { %v1722_v51 = vpop.f32.mrf.mxu0 }
 0x181   : > { %v1796_v53 = vadd.f32 %v1795_v35, %v1722_v51 }
 0x182   : > { %v1724_v55 = vpop.f32.mrf.mxu0 }
 0x183   : > { %v7559_v57 = vadd.f32 %v1797_v52, %v1724_v55 }
 0x184   : > { %v1726_v58 = vpop.f32.mrf.mxu0 }
 0x185   : > { %v1800_v59 = vadd.f32 %v1799_v43, %v1726_v58 }
 0x186   : > { %v7561_v63 = vpop.f32.mrf.mxu0 }
 0x187   : > { %v7563_v1 = vpack.c.bf16 %v1800_v59, %v1796_v53 }
 0x188   : > { %v1732_v2 = vpop.f32.mrf.mxu0 }
 0x189   : > { %v1806_v4 = vadd.f32 %v1805_v56, %v1732_v2 }
 0x18a   : > { %v1734_v6 = vpop.f32.mrf.mxu0 }
 0x18b   : > { %v7565_v7 = vadd.f32 %v1807_v61, %v1734_v6 }
 0x18c   : > { %v1736_v8 = vpop.f32.mrf.mxu0 }
 0x18d   : > { %v1810_v10 = vadd.f32 %v1809_v5, %v1736_v8 }
 0x18e   : > { %v7569_v12 = vpop.f32.mrf.mxu0 }
 0x18f   : > { %v7571_v13 = vpack.c.bf16 %v1810_v10, %v1806_v4 }
 0x190   : > { %v1921_v15 = vpop.f32.mrf.mxu0 }
 0x191   : > { %v1848_v14 = vpop.f32.mrf.mxu1 }
 0x192   : > { %v1922_v16 = vadd.f32 %v1921_v15, %v1848_v14  ;;  %v1923_v18 = vpop.f32.mrf.mxu0 }
 0x193   : > { %v1850_v17 = vpop.f32.mrf.mxu1 }
 0x194   : > { %v1925_v20 = vpop.f32.mrf.mxu0 }
 0x195   : > { %v1852_v19 = vpop.f32.mrf.mxu1 }
 0x196   : > { %v1926_v22 = vadd.f32 %v1925_v20, %v1852_v19  ;;  %v1927_v25 = vpop.f32.mrf.mxu0 }
 0x197   : > { %v1854_v23 = vpop.f32.mrf.mxu1 }
 0x198   : > { %v7573_v26 = vpack.c.bf16 %v1926_v22, %v1922_v16  ;;  %v1931_v28 = vpop.f32.mrf.mxu0 }
 0x199   : > { %v1858_v27 = vpop.f32.mrf.mxu1 }
 0x19a   : > { %v1932_v29 = vadd.f32 %v1931_v28, %v1858_v27  ;;  %v1933_v32 = vpop.f32.mrf.mxu0 }
 0x19b   : > { %v1860_v31 = vpop.f32.mrf.mxu1 }
 0x19c   : > { %v1935_v37 = vpop.f32.mrf.mxu0  ;;  %v1934_v28 = vadd.f32 %v1933_v32, %v1860_v31 }
 0x19d   : > { %v1862_v33 = vpop.f32.mrf.mxu1 }
 0x19e   : > { %v1936_v21 = vadd.f32 %v1935_v37, %v1862_v33  ;;  %v1937_v62 = vpop.f32.mrf.mxu0 }
 0x19f   : > { %v1864_v30 = vpop.f32.mrf.mxu1 }
 0x1a0   : > { %v7575_v34 = vpack.c.bf16 %v1936_v21, %v1932_v29  ;;  %v1941_v35 = vpop.f32.mrf.mxu0  ;;  %v1938_v22 = vadd.f32 %v1937_v62, %v1864_v30  ;;  %v1928_v21 = vadd.f32 %v1927_v25, %v1854_v23 }
 0x1a1   : > { %v1868_v38 = vpop.f32.mrf.mxu1 }
 0x1a2   : > { %8713 = vst [vmem:[#allocation16_spill] sm:$0xff] %v7575_v34  ;;  %v1942_v24 = vadd.f32 %v1941_v35, %v1868_v38  ;;  %v1943_v39 = vpop.f32.mrf.mxu0  ;;  %v7591_v29 = vpack.c.bf16 %v1938_v22, %v1934_v28  ;;  %v1924_v35 = vadd.f32 %v1923_v18, %v1850_v17 }
 0x1a3   : > { %v1870_v36 = vpop.f32.mrf.mxu1 }
 0x1a4   : > { %v1945_v60 = vpop.f32.mrf.mxu0  ;;  %v1944_v14 = vadd.f32 %v1943_v39, %v1870_v36  ;;  %v2419_v30 = vsel %vm2402_vm0, %v7591_v29, 0 }
 0x1a5   : > { %v1872_v52 = vpop.f32.mrf.mxu1 }
 0x1a6   : > { %v1946_v42 = vadd.f32 %v1945_v60, %v1872_v52  ;;  %v1947_v43 = vpop.f32.mrf.mxu0 }
 0x1a7   : > { %v1874_v3 = vpop.f32.mrf.mxu1 }
 0x1a8   : > { %v7577_v46 = vpack.c.bf16 %v1946_v42, %v1942_v24  ;;  %v1951_v51 = vpop.f32.mrf.mxu0  ;;  %v1948_v5 = vadd.f32 %v1947_v43, %v1874_v3  ;;  %v7599_v24 = vpack.c.bf16 %v1928_v21, %v1924_v35 }
 0x1a9   : > { %v1878_v47 = vpop.f32.mrf.mxu1 }
 0x1aa   : > { %8714 = vst [vmem:[#allocation17_spill] sm:$0xff] %v7577_v46  ;;  %v1952_v53 = vadd.f32 %v1951_v51, %v1878_v47  ;;  %v1953_v56 = vpop.f32.mrf.mxu0  ;;  %v7583_v16 = vpack.c.bf16 %v1948_v5, %v1944_v14  ;;  %v2416_v62 = vsel %vm2402_vm0, %v7599_v24, 0 }
 0x1ab   : > { %v1880_v55 = vpop.f32.mrf.mxu1 }
 0x1ac   : > { %v1955_v59 = vpop.f32.mrf.mxu0  ;;  %v1954_v6 = vadd.f32 %v1953_v56, %v1880_v55  ;;  %v2422_v33 = vsel %vm2402_vm0, %v7583_v16, 0 }
 0x1ad   : > { %v1882_v58 = vpop.f32.mrf.mxu1 }
 0x1ae   : > { %v1956_v61 = vadd.f32 %v1955_v59, %v1882_v58  ;;  %v1957_v4 = vpop.f32.mrf.mxu0 }
 0x1af   : > { %v1884_v2 = vpop.f32.mrf.mxu1 }
 0x1b0   : > { %v7579_v8 = vpack.c.bf16 %v1956_v61, %v1952_v53  ;;  %v1958_v10 = vadd.f32 %v1957_v4, %v1884_v2 }
 0x1b2   : > { %8715 = vst [vmem:[#allocation18_spill] sm:$0xff] %v7579_v8  ;;  %v7581_v15 = vpack.c.bf16 %v1958_v10, %v1954_v6  ;;  %v2067_v20 = vpop.f32.mrf.mxu1 }
 0x1b4   : > { %6292 = vmatprep.subr.msk.bf16.mxu0 %vm2402_vm0, %v7581_v15  ;;  %v2425_v19 = vsel %vm2402_vm0, %v7581_v15, 0  ;;  %v2069_v27 = vpop.f32.mrf.mxu1 }
 0x1b5   : > { %6061 = vmatpush3.bf16.xpose.msra.mxu0 %v2425_v19 }
 0x1b6   : > { %6293 = vmatprep.subr.msk.bf16.mxu0 %vm2402_vm0, %v7583_v16  ;;  %v2071_v37 = vpop.f32.mrf.mxu1 }
 0x1b8   : > { %v7597_v38 = vpop.f32.mrf.mxu1 }
 0x1b9   : > { %8716 = vst [vmem:[#allocation19_spill] sm:$0xff] %v7597_v38 }
 0x1ba   : > { %v2077_v31 = vpop.f32.mrf.mxu1 }
 0x1bc   : > { %v2079_v32 = vpop.f32.mrf.mxu1 }
 0x1bd   : > { %6063 = vmatpush3.bf16.xpose.msra.mxu0 %v2422_v33 }
 0x1be   : > { %6294 = vmatprep.subr.msk.bf16.mxu0 %vm2402_vm0, %v7591_v29  ;;  %v2081_v36 = vpop.f32.mrf.mxu1 }
 0x1c0   : > { %v2083_v23 = vpop.f32.mrf.mxu1 }
 0x1c2   : > { %v2087_v18 = vpop.f32.mrf.mxu1 }
 0x1c4   : > { %v2089_v43 = vpop.f32.mrf.mxu1 }
 0x1c5   : > { %6065 = vmatpush3.bf16.xpose.msra.mxu0 %v2419_v30 }
 0x1c6   : > { %6295 = vmatprep.subr.msk.bf16.mxu0 %vm2402_vm0, %v7599_v24  ;;  %v2091_v56 = vpop.f32.mrf.mxu1 }
 0x1c8   : > { %v2093_v4 = vpop.f32.mrf.mxu1 }
 0x1ca   : > { %v2097_v22 = vpop.f32.mrf.mxu1 }
 0x1cc   : > { %v2099_v21 = vpop.f32.mrf.mxu1 }
 0x1cd   : > { %6067 = vmatpush3.bf16.xpose.msra.mxu0 %v2416_v62 }
 0x1d1   : > { %v1994_v25 = vpop.f32.mrf.mxu0 }
 0x1d2   : > { %v2068_v39 = vadd.f32 %v2067_v20, %v1994_v25 }
 0x1d3   : > { %v1996_v17 = vpop.f32.mrf.mxu0 }
 0x1d4   : > { %6069 = vmatmul.mubr.msk.bf16.vlgmr.msra.gmra.mxu0 %vm2402_vm0, %v7557_v50  ;;  %v7611_v52 = vadd.f32 %v2069_v27, %v1996_v17 }
 0x1d5   : > { %6072 = vmatprep.mubr.msk.bf16.mxu0 %vm2402_vm0, %v7563_v1  ;;  %v1998_v60 = vpop.f32.mrf.mxu0 }
 0x1d6   : > { %8717 = vst [vmem:[#allocation20_spill] sm:$0xff] %v7611_v52  ;;  %v2072_v42 = vadd.f32 %v2071_v37, %v1998_v60 }
 0x1d7   : > { %v7613_v3 = vpop.f32.mrf.mxu0 }
 0x1d8   : > { %8718 = vst [vmem:[#allocation21_spill] sm:$0xff] %v7613_v3  ;;  %v7615_v47 = vpack.c.bf16 %v2072_v42, %v2068_v39 }
 0x1d9   : > { %v2004_v51 = vpop.f32.mrf.mxu0 }
 0x1da   : > { %v2078_v53 = vadd.f32 %v2077_v31, %v2004_v51 }
 0x1db   : > { %v2006_v55 = vpop.f32.mrf.mxu0 }
 0x1dc   : > { %6073 = vmatmul.mubr.msk.bf16.gmra.mxu0 %vm2402_vm0, %v7571_v13  ;;  %v2080_v58 = vadd.f32 %v2079_v32, %v2006_v55 }
 0x1dd   : > { %v2008_v59 = vpop.f32.mrf.mxu0 }
 0x1de   : > { %v2082_v61 = vadd.f32 %v2081_v36, %v2008_v59 }
 0x1df   : > { %v2010_v2 = vpop.f32.mrf.mxu0 }
 0x1e0   : > { %v7619_v5 = vpack.c.bf16 %v2082_v61, %v2078_v53  ;;  %v2084_v6 = vadd.f32 %v2083_v23, %v2010_v2  ;;  %v2101_v23 = vpop.f32.mrf.mxu1 }
 0x1e1   : > { %v2014_v10 = vpop.f32.mrf.mxu0 }
 0x1e2   : > { %v7621_v14 = vpack.c.bf16 %v2084_v6, %v2080_v58  ;;  %v2088_v19 = vadd.f32 %v2087_v18, %v2014_v10  ;;  %v2103_v60 = vpop.f32.mrf.mxu1 }
 0x1e3   : > { %v2016_v20 = vpop.f32.mrf.mxu0 }
 0x1e4   : > { %v2090_v27 = vadd.f32 %v2089_v43, %v2016_v20 }
 0x1e5   : > { %v2018_v28 = vpop.f32.mrf.mxu0 }
 0x1e6   : > { %v2092_v33 = vadd.f32 %v2091_v56, %v2018_v28 }
 0x1e7   : > { %v2020_v37 = vpop.f32.mrf.mxu0 }
 0x1e8   : > { %v7623_v35 = vpack.c.bf16 %v2092_v33, %v2088_v19  ;;  %v2094_v30 = vadd.f32 %v2093_v4, %v2020_v37 }
 0x1e9   : > { %v2024_v31 = vpop.f32.mrf.mxu0 }
 0x1ea   : > { %v7625_v32 = vpack.c.bf16 %v2094_v30, %v2090_v27  ;;  %v2098_v62 = vadd.f32 %v2097_v22, %v2024_v31 }
 0x1eb   : > { %v2026_v36 = vpop.f32.mrf.mxu0 }
 0x1ec   : > { %v2100_v25 = vadd.f32 %v2099_v21, %v2026_v36 }
 0x1ed   : > { %v2028_v39 = vpop.f32.mrf.mxu0 }
 0x1ee   : > { %v2102_v17 = vadd.f32 %v2101_v23, %v2028_v39 }
 0x1ef   : > { %v2030_v18 = vpop.f32.mrf.mxu0 }
 0x1f0   : > { %v7627_v42 = vpack.c.bf16 %v2102_v17, %v2098_v62  ;;  %v2104_v43 = vadd.f32 %v2103_v60, %v2030_v18 }
 0x1f1   : > { %v2213_v51 = vpop.f32.mrf.mxu0 }
 0x1f2   : > { %v7629_v53 = vpack.c.bf16 %v2104_v43, %v2100_v25 }
 0x1f3   : > { %v2140_v55 = vpop.f32.mrf.mxu1  ;;  %v2215_v56 = vpop.f32.mrf.mxu0 }
 0x1f5   : > { %v2142_v58 = vpop.f32.mrf.mxu1  ;;  %v2217_v59 = vpop.f32.mrf.mxu0 }
 0x1f6   : > { %v2216_v61 = vadd.f32 %v2215_v56, %v2142_v58 }
 0x1f7   : > { %v2144_v2 = vpop.f32.mrf.mxu1  ;;  %v2219_v4 = vpop.f32.mrf.mxu0 }
 0x1f9   : > { %v2146_v6 = vpop.f32.mrf.mxu1  ;;  %v2223_v10 = vpop.f32.mrf.mxu0 }
 0x1fa   : > { %v2220_v19 = vadd.f32 %v2219_v4, %v2146_v6 }
 0x1fb   : > { %v2150_v20 = vpop.f32.mrf.mxu1  ;;  %v2225_v22 = vpop.f32.mrf.mxu0 }
 0x1fc   : > { %v7631_v27 = vpack.c.bf16 %v2220_v19, %v2216_v61  ;;  %v2224_v52 = vadd.f32 %v2223_v10, %v2150_v20  ;;  %v2214_v10 = vadd.f32 %v2213_v51, %v2140_v55  ;;  %v2218_v20 = vadd.f32 %v2217_v59, %v2144_v2 }
 0x1fd   : > { %v2152_v28 = vpop.f32.mrf.mxu1  ;;  %v2227_v33 = vpop.f32.mrf.mxu0 }
 0x1fe   : > { %v2226_v37 = vadd.f32 %v2225_v22, %v2152_v28 }
 0x1ff   : > { %v2154_v21 = vpop.f32.mrf.mxu1  ;;  %v2229_v30 = vpop.f32.mrf.mxu0 }
 0x200   : > { %v2228_v38 = vadd.f32 %v2227_v33, %v2154_v21 }
 0x201   : > { %v2156_v31 = vpop.f32.mrf.mxu1  ;;  %v2233_v62 = vpop.f32.mrf.mxu0 }
 0x202   : > { %v2230_v36 = vadd.f32 %v2229_v30, %v2156_v31 }
 0x203   : > { %v2160_v23 = vpop.f32.mrf.mxu1  ;;  %v2235_v25 = vpop.f32.mrf.mxu0 }
 0x204   : > { %v7633_v39 = vpack.c.bf16 %v2230_v36, %v2226_v37  ;;  %v2234_v8 = vadd.f32 %v2233_v62, %v2160_v23 }
 0x205   : > { %v2162_v17 = vpop.f32.mrf.mxu1  ;;  %v2237_v18 = vpop.f32.mrf.mxu0 }
 0x206   : > { %v2236_v60 = vadd.f32 %v2235_v25, %v2162_v17 }
 0x207   : > { %v2164_v43 = vpop.f32.mrf.mxu1  ;;  %v2239_v56 = vpop.f32.mrf.mxu0 }
 0x208   : > { %v2238_v30 = vadd.f32 %v2237_v18, %v2164_v43  ;;  %v7645_v43 = vpack.c.bf16 %v2228_v38, %v2224_v52 }
 0x209   : > { %v2166_v58 = vpop.f32.mrf.mxu1  ;;  %v2243_v61 = vpop.f32.mrf.mxu0 }
 0x20a   : > { %v2240_v4 = vadd.f32 %v2239_v56, %v2166_v58  ;;  %v7637_v3 = vpack.c.bf16 %v2238_v30, %v2234_v8 }
 0x20b   : > { %v2170_v6 = vpop.f32.mrf.mxu1  ;;  %v2245_v19 = vpop.f32.mrf.mxu0 }
 0x20c   : > { %v7635_v22 = vpack.c.bf16 %v2240_v4, %v2236_v60  ;;  %v2244_v31 = vadd.f32 %v2243_v61, %v2170_v6  ;;  %v7649_v6 = vpack.c.bf16 %v2218_v20, %v2214_v10 }
 0x20d   : > { %v2172_v28 = vpop.f32.mrf.mxu1  ;;  %v2247_v0 = vpop.f32.mrf.mxu0 }
 0x20e   : > { %v2246_v46 = vadd.f32 %v2245_v19, %v2172_v28 }
 0x20f   : > { %v2174_v37 = vpop.f32.mrf.mxu1  ;;  %v2249_v36 = vpop.f32.mrf.mxu0 }
 0x210   : > { %v2248_v34 = vadd.f32 %v2247_v0, %v2174_v37 }
 0x211   : > { %v2176_v25 = vpop.f32.mrf.mxu1  ;;  %v5852_v17 = vpop.f32.mrf.mxu0 }
 0x212   : > { %v7639_v56 = vpack.c.bf16 %v2248_v34, %v2244_v31  ;;  %v2250_v58 = vadd.f32 %v2249_v36, %v2176_v25 }
 0x213   : > { %v5853_v60 = vpop.f32.mrf.mxu0  ;;  %v6054_v4 = vpop.f32.mrf.mxu1 }
 0x214   : > { %6076 = vmatprep.subr.bf16.mxu1 %v7639_v56  ;;  %v7642_v62 = vpack.c.bf16 %v2250_v58, %v2246_v46  ;;  %v5854_v23 = vadd.f32 %v5853_v60, %v5852_v17 }
 0x215   : > { %6077 = vmatpush3.bf16.msra.mxu1 %v7639_v56  ;;  %v5855_v18 = vpop.f32.mrf.mxu0  ;;  %v2351_v0 = vpop.f32.mrf.mxu1 }
 0x216   : > { %6078 = vmatprep.subr.bf16.mxu1 %v7637_v3  ;;  %v2352_v34 = vadd.f32 %v5854_v23, %v2351_v0 }
 0x217   : > { %v5856_v8 = vpop.f32.mrf.mxu0  ;;  %v6055_v33 = vpop.f32.mrf.mxu1 }
 0x218   : > { %v5857_v21 = vadd.f32 %v5856_v8, %v5855_v18 }
 0x219   : > { %6079 = vmatpush3.bf16.msra.mxu1 %v7637_v3  ;;  %v5858_v61 = vpop.f32.mrf.mxu0  ;;  %v2354_v46 = vpop.f32.mrf.mxu1 }
 0x21a   : > { %6080 = vmatprep.subr.bf16.mxu1 %v7645_v43  ;;  %v2355_v19 = vadd.f32 %v5857_v21, %v2354_v46 }
 0x21b   : > { %v5859_v28 = vpop.f32.mrf.mxu0  ;;  %v6058_v51 = vpop.f32.mrf.mxu1 }
 0x21c   : > { %v7652_v55 = vpack.c.bf16 %v2355_v19, %v2352_v34  ;;  %v5860_v38 = vadd.f32 %v5859_v28, %v5858_v61 }
 0x21d   : > { %6081 = vmatpush3.bf16.msra.mxu1 %v7645_v43  ;;  %v5861_v52 = vpop.f32.mrf.mxu0  ;;  %v2367_v30 = vpop.f32.mrf.mxu1 }
 0x21e   : > { %6082 = vmatprep.subr.bf16.mxu1 %v7649_v6  ;;  %v2360_v59 = vadd.f32 %v6054_v4, %v5860_v38 }
 0x21f   : > { %v5862_v2 = vpop.f32.mrf.mxu0  ;;  %v6059_v17 = vpop.f32.mrf.mxu1 }
 0x220   : > { %v5863_v31 = vadd.f32 %v5862_v2, %v5861_v52 }
 0x221   : > { %6083 = vmatpush3.bf16.msra.mxu1 %v7649_v6  ;;  %v5864_v37 = vpop.f32.mrf.mxu0  ;;  %v2370_v10 = vpop.f32.mrf.mxu1 }
 0x222   : > { %v2363_v36 = vadd.f32 %v6055_v33, %v5863_v31 }
 0x223   : > { %v5865_v25 = vpop.f32.mrf.mxu0 }
 0x224   : > { %v5866_v58 = vadd.f32 %v5865_v25, %v5864_v37  ;;  %v7657_v60 = vpack.c.bf16 %v2363_v36, %v2360_v59  ;;  %v7663_v59 = vld [vmem:[#allocation6 + $0x10] sm:$0xff]  ;;  %v7668_v36 = vld [vmem:[#allocation6 + $0x18] sm:$0xff] }
 0x225   : > { %v5867_v23 = vpop.f32.mrf.mxu0 }
 0x226   : > { %v2368_v18 = vadd.f32 %v5866_v58, %v2367_v30  ;;  %v7665_v30 = vld [vmem:[#allocation6] sm:$0xff] }
 0x227   : > { %v5868_v0 = vpop.f32.mrf.mxu0 }
 0x228   : > { %v5869_v20 = vadd.f32 %v5868_v0, %v5867_v23  ;;  %v7672_v23 = vld [vmem:[#allocation6 + $0x8] sm:$0xff] }
 0x229   : > { %v5870_v34 = vpop.f32.mrf.mxu0 }
 0x22a   : > { %v2371_v8 = vadd.f32 %v5869_v20, %v2370_v10  ;;  %v7676_v10 = vld [vmem:[#allocation6 + $0x30] sm:$0xff] }
 0x22b   : > { %v5871_v4 = vpop.f32.mrf.mxu0 }
 0x22c   : > { %v7659_v21 = vpack.c.bf16 %v2371_v8, %v2368_v18  ;;  %v5872_v61 = vadd.f32 %v5871_v4, %v5870_v34 }
 0x22d   : > { %v5873_v46 = vpop.f32.mrf.mxu0 }
 0x22e   : > { %v2376_v19 = vadd.f32 %v6058_v51, %v5872_v61 }
 0x22f   : > { %v5874_v28 = vpop.f32.mrf.mxu0 }
 0x230   : > { %v5875_v33 = vadd.f32 %v5874_v28, %v5873_v46 }
 0x232   : > { %v2379_v38 = vadd.f32 %v6059_v17, %v5875_v33 }
 0x234   : > { %v7661_v52 = vpack.c.bf16 %v2379_v38, %v2376_v19  ;;  %v7684_v19 = vld [vmem:[#allocation6 + $0x20] sm:$0xff] }
 0x294   : > { %v6070_v2 = vpop.f32.mrf.mxu0 }
 0x295   : > { %v2470_v31 = vadd.f32 %v6070_v2, %v7663_v59  ;;  %v7705_v2 = vld [vmem:[#allocation6 + $0x38] sm:$0xff] }
 0x296   : > { %v2461_v37 = vpop.f32.mrf.mxu0 }
 0x297   : > { %v2462_v25 = vadd.f32 %v2461_v37, %v7665_v30  ;;  %v2498_v58 = vsel %vm2402_vm0, %v2470_v31, -inf }
 0x298   : > { %2499 = vmax.xlane.f32.xlu1 %v2498_v58  ;;  %v6071_v51 = vpop.f32.mrf.mxu0 }
 0x299   : > { %v2473_v17 = vadd.f32 %v6071_v51, %v7668_v36  ;;  %v2492_v18 = vsel %vm2402_vm0, %v2462_v25, -inf  ;;  %v7708_v51 = vld [vmem:[#allocation6 + $0x28] sm:$0xff] }
 0x29a   : > { %v2464_v0 = vpop.f32.mrf.mxu0  ;;  %2493 = vmax.xlane.f32.xlu0 %v2492_v18 }
 0x29b   : > { %v2465_v20 = vadd.f32 %v2464_v0, %v7672_v23  ;;  %v2501_v34 = vsel %vm2402_vm0, %v2473_v17, -inf }
 0x29c   : > { %2502 = vmax.xlane.f32.xlu1 %v2501_v34  ;;  %v6074_v8 = vpop.f32.mrf.mxu0 }
 0x29d   : > { %v7681_v4 = vadd.f32 %v6074_v8, %v7676_v10  ;;  %v2495_v61 = vsel %vm2402_vm0, %v2465_v20, -inf }
 0x29e   : > { %v2477_v46 = vpop.f32.mrf.mxu0  ;;  %2496 = vmax.xlane.f32.xlu0 %v2495_v61 }
 0x29f   : > { %v7687_v28 = vadd.f32 %v2477_v46, %v7684_v19  ;;  %v2510_v33 = vsel %vm2402_vm0, %v7681_v4, -inf }
 0x2a0   : > { %v6075_v37 = vpop.f32.mrf.mxu0 }
 0x2a1   : > { %v2504_v38 = vsel %vm2402_vm0, %v7687_v28, -inf }
 0x2a2   : > { %2511 = vmax.xlane.f32.xlu0 %v2510_v33  ;;  %v2480_v58 = vpop.f32.mrf.mxu0 }
 0x2a6   : > { %2505 = vmax.xlane.f32.xlu0 %v2504_v38 }
 0x2ad   : > { %2722 = vrot.lane.b32.xlu1 %v7583_v16, %s7226_s24  ;;  %v2489_v16 = vadd.f32 %v6075_v37, %v7705_v2 }
 0x2b1   : > { %2720 = vrot.lane.b32.xlu1 %v7591_v29, %s7226_s24  ;;  %v2481_v29 = vadd.f32 %v2480_v58, %v7708_v51 }
 0x2bc   : > { %2724 = vrot.lane.b32.xlu0 %v7581_v15, %s7226_s24  ;;  %v2513_v15 = vsel %vm2402_vm0, %v2489_v16, -inf }
 0x2c0   : > { %2706 = vrot.lane.b32.xlu0 %v7547_v41, %s7226_s24  ;;  %v2507_v41 = vsel %vm2402_vm0, %v2481_v29, -inf }
 0x2c4   : > { %2710 = vrot.lane.b32.xlu0 %v7563_v1, %s7226_s24 }
 0x2c8   : > { %2901 = vrot.lane.b32.xlu0 %v7639_v56, %s7226_s24 }
 0x2d5   : > { %2514 = vmax.xlane.f32.xlu1 %v2513_v15 }
 0x2d9   : > { %2508 = vmax.xlane.f32.xlu1 %v2507_v41 }
 0x2ea   : > { %2718 = vrot.lane.b32.xlu1 %v7599_v24, %s7226_s24 }
 0x2ee   : > { %2708 = vrot.lane.b32.xlu1 %v7557_v50, %s7226_s24 }
 0x2f2   : > { %2712 = vrot.lane.b32.xlu1 %v7571_v13, %s7226_s24 }
 0x2f6   : > { %2899 = vrot.lane.b32.xlu1 %v7637_v3, %s7226_s24 }
 0x321   : > { %v2500_v1 = vpop.xlane.xlu1 %2499 }
 0x322   : > { %v2518_v0 = vsub.f32 %v2470_v31, %v2500_v1 }
 0x323   : > { %v2494_v56 = vpop.xlane.xlu0 %2493 }
 0x324   : > { %v2516_v18 = vsub.f32 %v2462_v25, %v2494_v56  ;;  %v2528_v24 = vmul.f32 1.442695, %v2518_v0 }
 0x325   : > { %v2503_v34 = vpop.xlane.xlu1 %2502 }
 0x326   : > { %v2524_v8 = vmul.f32 1.442695, %v2516_v18  ;;  %v2519_v61 = vsub.f32 %v2473_v17, %v2503_v34 }
 0x327   : > { %v2497_v46 = vpop.xlane.xlu0 %2496 }
 0x328   : > { %v2530_v33 = vmul.f32 1.442695, %v2519_v61  ;;  %v2517_v38 = vsub.f32 %v2465_v20, %v2497_v46  ;;  %6833 = vpow2.f32 %v2524_v8 }
 0x329   : > { %v2723_v18 = vpop.permute.xlu1 %2722 }
 0x32a   : > { %v2526_v37 = vmul.f32 1.442695, %v2517_v38  ;;  %6835 = vpow2.f32 %v2530_v33  ;;  %v2745_v34 = vsel %vm2402_vm0, %v2723_v18, 0 }
 0x32b   : > { %v2512_v50 = vpop.xlane.xlu0 %2511 }
 0x32c   : > { %6837 = vpow2.f32 %v2526_v37 }
 0x32d   : > { %6839 = vpow2.f32 %v2528_v24  ;;  %v2721_v8 = vpop.permute.xlu1 %2720  ;;  %v2522_v24 = vsub.f32 %v7681_v4, %v2512_v50 }
 0x32e   : > { %v2742_v61 = vsel %vm2402_vm0, %v2721_v8, 0 }
 0x32f   : > { %v2506_v13 = vpop.xlane.xlu0 %2505 }
 0x330   : > { %v2520_v46 = vsub.f32 %v7687_v28, %v2506_v13 }
 0x332   : > { %v2532_v37 = vmul.f32 1.442695, %v2520_v46 }
 0x333   : > { %v2725_v58 = vpop.permute.xlu0 %2724 }
 0x334   : > { %6296 = vmatprep.subr.msk.bf16.mxu1 %vm2402_vm0, %v2725_v58  ;;  %v2748_v56 = vsel %vm2402_vm0, %v2725_v58, 0  ;;  %6841 = vpow2.f32 %v2532_v37 }
 0x335   : > { %v7722_v3 = vpop.eup %6833 }
 0x337   : > { %v2707_v31 = vpop.permute.xlu0 %2706  ;;  %v7724_v25 = vpop.eup %6835 }
 0x339   : > { %v7726_v17 = vpop.eup %6837 }
 0x33a   : > { %8719 = vst [vmem:[#allocation22_spill] sm:$0xff] %v7726_v17  ;;  %v7728_v15 = vpop.eup %6839  ;;  %v2564_v20 = vpack.c.bf16 %v7726_v17, %v7722_v3 }
 0x33b   : > { %8720 = vst [vmem:[#allocation23_spill] sm:$0xff] %v7728_v15  ;;  %v2565_v41 = vpack.c.bf16 %v7724_v25, %v7728_v15  ;;  %v2711_v1 = vpop.permute.xlu0 %2710 }
 0x33c   : > { %6084 = vmatprep.mubr.msk.bf16.mxu1 %vm2402_vm0, %v2564_v20 }
 0x33d   : > { %6085 = vmatmul.mubr.msk.bf16.vlgmr.msra.gmra.mxu1 %vm2402_vm0, %v2565_v41 }
 0x33e   : > { %6093 = vmatpush3.bf16.xpose.msra.mxu1 %v2748_v56  ;;  %v2536_v56 = vmul.f32 1.442695, %v2522_v24 }
 0x33f   : > { %6297 = vmatprep.subr.msk.bf16.mxu1 %vm2402_vm0, %v2723_v18  ;;  %v2902_v0 = vpop.permute.xlu0 %2901 }
 0x340   : > { %6108 = vmatprep.subr.bf16.mxu0 %v2902_v0 }
 0x341   : > { %6109 = vmatpush3.bf16.msra.mxu0 %v2902_v0 }
 0x346   : > { %6095 = vmatpush3.bf16.xpose.msra.mxu1 %v2745_v34 }
 0x347   : > { %6298 = vmatprep.subr.msk.bf16.mxu1 %vm2402_vm0, %v2721_v8 }
 0x34e   : > { %6097 = vmatpush3.bf16.xpose.msra.mxu1 %v2742_v61 }
 0x35e   : > { %v2515_v33 = vpop.xlane.xlu1 %2514 }
 0x35f   : > { %v2523_v38 = vsub.f32 %v2489_v16, %v2515_v33  ;;  %v7746_v16 = vpop.eup %6841 }
 0x360   : > { %8721 = vst [vmem:[#allocation24_spill] sm:$0xff] %v7746_v16 }
 0x361   : > { %v2538_v58 = vmul.f32 1.442695, %v2523_v38 }
 0x362   : > { %v2509_v20 = vpop.xlane.xlu1 %2508 }
 0x363   : > { %v2521_v41 = vsub.f32 %v2481_v29, %v2509_v20  ;;  %6843 = vpow2.f32 %v2538_v58 }
 0x365   : > { %v2534_v18 = vmul.f32 1.442695, %v2521_v41 }
 0x366   : > { %v2719_v0 = vpop.permute.xlu1 %2718 }
 0x367   : > { %6845 = vpow2.f32 %v2534_v18  ;;  %6299 = vmatprep.subr.msk.bf16.mxu1 %vm2402_vm0, %v2719_v0  ;;  %v2739_v34 = vsel %vm2402_vm0, %v2719_v0, 0 }
 0x368   : > { %6847 = vpow2.f32 %v2536_v56  ;;  %6099 = vmatpush3.bf16.xpose.msra.mxu1 %v2739_v34 }
 0x369   : > { %6140 = vmatprep.subr.bf16.mxu1 %v7642_v62 }
 0x36a   : > { %v2709_v28 = vpop.permute.xlu1 %2708 }
 0x36e   : > { %v2713_v4 = vpop.permute.xlu1 %2712 }
 0x370   : > { %v7748_v29 = vpop.eup %6843 }
 0x371   : > { %8722 = vst [vmem:[#allocation25_spill] sm:$0xff] %v7748_v29 }
 0x372   : > { %v2900_v50 = vpop.permute.xlu1 %2899 }
 0x373   : > { %6110 = vmatprep.subr.bf16.mxu0 %v2900_v50 }
 0x374   : > { %v7750_v13 = vpop.eup %6845  ;;  %6111 = vmatpush3.bf16.msra.mxu0 %v2900_v50 }
 0x375   : > { %v7752_v8 = vpop.eup %6847  ;;  %v2566_v61 = vpack.c.bf16 %v7750_v13, %v7746_v16 }
 0x376   : > { %8723 = vst [vmem:[#allocation26_spill] sm:$0xff] %v7752_v8  ;;  %v2567_v46 = vpack.c.bf16 %v7748_v29, %v7752_v8 }
 0x377   : > { %6088 = vmatprep.mubr.msk.bf16.mxu1 %vm2402_vm0, %v2566_v61 }
 0x378   : > { %6089 = vmatmul.mubr.msk.bf16.gmra.mxu1 %vm2402_vm0, %v2567_v46 }
 0x379   : > { %6100 = vmatprep.mubr.msk.bf16.mxu1 %vm2402_vm0, %v2707_v31 }
 0x380   : > { %6101 = vmatmul.mubr.msk.bf16.vlgmr.msra.gmra.mxu1 %vm2402_vm0, %v2709_v28 }
 0x381   : > { %6141 = vmatpush3.bf16.msra.mxu1 %v7642_v62  ;;  %6104 = vmatprep.mubr.msk.bf16.mxu1 %vm2402_vm0, %v2711_v1 }
 0x382   : > { %6142 = vmatprep.subr.bf16.mxu1 %v7635_v22 }
 0x385   : > { %6143 = vmatpush3.bf16.msra.mxu1 %v7635_v22 }
 0x386   : > { %6144 = vmatprep.subr.bf16.mxu1 %v7633_v39 }
 0x388   : > { %6105 = vmatmul.mubr.msk.bf16.gmra.mxu1 %vm2402_vm0, %v2713_v4 }
 0x389   : > { %6145 = vmatpush3.bf16.msra.mxu1 %v7633_v39 }
 0x38a   : > { %6146 = vmatprep.subr.bf16.mxu1 %v7631_v27 }
 0x38d   : > { %6147 = vmatpush3.bf16.msra.mxu1 %v7631_v27 }
 0x3fd   : > { %v7771_v31 = vpop.f32.mrf.mxu1 }
 0x3fe   : > { %8724 = vst [vmem:[#allocation27_spill] sm:$0xff] %v7771_v31 }
 0x3ff   : > { %v7773_v33 = vpop.f32.mrf.mxu1 }
 0x400   : > { %8725 = vst [vmem:[#allocation28_spill] sm:$0xff] %v7773_v33 }
 0x401   : > { %v7775_v38 = vpop.f32.mrf.mxu1 }
 0x402   : > { %8726 = vst [vmem:[#allocation29_spill] sm:$0xff] %v7775_v38 }
 0x403   : > { %v7777_v1 = vpop.f32.mrf.mxu1 }
 0x404   : > { %8727 = vst [vmem:[#allocation30_spill] sm:$0xff] %v7777_v1 }
 0x438   : > { %v7779_v24 = vpop.f32.mrf.mxu1 }
 0x439   : > { %8728 = vst [vmem:[#allocation31_spill] sm:$0xff] %v7779_v24 }
 0x43a   : > { %v7781_v37 = vpop.f32.mrf.mxu1 }
 0x43b   : > { %8729 = vst [vmem:[#allocation32_spill] sm:$0xff] %v7781_v37 }
 0x43c   : > { %v7783_v58 = vpop.f32.mrf.mxu1 }
 0x43d   : > { %8730 = vst [vmem:[#allocation33_spill] sm:$0xff] %v7783_v58 }
 0x43e   : > { %v7785_v20 = vpop.f32.mrf.mxu1 }
 0x43f   : > { %8731 = vst [vmem:[#allocation34_spill] sm:$0xff] %v7785_v20 }
 0x440   : > { %v6102_v41 = vpop.f32.mrf.mxu1 }
 0x441   : > { %v2793_v56 = vadd.f32 %v6102_v41, %v7663_v59 }
 0x442   : > { %v2784_v18 = vpop.f32.mrf.mxu1 }
 0x443   : > { %v2785_v0 = vadd.f32 %v2784_v18, %v7665_v30  ;;  %v2821_v34 = vsel %vm2402_vm0, %v2793_v56, -inf }
 0x444   : > { %2822 = vmax.xlane.f32.xlu0 %v2821_v34  ;;  %v6103_v28 = vpop.f32.mrf.mxu1 }
 0x445   : > { %v2796_v50 = vadd.f32 %v6103_v28, %v7668_v36  ;;  %v2815_v46 = vsel %vm2402_vm0, %v2785_v0, -inf }
 0x446   : > { %v2787_v4 = vpop.f32.mrf.mxu1 }
 0x447   : > { %v2788_v61 = vadd.f32 %v2787_v4, %v7672_v23  ;;  %v2824_v34 = vsel %vm2402_vm0, %v2796_v50, -inf }
 0x448   : > { %2816 = vmax.xlane.f32.xlu0 %v2815_v46  ;;  %v6106_v24 = vpop.f32.mrf.mxu1 }
 0x449   : > { %v2818_v37 = vsel %vm2402_vm0, %v2788_v61, -inf  ;;  %v2809_v58 = vadd.f32 %v6106_v24, %v7676_v10 }
 0x44a   : > { %2819 = vmax.xlane.f32.xlu1 %v2818_v37  ;;  %v2800_v41 = vpop.f32.mrf.mxu1 }
 0x44b   : > { %v2801_v18 = vadd.f32 %v2800_v41, %v7684_v19  ;;  %v2833_v20 = vsel %vm2402_vm0, %v2809_v58, -inf }
 0x44c   : > { %2825 = vmax.xlane.f32.xlu0 %v2824_v34  ;;  %v6107_v31 = vpop.f32.mrf.mxu1 }
 0x44d   : > { %v2812_v28 = vadd.f32 %v6107_v31, %v7705_v2  ;;  %v2827_v4 = vsel %vm2402_vm0, %v2801_v18, -inf }
 0x44e   : > { %v2803_v1 = vpop.f32.mrf.mxu1  ;;  %2828 = vmax.xlane.f32.xlu1 %v2827_v4 }
 0x44f   : > { %v2804_v46 = vadd.f32 %v2803_v1, %v7708_v51  ;;  %v2836_v37 = vsel %vm2402_vm0, %v2812_v28, -inf }
 0x450   : > { %2834 = vmax.xlane.f32.xlu0 %v2833_v20 }
 0x451   : > { %v2830_v24 = vsel %vm2402_vm0, %v2804_v46, -inf }
 0x452   : > { %2837 = vmax.xlane.f32.xlu1 %v2836_v37 }
 0x454   : > { %2831 = vmax.xlane.f32.xlu0 %v2830_v24 }
 0x463   : > { %2895 = vrot.lane.b32.xlu1 %v7649_v6, %s7226_s24 }
 0x46a   : > { %2897 = vrot.lane.b32.xlu0 %v7645_v43, %s7226_s24 }
 0x4cd   : > { %v2823_v31 = vpop.xlane.xlu0 %2822 }
 0x4ce   : > { %v2841_v41 = vsub.f32 %v2793_v56, %v2823_v31 }
 0x4d0   : > { %v2851_v20 = vmul.f32 1.442695, %v2841_v41 }
 0x4d1   : > { %v2817_v34 = vpop.xlane.xlu0 %2816 }
 0x4d2   : > { %v2839_v4 = vsub.f32 %v2785_v0, %v2817_v34 }
 0x4d3   : > { %v2820_v1 = vpop.xlane.xlu1 %2819 }
 0x4d4   : > { %v2847_v38 = vmul.f32 1.442695, %v2839_v4  ;;  %v2840_v33 = vsub.f32 %v2788_v61, %v2820_v1 }
 0x4d5   : > { %v2826_v8 = vpop.xlane.xlu0 %2825 }
 0x4d6   : > { %v2849_v16 = vmul.f32 1.442695, %v2840_v33  ;;  %v2842_v37 = vsub.f32 %v2796_v50, %v2826_v8  ;;  %6849 = vpow2.f32 %v2847_v38  ;;  %v3091_v50 = vsel %vm2402_vm0, %v7627_v42, 0 }
 0x4d7   : > { %v2829_v29 = vpop.xlane.xlu1 %2828 }
 0x4d8   : > { %6851 = vpow2.f32 %v2849_v16  ;;  %v2853_v24 = vmul.f32 1.442695, %v2842_v37  ;;  %v2843_v15 = vsub.f32 %v2801_v18, %v2829_v29 }
 0x4d9   : > { %6853 = vpow2.f32 %v2851_v20  ;;  %v2835_v6 = vpop.xlane.xlu0 %2834 }
 0x4da   : > { %6855 = vpow2.f32 %v2853_v24  ;;  %v2845_v43 = vsub.f32 %v2809_v58, %v2835_v6  ;;  %v2855_v56 = vmul.f32 1.442695, %v2843_v15 }
 0x4db   : > { %v2838_v17 = vpop.xlane.xlu1 %2837 }
 0x4dc   : > { %v2846_v31 = vsub.f32 %v2812_v28, %v2838_v17  ;;  %v2859_v61 = vmul.f32 1.442695, %v2845_v43  ;;  %6857 = vpow2.f32 %v2855_v56  ;;  %v3088_v43 = vsel %vm2402_vm0, %v7623_v35, 0 }
 0x4dd   : > { %v2832_v0 = vpop.xlane.xlu0 %2831  ;;  %v1802_v56 = vadd.f32 %v7555_v49, %v7561_v63 }
 0x4de   : > { %v2861_v34 = vmul.f32 1.442695, %v2846_v31  ;;  %v2844_v4 = vsub.f32 %v2804_v46, %v2832_v0  ;;  %v1782_v46 = vadd.f32 %v7536_v54, %v7545_v40  ;;  %v3085_v54 = vsel %vm2402_vm0, %v7619_v5, 0 }
 0x4df   : > { %v2896_v16 = vpop.permute.xlu1 %2895  ;;  %v1792_v40 = vadd.f32 %v7541_v9, %v7553_v48  ;;  %v3059_v0 = vpack.c.bf16 %v1802_v56, %v7559_v57 }
 0x4e0   : > { %v2857_v41 = vmul.f32 1.442695, %v2844_v4  ;;  %6859 = vpow2.f32 %v2861_v34  ;;  %v3057_v6 = vpack.c.bf16 %v1782_v46, %v7543_v45  ;;  %v3082_v45 = vsel %vm2402_vm0, %v7615_v47, 0 }
 0x4e1   : > { %v2898_v8 = vpop.permute.xlu0 %2897  ;;  %v3058_v31 = vpack.c.bf16 %v1792_v40, %v7551_v44  ;;  %v1812_v34 = vadd.f32 %v7567_v11, %v7569_v12 }
 0x4e2   : > { %6861 = vpow2.f32 %v2857_v41  ;;  %6112 = vmatprep.subr.bf16.mxu0 %v2898_v8 }
 0x4e3   : > { %6863 = vpow2.f32 %v2859_v61  ;;  %6113 = vmatpush3.bf16.msra.mxu0 %v2898_v8  ;;  %v7807_v29 = vpop.eup %6849  ;;  %v3060_v4 = vpack.c.bf16 %v1812_v34, %v7565_v7 }
 0x4e4   : > { %6114 = vmatprep.subr.bf16.mxu0 %v2896_v16 }
 0x4e5   : > { %v7809_v33 = vpop.eup %6851 }
 0x4e6   : > { %v7811_v15 = vpop.eup %6853  ;;  %v2887_v17 = vpack.c.bf16 %v7809_v33, %v7807_v29 }
 0x4e7   : > { %v7815_v38 = vpop.eup %6855  ;;  %6115 = vmatpush3.bf16.msra.mxu0 %v2896_v16 }
 0x4e8   : > { %v2888_v58 = vpack.c.bf16 %v7815_v38, %v7811_v15  ;;  %6116 = vmatprep.mubr.msk.bf16.mxu0 %vm2402_vm0, %v2887_v17  ;;  %6300 = vmatprep.subr.msk.bf16.mxu0 %vm2402_vm0, %v7627_v42 }
 0x4e9   : > { %v7827_v18 = vpop.eup %6857 }
 0x4ea   : > { %6117 = vmatmul.mubr.msk.bf16.vlgmr.msra.gmra.mxu0 %vm2402_vm0, %v2888_v58 }
 0x4eb   : > { %6125 = vmatpush3.bf16.xpose.msra.mxu0 %v3091_v50 }
 0x4ec   : > { %6301 = vmatprep.subr.msk.bf16.mxu0 %vm2402_vm0, %v7623_v35 }
 0x4ed   : > { %v7829_v28 = vpop.eup %6859 }
 0x4ef   : > { %v7833_v1 = vpop.eup %6861 }
 0x4f0   : > { %v7835_v20 = vpop.eup %6863  ;;  %v2889_v37 = vpack.c.bf16 %v7833_v1, %v7827_v18 }
 0x4f1   : > { %v2890_v24 = vpack.c.bf16 %v7829_v28, %v7835_v20 }
 0x4f2   : > { %6120 = vmatprep.mubr.msk.bf16.mxu0 %vm2402_vm0, %v2889_v37 }
 0x4f3   : > { %6121 = vmatmul.mubr.msk.bf16.gmra.mxu0 %vm2402_vm0, %v2890_v24 }
 0x4f4   : > { %6127 = vmatpush3.bf16.xpose.msra.mxu0 %v3088_v43  ;;  %6132 = vmatprep.mubr.msk.bf16.mxu0 %vm2402_vm0, %v3057_v6 }
 0x4f5   : > { %6302 = vmatprep.subr.msk.bf16.mxu0 %vm2402_vm0, %v7619_v5 }
 0x4fc   : > { %6129 = vmatpush3.bf16.xpose.msra.mxu0 %v3085_v54 }
 0x4fd   : > { %6303 = vmatprep.subr.msk.bf16.mxu0 %vm2402_vm0, %v7615_v47 }
 0x504   : > { %6131 = vmatpush3.bf16.xpose.msra.mxu0 %v3082_v45 }
 0x50b   : > { %6133 = vmatmul.mubr.msk.bf16.vlgmr.msra.gmra.mxu0 %vm2402_vm0, %v3058_v31 }
 0x50c   : > { %6136 = vmatprep.mubr.msk.bf16.mxu0 %vm2402_vm0, %v3059_v0 }
 0x513   : > { %6137 = vmatmul.mubr.msk.bf16.gmra.mxu0 %vm2402_vm0, %v3060_v4 }
 0x5aa   : > { %v7867_v61 = vpop.f32.mrf.mxu0 }
 0x5ab   : > { %8732 = vst [vmem:[#allocation35_spill] sm:$0xff] %v7867_v61  ;;  %v8087_v61 = vld [vmem:[#allocation6 + $0x8] sm:$0xff] }
 0x5ac   : > { %v7869_v9 = vpop.f32.mrf.mxu0 }
 0x5ad   : > { %8733 = vst [vmem:[#allocation36_spill] sm:$0xff] %v7869_v9 }
 0x5ae   : > { %v7871_v48 = vpop.f32.mrf.mxu0 }
 0x5af   : > { %8734 = vst [vmem:[#allocation37_spill] sm:$0xff] %v7871_v48 }
 0x5b0   : > { %v7873_v44 = vpop.f32.mrf.mxu0 }
 0x5b1   : > { %8735 = vst [vmem:[#allocation38_spill] sm:$0xff] %v7873_v44 }
 0x5b3   : > { %v7875_v49 = vpop.f32.mrf.mxu0 }
 0x5b4   : > { %8736 = vst [vmem:[#allocation39_spill] sm:$0xff] %v7875_v49 }
 0x5b5   : > { %v7877_v57 = vpop.f32.mrf.mxu0 }
 0x5b6   : > { %8737 = vst [vmem:[#allocation40_spill] sm:$0xff] %v7877_v57 }
 0x5b7   : > { %v7879_v63 = vpop.f32.mrf.mxu0 }
 0x5b8   : > { %8738 = vst [vmem:[#allocation41_spill] sm:$0xff] %v7879_v63 }
 0x5b9   : > { %v7881_v41 = vpop.f32.mrf.mxu0 }
 0x5ba   : > { %8739 = vst [vmem:[#allocation42_spill] sm:$0xff] %v7881_v41 }
 0x5cb   : > { %v6134_v11 = vpop.f32.mrf.mxu0 }
 0x5cc   : > { %v3136_v7 = vadd.f32 %v6134_v11, %v7663_v59 }
 0x5cd   : > { %v3127_v12 = vpop.f32.mrf.mxu0 }
 0x5ce   : > { %v3128_v8 = vadd.f32 %v3127_v12, %v7665_v30  ;;  %v3164_v16 = vsel %vm2402_vm0, %v3136_v7, -inf }
 0x5cf   : > { %3165 = vmax.xlane.f32.xlu0 %v3164_v16  ;;  %v6135_v17 = vpop.f32.mrf.mxu0 }
 0x5d0   : > { %v3139_v58 = vadd.f32 %v6135_v17, %v7668_v36  ;;  %v3158_v50 = vsel %vm2402_vm0, %v3128_v8, -inf }
 0x5d1   : > { %v3130_v46 = vpop.f32.mrf.mxu0  ;;  %3159 = vmax.xlane.f32.xlu1 %v3158_v50 }
 0x5d2   : > { %v3131_v37 = vadd.f32 %v3130_v46, %v7672_v23  ;;  %v3167_v45 = vsel %vm2402_vm0, %v3139_v58, -inf }
 0x5d3   : > { %v6138_v24 = vpop.f32.mrf.mxu0 }
 0x5d4   : > { %v7890_v43 = vadd.f32 %v6138_v24, %v7676_v10  ;;  %v3161_v54 = vsel %vm2402_vm0, %v3131_v37, -inf }
 0x5d5   : > { %3162 = vmax.xlane.f32.xlu0 %v3161_v54  ;;  %3168 = vmax.xlane.f32.xlu1 %v3167_v45  ;;  %v3143_v40 = vpop.f32.mrf.mxu0 }
 0x5d6   : > { %v7895_v56 = vadd.f32 %v3143_v40, %v7684_v19  ;;  %v3176_v34 = vsel %vm2402_vm0, %v7890_v43, -inf }
 0x5d7   : > { %v6139_v12 = vpop.f32.mrf.mxu0 }
 0x5d8   : > { %v3170_v11 = vsel %vm2402_vm0, %v7895_v56, -inf  ;;  %v3155_v16 = vadd.f32 %v6139_v12, %v7705_v2 }
 0x5d9   : > { %3177 = vmax.xlane.f32.xlu0 %v3176_v34  ;;  %v3146_v17 = vpop.f32.mrf.mxu0 }
 0x5da   : > { %v3147_v50 = vadd.f32 %v3146_v17, %v7708_v51 }
 0x5dd   : > { %3171 = vmax.xlane.f32.xlu0 %v3170_v11 }
 0x5e6   : > { %3387 = vrot.lane.b32.xlu1 %v7623_v35, %s7226_s24  ;;  %v3179_v35 = vsel %vm2402_vm0, %v3155_v16, -inf }
 0x5ea   : > { %3385 = vrot.lane.b32.xlu1 %v7619_v5, %s7226_s24  ;;  %v3173_v5 = vsel %vm2402_vm0, %v3147_v50, -inf }
 0x5f3   : > { %3389 = vrot.lane.b32.xlu0 %v7627_v42, %s7226_s24 }
 0x5f7   : > { %3371 = vrot.lane.b32.xlu0 %v3057_v6, %s7226_s24 }
 0x5fb   : > { %3375 = vrot.lane.b32.xlu0 %v3059_v0, %s7226_s24 }
 0x5ff   : > { %3566 = vrot.lane.b32.xlu0 %v7642_v62, %s7226_s24 }
 0x60e   : > { %3180 = vmax.xlane.f32.xlu1 %v3179_v35 }
 0x612   : > { %3174 = vmax.xlane.f32.xlu1 %v3173_v5 }
 0x623   : > { %3383 = vrot.lane.b32.xlu1 %v7615_v47, %s7226_s24 }
 0x627   : > { %3373 = vrot.lane.b32.xlu1 %v3058_v31, %s7226_s24 }
 0x62b   : > { %3377 = vrot.lane.b32.xlu1 %v3060_v4, %s7226_s24 }
 0x62f   : > { %3564 = vrot.lane.b32.xlu1 %v7635_v22, %s7226_s24 }
 0x658   : > { %v3166_v42 = vpop.xlane.xlu0 %3165 }
 0x659   : > { %v3184_v62 = vsub.f32 %v3136_v7, %v3166_v42 }
 0x65a   : > { %v3160_v6 = vpop.xlane.xlu1 %3159 }
 0x65b   : > { %v3182_v0 = vsub.f32 %v3128_v8, %v3160_v6  ;;  %v3194_v46 = vmul.f32 1.442695, %v3184_v62 }
 0x65d   : > { %v3190_v24 = vmul.f32 1.442695, %v3182_v0  ;;  %6865 = vpow2.f32 %v3194_v46 }
 0x65e   : > { %v3163_v54 = vpop.xlane.xlu0 %3162  ;;  %v3169_v45 = vpop.xlane.xlu1 %3168 }
 0x65f   : > { %v3183_v40 = vsub.f32 %v3131_v37, %v3163_v54  ;;  %v3185_v34 = vsub.f32 %v3139_v58, %v3169_v45  ;;  %6867 = vpow2.f32 %v3190_v24 }
 0x661   : > { %v3192_v11 = vmul.f32 1.442695, %v3183_v40  ;;  %v3196_v47 = vmul.f32 1.442695, %v3185_v34 }
 0x662   : > { %v3178_v31 = vpop.xlane.xlu0 %3177  ;;  %v3388_v62 = vpop.permute.xlu1 %3387 }
 0x663   : > { %6869 = vpow2.f32 %v3192_v11  ;;  %v3410_v0 = vsel %vm2402_vm0, %v3388_v62, 0  ;;  %v3188_v34 = vsub.f32 %v7890_v43, %v3178_v31 }
 0x664   : > { %6871 = vpow2.f32 %v3196_v47 }
 0x666   : > { %v3172_v4 = vpop.xlane.xlu0 %3171  ;;  %v3386_v46 = vpop.permute.xlu1 %3385 }
 0x667   : > { %v3407_v24 = vsel %vm2402_vm0, %v3386_v46, 0  ;;  %v3186_v54 = vsub.f32 %v7895_v56, %v3172_v4 }
 0x669   : > { %v3198_v11 = vmul.f32 1.442695, %v3186_v54 }
 0x66a   : > { %v3390_v12 = vpop.permute.xlu0 %3389  ;;  %v7922_v22 = vpop.eup %6865 }
 0x66b   : > { %6304 = vmatprep.subr.msk.bf16.mxu1 %vm2402_vm0, %v3390_v12  ;;  %v3413_v42 = vsel %vm2402_vm0, %v3390_v12, 0  ;;  %6873 = vpow2.f32 %v3198_v11 }
 0x66c   : > { %v7924_v8 = vpop.eup %6867 }
 0x66e   : > { %v3372_v7 = vpop.permute.xlu0 %3371 }
 0x670   : > { %v7926_v17 = vpop.eup %6869 }
 0x671   : > { %v7928_v37 = vpop.eup %6871  ;;  %v3230_v58 = vpack.c.bf16 %v7926_v17, %v7924_v8 }
 0x672   : > { %v3231_v35 = vpack.c.bf16 %v7928_v37, %v7922_v22  ;;  %v3376_v5 = vpop.permute.xlu0 %3375 }
 0x673   : > { %6148 = vmatprep.mubr.msk.bf16.mxu1 %vm2402_vm0, %v3230_v58 }
 0x674   : > { %6149 = vmatmul.mubr.msk.bf16.vlgmr.msra.gmra.mxu1 %vm2402_vm0, %v3231_v35  ;;  %v3202_v35 = vmul.f32 1.442695, %v3188_v34 }
 0x675   : > { %6157 = vmatpush3.bf16.xpose.msra.mxu1 %v3413_v42 }
 0x676   : > { %6305 = vmatprep.subr.msk.bf16.mxu1 %vm2402_vm0, %v3388_v62  ;;  %v3567_v6 = vpop.permute.xlu0 %3566 }
 0x677   : > { %6172 = vmatprep.subr.bf16.mxu0 %v3567_v6 }
 0x678   : > { %6173 = vmatpush3.bf16.msra.mxu0 %v3567_v6 }
 0x67d   : > { %6159 = vmatpush3.bf16.xpose.msra.mxu1 %v3410_v0 }
 0x67e   : > { %6306 = vmatprep.subr.msk.bf16.mxu1 %vm2402_vm0, %v3386_v46 }
 0x685   : > { %6161 = vmatpush3.bf16.xpose.msra.mxu1 %v3407_v24 }
 0x697   : > { %v3181_v45 = vpop.xlane.xlu1 %3180 }
 0x698   : > { %v3189_v40 = vsub.f32 %v3155_v16, %v3181_v45  ;;  %v7946_v16 = vpop.eup %6873 }
 0x69a   : > { %v3204_v47 = vmul.f32 1.442695, %v3189_v40 }
 0x69b   : > { %v3175_v12 = vpop.xlane.xlu1 %3174 }
 0x69c   : > { %v3187_v58 = vsub.f32 %v3147_v50, %v3175_v12  ;;  %6875 = vpow2.f32 %v3204_v47 }
 0x69e   : > { %v3200_v42 = vmul.f32 1.442695, %v3187_v58 }
 0x69f   : > { %v3384_v62 = vpop.permute.xlu1 %3383 }
 0x6a0   : > { %6877 = vpow2.f32 %v3200_v42  ;;  %6307 = vmatprep.subr.msk.bf16.mxu1 %vm2402_vm0, %v3384_v62  ;;  %v3404_v6 = vsel %vm2402_vm0, %v3384_v62, 0 }
 0x6a1   : > { %6879 = vpow2.f32 %v3202_v35  ;;  %6163 = vmatpush3.bf16.xpose.msra.mxu1 %v3404_v6 }
 0x6a2   : > { %6204 = vmatprep.subr.bf16.mxu1 %v7661_v52 }
 0x6a3   : > { %v3374_v56 = vpop.permute.xlu1 %3373 }
 0x6a7   : > { %v3378_v43 = vpop.permute.xlu1 %3377 }
 0x6a9   : > { %v7948_v50 = vpop.eup %6875 }
 0x6aa   : > { %8740 = vst [vmem:[#allocation43_spill] sm:$0xff] %v7948_v50 }
 0x6ab   : > { %v3565_v31 = vpop.permute.xlu1 %3564 }
 0x6ac   : > { %6174 = vmatprep.subr.bf16.mxu0 %v3565_v31 }
 0x6ad   : > { %v7950_v4 = vpop.eup %6877  ;;  %6175 = vmatpush3.bf16.msra.mxu0 %v3565_v31 }
 0x6ae   : > { %v7952_v0 = vpop.eup %6879  ;;  %v3232_v46 = vpack.c.bf16 %v7950_v4, %v7946_v16 }
 0x6af   : > { %8741 = vst [vmem:[#allocation44_spill] sm:$0xff] %v7952_v0  ;;  %v3233_v24 = vpack.c.bf16 %v7948_v50, %v7952_v0 }
 0x6b0   : > { %6152 = vmatprep.mubr.msk.bf16.mxu1 %vm2402_vm0, %v3232_v46 }
 0x6b1   : > { %6153 = vmatmul.mubr.msk.bf16.gmra.mxu1 %vm2402_vm0, %v3233_v24 }
 0x6b2   : > { %6164 = vmatprep.mubr.msk.bf16.mxu1 %vm2402_vm0, %v3372_v7 }
 0x6b9   : > { %6165 = vmatmul.mubr.msk.bf16.vlgmr.msra.gmra.mxu1 %vm2402_vm0, %v3374_v56 }
 0x6ba   : > { %6205 = vmatpush3.bf16.msra.mxu1 %v7661_v52  ;;  %6168 = vmatprep.mubr.msk.bf16.mxu1 %vm2402_vm0, %v3376_v5 }
 0x6bb   : > { %6206 = vmatprep.subr.bf16.mxu1 %v7659_v21 }
 0x6be   : > { %6207 = vmatpush3.bf16.msra.mxu1 %v7659_v21 }
 0x6bf   : > { %6208 = vmatprep.subr.bf16.mxu1 %v7657_v60 }
 0x6c1   : > { %6169 = vmatmul.mubr.msk.bf16.gmra.mxu1 %vm2402_vm0, %v3378_v43 }
 0x6c2   : > { %6209 = vmatpush3.bf16.msra.mxu1 %v7657_v60 }
 0x6c3   : > { %6210 = vmatprep.subr.bf16.mxu1 %v7652_v55 }
 0x6c6   : > { %6211 = vmatpush3.bf16.msra.mxu1 %v7652_v55 }
 0x734   : > { %v7971_v7 = vpop.f32.mrf.mxu1 }
 0x736   : > { %v7973_v54 = vpop.f32.mrf.mxu1 }
 0x738   : > { %v7975_v45 = vpop.f32.mrf.mxu1 }
 0x73a   : > { %v7977_v5 = vpop.f32.mrf.mxu1 }
 0x771   : > { %v7979_v40 = vpop.f32.mrf.mxu1 }
 0x772   : > { %8742 = vst [vmem:[#allocation45_spill] sm:$0xff] %v7979_v40 }
 0x773   : > { %v7981_v34 = vpop.f32.mrf.mxu1 }
 0x775   : > { %v7983_v11 = vpop.f32.mrf.mxu1 }
 0x776   : > { %8743 = vst [vmem:[#allocation46_spill] sm:$0xff] %v7983_v11 }
 0x777   : > { %v7985_v47 = vpop.f32.mrf.mxu1 }
 0x778   : > { %8744 = vst [vmem:[#allocation47_spill] sm:$0xff] %v7985_v47 }
 0x779   : > { %v6166_v12 = vpop.f32.mrf.mxu1 }
 0x77a   : > { %v3458_v58 = vadd.f32 %v6166_v12, %v7663_v59 }
 0x77b   : > { %v3449_v35 = vpop.f32.mrf.mxu1 }
 0x77c   : > { %v3450_v42 = vadd.f32 %v3449_v35, %v7665_v30  ;;  %v3486_v62 = vsel %vm2402_vm0, %v3458_v58, -inf }
 0x77d   : > { %3487 = vmax.xlane.f32.xlu0 %v3486_v62  ;;  %v6167_v6 = vpop.f32.mrf.mxu1 }
 0x77e   : > { %v3461_v43 = vadd.f32 %v6167_v6, %v7668_v36  ;;  %v3480_v46 = vsel %vm2402_vm0, %v3450_v42, -inf }
 0x77f   : > { %v3452_v56 = vpop.f32.mrf.mxu1 }
 0x780   : > { %v3453_v31 = vadd.f32 %v3452_v56, %v7672_v23  ;;  %v3489_v35 = vsel %vm2402_vm0, %v3461_v43, -inf }
 0x781   : > { %3481 = vmax.xlane.f32.xlu0 %v3480_v46  ;;  %v6170_v24 = vpop.f32.mrf.mxu1 }
 0x782   : > { %v3483_v40 = vsel %vm2402_vm0, %v3453_v31, -inf  ;;  %v3474_v12 = vadd.f32 %v6170_v24, %v7676_v10 }
 0x783   : > { %3484 = vmax.xlane.f32.xlu1 %v3483_v40  ;;  %v3465_v59 = vpop.f32.mrf.mxu1 }
 0x784   : > { %v3466_v30 = vadd.f32 %v3465_v59, %v7684_v19  ;;  %v3498_v46 = vsel %vm2402_vm0, %v3474_v12, -inf }
 0x785   : > { %3490 = vmax.xlane.f32.xlu0 %v3489_v35  ;;  %v6171_v62 = vpop.f32.mrf.mxu1 }
 0x786   : > { %v3477_v36 = vadd.f32 %v6171_v62, %v7705_v2  ;;  %v3492_v23 = vsel %vm2402_vm0, %v3466_v30, -inf }
 0x787   : > { %v3468_v6 = vpop.f32.mrf.mxu1  ;;  %3493 = vmax.xlane.f32.xlu1 %v3492_v23 }
 0x788   : > { %v3469_v56 = vadd.f32 %v3468_v6, %v7708_v51  ;;  %v3501_v40 = vsel %vm2402_vm0, %v3477_v36, -inf }
 0x789   : > { %3499 = vmax.xlane.f32.xlu0 %v3498_v46 }
 0x78a   : > { %v3495_v10 = vsel %vm2402_vm0, %v3469_v56, -inf }
 0x78b   : > { %3502 = vmax.xlane.f32.xlu1 %v3501_v40 }
 0x78d   : > { %3496 = vmax.xlane.f32.xlu0 %v3495_v10 }
 0x79c   : > { %3560 = vrot.lane.b32.xlu1 %v7631_v27, %s7226_s24 }
 0x7a3   : > { %3562 = vrot.lane.b32.xlu0 %v7633_v39, %s7226_s24 }
 0x806   : > { %v3488_v24 = vpop.xlane.xlu0 %3487 }
 0x807   : > { %v3506_v59 = vsub.f32 %v3458_v58, %v3488_v24 }
 0x809   : > { %v3516_v46 = vmul.f32 1.442695, %v3506_v59 }
 0x80a   : > { %v3482_v35 = vpop.xlane.xlu0 %3481 }
 0x80b   : > { %v3504_v62 = vsub.f32 %v3450_v42, %v3482_v35 }
 0x80c   : > { %v3485_v23 = vpop.xlane.xlu1 %3484 }
 0x80d   : > { %v3512_v6 = vmul.f32 1.442695, %v3504_v62  ;;  %v3505_v11 = vsub.f32 %v3453_v31, %v3485_v23 }
 0x80e   : > { %v3491_v63 = vpop.xlane.xlu0 %3490 }
 0x80f   : > { %v3514_v49 = vmul.f32 1.442695, %v3505_v11  ;;  %v3507_v40 = vsub.f32 %v3461_v43, %v3491_v63  ;;  %6881 = vpow2.f32 %v3512_v6 }
 0x810   : > { %v3494_v41 = vpop.xlane.xlu1 %3493 }
 0x811   : > { %6883 = vpow2.f32 %v3514_v49  ;;  %v3518_v10 = vmul.f32 1.442695, %v3507_v40  ;;  %v3508_v57 = vsub.f32 %v3466_v30, %v3494_v41  ;;  %v3755_v30 = vsel %vm2402_vm0, %v7629_v53, 0 }
 0x812   : > { %6885 = vpow2.f32 %v3516_v46  ;;  %v3500_v27 = vpop.xlane.xlu0 %3499 }
 0x813   : > { %6887 = vpow2.f32 %v3518_v10  ;;  %v3510_v39 = vsub.f32 %v3474_v12, %v3500_v27  ;;  %v3520_v58 = vmul.f32 1.442695, %v3508_v57  ;;  %v3752_v10 = vsel %vm2402_vm0, %v7625_v32, 0  ;;  %v8745_v27 = vld [vmem:[#allocation21_spill] sm:$0xff] }
 0x814   : > { %v3503_v48 = vpop.xlane.xlu1 %3502 }
 0x815   : > { %v3511_v24 = vsub.f32 %v3477_v36, %v3503_v48  ;;  %v3524_v31 = vmul.f32 1.442695, %v3510_v39  ;;  %6889 = vpow2.f32 %v3520_v58  ;;  %v8746_v39 = vld [vmem:[#allocation19_spill] sm:$0xff] }
 0x816   : > { %v3497_v42 = vpop.xlane.xlu0 %3496  ;;  %v2074_v58 = vadd.f32 %v8746_v39, %v8745_v27 }
 0x817   : > { %v3526_v35 = vmul.f32 1.442695, %v3511_v24  ;;  %v3509_v62 = vsub.f32 %v3469_v56, %v3497_v42  ;;  %v8747_v24 = vld [vmem:[#allocation20_spill] sm:$0xff] }
 0x818   : > { %v3561_v49 = vpop.permute.xlu1 %3560  ;;  %v3725_v42 = vpack.c.bf16 %v2074_v58, %v8747_v24  ;;  %v8076_v58 = vld [vmem:[#allocation6 + $0x10] sm:$0xff] }
 0x819   : > { %v3522_v59 = vmul.f32 1.442695, %v3509_v62  ;;  %6891 = vpow2.f32 %v3526_v35  ;;  %v3749_v35 = vsel %vm2402_vm0, %v7621_v14, 0 }
 0x81a   : > { %v3563_v63 = vpop.permute.xlu0 %3562  ;;  %v3746_v62 = vsel %vm2402_vm0, %v3725_v42, 0 }
 0x81b   : > { %6893 = vpow2.f32 %v3522_v59  ;;  %6176 = vmatprep.subr.bf16.mxu0 %v3563_v63  ;;  %v8749_v59 = vld [vmem:[#allocation17_spill] sm:$0xff] }
 0x81c   : > { %6895 = vpow2.f32 %v3524_v31  ;;  %6177 = vmatpush3.bf16.msra.mxu0 %v3563_v63  ;;  %v8007_v41 = vpop.eup %6881  ;;  %v8748_v31 = vld [vmem:[#allocation16_spill] sm:$0xff]  ;;  %v8750_v63 = vld [vmem:[#allocation18_spill] sm:$0xff] }
 0x81d   : > { %6178 = vmatprep.subr.bf16.mxu0 %v3561_v49 }
 0x81e   : > { %v8009_v11 = vpop.eup %6883 }
 0x81f   : > { %v8011_v57 = vpop.eup %6885  ;;  %v3552_v48 = vpack.c.bf16 %v8009_v11, %v8007_v41 }
 0x820   : > { %v8015_v43 = vpop.eup %6887  ;;  %6179 = vmatpush3.bf16.msra.mxu0 %v3561_v49 }
 0x821   : > { %v3553_v12 = vpack.c.bf16 %v8015_v43, %v8011_v57  ;;  %6180 = vmatprep.mubr.msk.bf16.mxu0 %vm2402_vm0, %v3552_v48  ;;  %6308 = vmatprep.subr.msk.bf16.mxu0 %vm2402_vm0, %v7629_v53 }
 0x822   : > { %v8027_v36 = vpop.eup %6889 }
 0x823   : > { %6181 = vmatmul.mubr.msk.bf16.vlgmr.msra.gmra.mxu0 %vm2402_vm0, %v3553_v12 }
 0x824   : > { %6189 = vmatpush3.bf16.xpose.msra.mxu0 %v3755_v30 }
 0x825   : > { %6309 = vmatprep.subr.msk.bf16.mxu0 %vm2402_vm0, %v7625_v32 }
 0x826   : > { %v8029_v56 = vpop.eup %6891 }
 0x828   : > { %v8031_v23 = vpop.eup %6893 }
 0x829   : > { %v8033_v6 = vpop.eup %6895  ;;  %v3554_v46 = vpack.c.bf16 %v8031_v23, %v8027_v36 }
 0x82a   : > { %v3555_v40 = vpack.c.bf16 %v8029_v56, %v8033_v6 }
 0x82b   : > { %6184 = vmatprep.mubr.msk.bf16.mxu0 %vm2402_vm0, %v3554_v46 }
 0x82c   : > { %6185 = vmatmul.mubr.msk.bf16.gmra.mxu0 %vm2402_vm0, %v3555_v40 }
 0x82d   : > { %6191 = vmatpush3.bf16.xpose.msra.mxu0 %v3752_v10  ;;  %6196 = vmatprep.mubr.msk.bf16.mxu0 %vm2402_vm0, %v7573_v26 }
 0x82e   : > { %6310 = vmatprep.subr.msk.bf16.mxu0 %vm2402_vm0, %v7621_v14 }
 0x835   : > { %6193 = vmatpush3.bf16.xpose.msra.mxu0 %v3749_v35 }
 0x836   : > { %6311 = vmatprep.subr.msk.bf16.mxu0 %vm2402_vm0, %v3725_v42 }
 0x83d   : > { %6195 = vmatpush3.bf16.xpose.msra.mxu0 %v3746_v62  ;;  %v8079_v62 = vld [vmem:[#allocation6] sm:$0xff] }
 0x844   : > { %6197 = vmatmul.mubr.msk.bf16.vlgmr.msra.gmra.mxu0 %vm2402_vm0, %v8748_v31 }
 0x845   : > { %6200 = vmatprep.mubr.msk.bf16.mxu0 %vm2402_vm0, %v8749_v59 }
 0x84c   : > { %6201 = vmatmul.mubr.msk.bf16.gmra.mxu0 %vm2402_vm0, %v8750_v63 }
 0x8e3   : > { %v8060_v49 = vpop.f32.mrf.mxu0 }
 0x8e4   : > { %8751 = vst [vmem:[#allocation21_spill] sm:$0xff] %v8060_v49 }
 0x8e5   : > { %v8062_v48 = vpop.f32.mrf.mxu0 }
 0x8e6   : > { %8752 = vst [vmem:[#allocation19_spill] sm:$0xff] %v8062_v48  ;;  %v8090_v48 = vld [vmem:[#allocation6 + $0x30] sm:$0xff] }
 0x8e7   : > { %v8064_v12 = vpop.f32.mrf.mxu0 }
 0x8e8   : > { %8753 = vst [vmem:[#allocation20_spill] sm:$0xff] %v8064_v12 }
 0x8e9   : > { %v8066_v30 = vpop.f32.mrf.mxu0 }
 0x8ea   : > { %8754 = vst [vmem:[#allocation16_spill] sm:$0xff] %v8066_v30  ;;  %v8083_v30 = vld [vmem:[#allocation6 + $0x18] sm:$0xff] }
 0x8ec   : > { %v8068_v46 = vpop.f32.mrf.mxu0 }
 0x8ed   : > { %8755 = vst [vmem:[#allocation17_spill] sm:$0xff] %v8068_v46 }
 0x8ee   : > { %v8070_v40 = vpop.f32.mrf.mxu0 }
 0x8ef   : > { %8756 = vst [vmem:[#allocation18_spill] sm:$0xff] %v8070_v40 }
 0x8f0   : > { %v8072_v10 = vpop.f32.mrf.mxu0 }
 0x8f1   : > { %8757 = vst [vmem:[#allocation48_spill] sm:$0xff] %v8072_v10 }
 0x8f2   : > { %v8074_v27 = vpop.f32.mrf.mxu0 }
 0x8f3   : > { %8758 = vst [vmem:[#allocation49_spill] sm:$0xff] %v8074_v27 }
 0x904   : > { %v6198_v39 = vpop.f32.mrf.mxu0 }
 0x905   : > { %v3800_v24 = vadd.f32 %v8076_v58, %v6198_v39 }
 0x906   : > { %v3791_v35 = vpop.f32.mrf.mxu0 }
 0x907   : > { %v3792_v12 = vadd.f32 %v8079_v62, %v3791_v35  ;;  %v3828_v49 = vsel %vm2402_vm0, %v3800_v24, -inf }
 0x908   : > { %3829 = vmax.xlane.f32.xlu0 %v3828_v49  ;;  %v6199_v46 = vpop.f32.mrf.mxu0 }
 0x909   : > { %v3803_v10 = vadd.f32 %v8083_v30, %v6199_v46  ;;  %v3822_v27 = vsel %vm2402_vm0, %v3792_v12, -inf }
 0x90a   : > { %v3794_v40 = vpop.f32.mrf.mxu0  ;;  %3823 = vmax.xlane.f32.xlu1 %v3822_v27 }
 0x90b   : > { %v3795_v39 = vadd.f32 %v8087_v61, %v3794_v40  ;;  %v3831_v9 = vsel %vm2402_vm0, %v3803_v10, -inf }
 0x90c   : > { %v6202_v44 = vpop.f32.mrf.mxu0 }
 0x90d   : > { %v8093_v35 = vadd.f32 %v8090_v48, %v6202_v44  ;;  %v3825_v49 = vsel %vm2402_vm0, %v3795_v39, -inf }
 0x90e   : > { %v3807_v0 = vpop.f32.mrf.mxu0  ;;  %3826 = vmax.xlane.f32.xlu0 %v3825_v49  ;;  %3832 = vmax.xlane.f32.xlu1 %v3831_v9 }
 0x90f   : > { %v8098_v46 = vadd.f32 %v3807_v0, %v7684_v19  ;;  %v3840_v27 = vsel %vm2402_vm0, %v8093_v35, -inf }
 0x910   : > { %v6203_v19 = vpop.f32.mrf.mxu0 }
 0x911   : > { %v3834_v40 = vsel %vm2402_vm0, %v8098_v46, -inf  ;;  %v3819_v9 = vadd.f32 %v6203_v19, %v7705_v2 }
 0x912   : > { %3841 = vmax.xlane.f32.xlu0 %v3840_v27  ;;  %v3810_v44 = vpop.f32.mrf.mxu0 }
 0x913   : > { %v3811_v0 = vadd.f32 %v3810_v44, %v7708_v51 }
 0x916   : > { %3835 = vmax.xlane.f32.xlu0 %v3834_v40 }
 0x91f   : > { %4051 = vrot.lane.b32.xlu1 %v7625_v32, %s7226_s24  ;;  %v3843_v32 = vsel %vm2402_vm0, %v3819_v9, -inf }
 0x923   : > { %4049 = vrot.lane.b32.xlu1 %v7621_v14, %s7226_s24  ;;  %v3837_v14 = vsel %vm2402_vm0, %v3811_v0, -inf }
 0x92c   : > { %4053 = vrot.lane.b32.xlu0 %v7629_v53, %s7226_s24 }
 0x930   : > { %4035 = vrot.lane.b32.xlu0 %v7573_v26, %s7226_s24 }
 0x934   : > { %4039 = vrot.lane.b32.xlu0 %v8749_v59, %s7226_s24 }
 0x947   : > { %3844 = vmax.xlane.f32.xlu1 %v3843_v32 }
 0x94b   : > { %3838 = vmax.xlane.f32.xlu1 %v3837_v14 }
 0x95c   : > { %4047 = vrot.lane.b32.xlu1 %v3725_v42, %s7226_s24 }
 0x960   : > { %4037 = vrot.lane.b32.xlu1 %v8748_v31, %s7226_s24 }
 0x964   : > { %4041 = vrot.lane.b32.xlu1 %v8750_v63, %s7226_s24 }
 0x991   : > { %v3830_v26 = vpop.xlane.xlu0 %3829 }
 0x992   : > { %v3848_v53 = vsub.f32 %v3800_v24, %v3830_v26 }
 0x993   : > { %v3824_v2 = vpop.xlane.xlu1 %3823 }
 0x994   : > { %v3846_v59 = vsub.f32 %v3792_v12, %v3824_v2  ;;  %v3858_v49 = vmul.f32 1.442695, %v3848_v53 }
 0x996   : > { %v3854_v51 = vmul.f32 1.442695, %v3846_v59  ;;  %6897 = vpow2.f32 %v3858_v49 }
 0x997   : > { %v3827_v27 = vpop.xlane.xlu0 %3826  ;;  %v3833_v40 = vpop.xlane.xlu1 %3832 }
 0x998   : > { %v3847_v19 = vsub.f32 %v3795_v39, %v3827_v27  ;;  %v3849_v44 = vsub.f32 %v3803_v10, %v3833_v40  ;;  %6899 = vpow2.f32 %v3854_v51 }
 0x99a   : > { %v3856_v32 = vmul.f32 1.442695, %v3847_v19  ;;  %v3860_v14 = vmul.f32 1.442695, %v3849_v44 }
 0x99b   : > { %v3842_v42 = vpop.xlane.xlu0 %3841  ;;  %v4052_v2 = vpop.permute.xlu1 %4051 }
 0x99c   : > { %6901 = vpow2.f32 %v3856_v32  ;;  %v4074_v59 = vsel %vm2402_vm0, %v4052_v2, 0 }
 0x99d   : > { %6903 = vpow2.f32 %v3860_v14 }
 0x99f   : > { %v3836_v31 = vpop.xlane.xlu0 %3835  ;;  %v4050_v49 = vpop.permute.xlu1 %4049 }
 0x9a0   : > { %v4071_v51 = vsel %vm2402_vm0, %v4050_v49, 0  ;;  %v3850_v27 = vsub.f32 %v8098_v46, %v3836_v31 }
 0x9a2   : > { %v3862_v44 = vmul.f32 1.442695, %v3850_v27 }
 0x9a3   : > { %v4054_v50 = vpop.permute.xlu0 %4053  ;;  %v8124_v63 = vpop.eup %6897 }
 0x9a4   : > { %6312 = vmatprep.subr.msk.bf16.mxu1 %vm2402_vm0, %v4054_v50  ;;  %v4077_v53 = vsel %vm2402_vm0, %v4054_v50, 0  ;;  %v3852_v50 = vsub.f32 %v8093_v35, %v3842_v42  ;;  %6905 = vpow2.f32 %v3862_v44 }
 0x9a5   : > { %v8126_v12 = vpop.eup %6899 }
 0x9a9   : > { %v8128_v24 = vpop.eup %6901 }
 0x9aa   : > { %v8130_v26 = vpop.eup %6903  ;;  %v3894_v10 = vpack.c.bf16 %v8128_v24, %v8126_v12 }
 0x9ab   : > { %v3895_v39 = vpack.c.bf16 %v8130_v26, %v8124_v63 }
 0x9ac   : > { %6212 = vmatprep.mubr.msk.bf16.mxu1 %vm2402_vm0, %v3894_v10 }
 0x9ad   : > { %6213 = vmatmul.mubr.msk.bf16.vlgmr.msra.gmra.mxu1 %vm2402_vm0, %v3895_v39  ;;  %v3866_v39 = vmul.f32 1.442695, %v3852_v50 }
 0x9ae   : > { %6221 = vmatpush3.bf16.xpose.msra.mxu1 %v4077_v53 }
 0x9af   : > { %6313 = vmatprep.subr.msk.bf16.mxu1 %vm2402_vm0, %v4052_v2 }
 0x9b1   : > { %v8147_v46 = vpop.eup %6905 }
 0x9b6   : > { %6223 = vmatpush3.bf16.xpose.msra.mxu1 %v4074_v59 }
 0x9b7   : > { %6314 = vmatprep.subr.msk.bf16.mxu1 %vm2402_vm0, %v4050_v49  ;;  %v4036_v49 = vpop.permute.xlu0 %4035 }
 0x9bb   : > { %v4040_v27 = vpop.permute.xlu0 %4039 }
 0x9be   : > { %6225 = vmatpush3.bf16.xpose.msra.mxu1 %v4071_v51 }
 0x9d0   : > { %v3845_v40 = vpop.xlane.xlu1 %3844 }
 0x9d1   : > { %v3853_v19 = vsub.f32 %v3819_v9, %v3845_v40 }
 0x9d3   : > { %v3868_v32 = vmul.f32 1.442695, %v3853_v19  ;;  %v8759_v19 = vmov 0  }
 0x9d4   : > { %v3839_v14 = vpop.xlane.xlu1 %3838 }
 0x9d5   : > { %v3851_v10 = vsub.f32 %v3811_v0, %v3839_v14  ;;  %6907 = vpow2.f32 %v3868_v32 }
 0x9d7   : > { %v3864_v53 = vmul.f32 1.442695, %v3851_v10 }
 0x9d8   : > { %v4048_v2 = vpop.permute.xlu1 %4047 }
 0x9d9   : > { %6909 = vpow2.f32 %v3864_v53  ;;  %v4068_v59 = vsel %vm2402_vm0, %v4048_v2, 0  ;;  %6315 = vmatprep.subr.msk.bf16.mxu1 %vm2402_vm0, %v4048_v2 }
 0x9da   : > { %6911 = vpow2.f32 %v3866_v39  ;;  %6227 = vmatpush3.bf16.xpose.msra.mxu1 %v4068_v59 }
 0x9dc   : > { %v4038_v51 = vpop.permute.xlu1 %4037 }
 0x9e0   : > { %v4042_v40 = vpop.permute.xlu1 %4041 }
 0x9e2   : > { %v8149_v9 = vpop.eup %6907 }
 0x9e6   : > { %v8151_v35 = vpop.eup %6909 }
 0x9e7   : > { %v8153_v42 = vpop.eup %6911  ;;  %v3896_v0 = vpack.c.bf16 %v8151_v35, %v8147_v46 }
 0x9e8   : > { %v3897_v31 = vpack.c.bf16 %v8149_v9, %v8153_v42 }
 0x9e9   : > { %6216 = vmatprep.mubr.msk.bf16.mxu1 %vm2402_vm0, %v3896_v0 }
 0x9ea   : > { %6217 = vmatmul.mubr.msk.bf16.gmra.mxu1 %vm2402_vm0, %v3897_v31 }
 0x9eb   : > { %6228 = vmatprep.mubr.msk.bf16.mxu1 %vm2402_vm0, %v4036_v49 }
 0x9f2   : > { %6229 = vmatmul.mubr.msk.bf16.vlgmr.msra.gmra.mxu1 %vm2402_vm0, %v4038_v51 }
 0x9f3   : > { %6232 = vmatprep.mubr.msk.bf16.mxu1 %vm2402_vm0, %v4040_v27 }
 0x9fa   : > { %6233 = vmatmul.mubr.msk.bf16.gmra.mxu1 %vm2402_vm0, %v4042_v40 }
 0x9fb   : > { %5067 = vmatprep.mubr.bf16.mxu1 %v8759_v19 }
 0xa6d   : > { %v8166_v50 = vpop.f32.mrf.mxu1 }
 0xa6f   : > { %v8168_v44 = vpop.f32.mrf.mxu1 }
 0xa71   : > { %v8170_v32 = vpop.f32.mrf.mxu1 }
 0xa73   : > { %v8172_v14 = vpop.f32.mrf.mxu1 }
 0xaaa   : > { %v8174_v10 = vpop.f32.mrf.mxu1 }
 0xaac   : > { %v8176_v39 = vpop.f32.mrf.mxu1 }
 0xaae   : > { %v8178_v53 = vpop.f32.mrf.mxu1 }
 0xab0   : > { %v8180_v2 = vpop.f32.mrf.mxu1 }
 0xab2   : > { %v6230_v59 = vpop.f32.mrf.mxu1 }
 0xab3   : > { %v8183_v0 = vadd.f32 %v8076_v58, %v6230_v59 }
 0xab4   : > { %v4113_v31 = vpop.f32.mrf.mxu1 }
 0xab5   : > { %v8186_v49 = vadd.f32 %v8079_v62, %v4113_v31  ;;  %v4150_v51 = vsel %vm2402_vm0, %v8183_v0, -inf }
 0xab6   : > { %4151 = vmax.xlane.f32.xlu0 %v4150_v51  ;;  %v6231_v27 = vpop.f32.mrf.mxu1 }
 0xab7   : > { %v8191_v19 = vadd.f32 %v8083_v30, %v6231_v27  ;;  %v4144_v58 = vsel %vm2402_vm0, %v8186_v49, -inf  ;;  %v7030_v27 = vld [vmem:[#allocation6 + $0x20] sm:$0xff] }
 0xab8   : > { %v4116_v40 = vpop.f32.mrf.mxu1 }
 0xab9   : > { %v8194_v47 = vadd.f32 %v8087_v61, %v4116_v40  ;;  %v4153_v51 = vsel %vm2402_vm0, %v8191_v19, -inf }
 0xaba   : > { %4145 = vmax.xlane.f32.xlu0 %v4144_v58  ;;  %v6234_v59 = vpop.f32.mrf.mxu1 }
 0xabb   : > { %v4147_v62 = vsel %vm2402_vm0, %v8194_v47, -inf  ;;  %v8201_v31 = vadd.f32 %v8090_v48, %v6234_v59  ;;  %v7031_v59 = vld [vmem:[#allocation6 + $0x38] sm:$0xff] }
 0xabc   : > { %4148 = vmax.xlane.f32.xlu1 %v4147_v62  ;;  %v4129_v30 = vpop.f32.mrf.mxu1 }
 0xabd   : > { %v8205_v61 = vadd.f32 %v7030_v27, %v4129_v30  ;;  %v4162_v40 = vsel %vm2402_vm0, %v8201_v31, -inf  ;;  %v7032_v30 = vld [vmem:[#allocation6 + $0x28] sm:$0xff] }
 0xabe   : > { %4154 = vmax.xlane.f32.xlu0 %v4153_v51  ;;  %v6235_v48 = vpop.f32.mrf.mxu1 }
 0xabf   : > { %v4156_v58 = vsel %vm2402_vm0, %v8205_v61, -inf  ;;  %v8217_v62 = vadd.f32 %v7031_v59, %v6235_v48  ;;  %v3534_v48 = vsel %vm2402_vm0, %v8011_v57, 0.0  ;;  %v2875_v59 = vsel %vm2402_vm0, %v7827_v18, 0.0 }
 0xac0   : > { %v4132_v51 = vpop.f32.mrf.mxu1  ;;  %v3870_v57 = vsel %vm2402_vm0, %v8126_v12, 0.0  ;;  %v3882_v18 = vsel %vm2402_vm0, %v8147_v46, 0.0  ;;  %v3531_v12 = vsel %vm2402_vm0, %v8009_v11, 0.0  ;;  %v2549_v46 = vsel %vm2402_vm0, %v7724_v25, 0.0 }
 0xac1   : > { %v8219_v27 = vadd.f32 %v7032_v30, %v4132_v51  ;;  %v2555_v11 = vsel %vm2402_vm0, %v7750_v13, 0.0  ;;  %v2878_v25 = vsel %vm2402_vm0, %v7833_v1, 0.0  ;;  %v3543_v51 = vsel %vm2402_vm0, %v8031_v23, 0.0 }
 0xac2   : > { %4163 = vmax.xlane.f32.xlu0 %v4162_v40  ;;  %v4165_v40 = vsel %vm2402_vm0, %v8217_v62, -inf  ;;  %v2884_v13 = vsel %vm2402_vm0, %v7829_v28, 0.0  ;;  %v3549_v23 = vsel %vm2402_vm0, %v8029_v56, 0.0  ;;  %v3873_v28 = vsel %vm2402_vm0, %v8128_v24, 0.0 }
 0xac3   : > { %v3879_v56 = vsel %vm2402_vm0, %v8130_v26, 0.0 }
 0xac6   : > { %4157 = vmax.xlane.f32.xlu0 %v4156_v58  ;;  %v2869_v58 = vsel %vm2402_vm0, %v7811_v15, 0.0  ;;  %v3546_v15 = vsel %vm2402_vm0, %v8033_v6, 0.0  ;;  %v2866_v6 = vsel %vm2402_vm0, %v7809_v33, 0.0  ;;  %v3212_v33 = vsel %vm2402_vm0, %v7922_v22, 0.0 }
 0xacd   : > { %4228 = vrot.lane.b32.xlu1 %v7659_v21, %s7226_s24  ;;  %v4159_v21 = vsel %vm2402_vm0, %v8219_v27, -inf }
 0xad1   : > { %4226 = vrot.lane.b32.xlu1 %v7657_v60, %s7226_s24  ;;  %v2863_v60 = vsel %vm2402_vm0, %v7807_v29, 0.0  ;;  %v3540_v29 = vsel %vm2402_vm0, %v8027_v36, 0.0  ;;  %v2540_v36 = vsel %vm2402_vm0, %v7722_v3, 0.0  ;;  %v2872_v3 = vsel %vm2402_vm0, %v7815_v38, 0.0 }
 0xadc   : > { %4230 = vrot.lane.b32.xlu0 %v7661_v52, %s7226_s24  ;;  %v3528_v52 = vsel %vm2402_vm0, %v8007_v41, 0.0  ;;  %v2881_v41 = vsel %vm2402_vm0, %v7835_v20, 0.0  ;;  %v3888_v20 = vsel %vm2402_vm0, %v8153_v42, 0.0 }
 0xaf5   : > { %4166 = vmax.xlane.f32.xlu1 %v4165_v40 }
 0xaf9   : > { %4160 = vmax.xlane.f32.xlu1 %v4159_v21 }
 0xafb   : > { %2864 = vadd.xlane.f32.xlu0 %v2863_v60 }
 0xaff   : > { %3529 = vadd.xlane.f32.xlu0 %v3528_v52 }
 0xb03   : > { %2870 = vadd.xlane.f32.xlu0 %v2869_v58 }
 0xb07   : > { %3535 = vadd.xlane.f32.xlu0 %v3534_v48 }
 0xb0a   : > { %4224 = vrot.lane.b32.xlu1 %v7652_v55, %s7226_s24  ;;  %v3876_v55 = vsel %vm2402_vm0, %v8124_v63, 0.0  ;;  %v3206_v63 = vsel %vm2402_vm0, %v7924_v8, 0.0  ;;  %v3537_v8 = vsel %vm2402_vm0, %v8015_v43, 0.0 }
 0xb0b   : > { %2876 = vadd.xlane.f32.xlu0 %v2875_v59 }
 0xb0f   : > { %3541 = vadd.xlane.f32.xlu0 %v3540_v29 }
 0xb13   : > { %2882 = vadd.xlane.f32.xlu0 %v2881_v41 }
 0xb17   : > { %3547 = vadd.xlane.f32.xlu0 %v3546_v15 }
 0xb1b   : > { %3871 = vadd.xlane.f32.xlu0 %v3870_v57 }
 0xb1f   : > { %3877 = vadd.xlane.f32.xlu0 %v3876_v55 }
 0xb23   : > { %3883 = vadd.xlane.f32.xlu0 %v3882_v18 }
 0xb27   : > { %3889 = vadd.xlane.f32.xlu0 %v3888_v20 }
 0xb2b   : > { %2541 = vadd.xlane.f32.xlu0 %v2540_v36  ;;  %v3891_v36 = vsel %vm2402_vm0, %v8149_v9, 0.0  ;;  %v3209_v9 = vsel %vm2402_vm0, %v7926_v17, 0.0  ;;  %v8763_v17 = vld [vmem:[#allocation24_spill] sm:$0xff] }
 0xb2e   : > { %2867 = vadd.xlane.f32.xlu1 %v2866_v6  ;;  %v3218_v6 = vsel %vm2402_vm0, %v7946_v16, 0.0 }
 0xb2f   : > { %3207 = vadd.xlane.f32.xlu0 %v3206_v63 }
 0xb32   : > { %3532 = vadd.xlane.f32.xlu1 %v3531_v12 }
 0xb33   : > { %2550 = vadd.xlane.f32.xlu0 %v2549_v46 }
 0xb36   : > { %2873 = vadd.xlane.f32.xlu1 %v2872_v3 }
 0xb37   : > { %3213 = vadd.xlane.f32.xlu0 %v3212_v33 }
 0xb3a   : > { %3538 = vadd.xlane.f32.xlu1 %v3537_v8  ;;  %v8761_v8 = vld [vmem:[#allocation23_spill] sm:$0xff] }
 0xb3b   : > { %2556 = vadd.xlane.f32.xlu0 %v2555_v11  ;;  %v2546_v11 = vsel %vm2402_vm0, %v8761_v8, 0.0 }
 0xb3e   : > { %2879 = vadd.xlane.f32.xlu1 %v2878_v25 }
 0xb3f   : > { %v4152_v42 = vpop.xlane.xlu0 %4151 }
 0xb40   : > { %v4170_v38 = vsub.f32 %v8183_v0, %v4152_v42  ;;  %v3215_v42 = vsel %vm2402_vm0, %v7928_v37, 0.0 }
 0xb42   : > { %v4180_v22 = vmul.f32 1.442695, %v4170_v38  ;;  %3544 = vadd.xlane.f32.xlu1 %v3543_v51  ;;  %v8762_v38 = vld [vmem:[#allocation25_spill] sm:$0xff] }
 0xb43   : > { %v4146_v30 = vpop.xlane.xlu0 %4145  ;;  %v2561_v51 = vsel %vm2402_vm0, %v8762_v38, 0.0 }
 0xb44   : > { %6913 = vpow2.f32 %v4180_v22  ;;  %v4168_v43 = vsub.f32 %v8186_v49, %v4146_v30  ;;  %v2552_v22 = vsel %vm2402_vm0, %v8763_v17, 0.0  ;;  %v3221_v30 = vsel %vm2402_vm0, %v7950_v4, 0.0  ;;  %v8765_v17 = vld [vmem:[#allocation28_spill] sm:$0xff] }
 0xb45   : > { %v4149_v40 = vpop.xlane.xlu1 %4148 }
 0xb46   : > { %v4176_v21 = vmul.f32 1.442695, %v4168_v43  ;;  %v4169_v1 = vsub.f32 %v8194_v47, %v4149_v40  ;;  %2885 = vadd.xlane.f32.xlu1 %v2884_v13  ;;  %v8764_v40 = vld [vmem:[#allocation26_spill] sm:$0xff] }
 0xb47   : > { %v4155_v60 = vpop.xlane.xlu0 %4154  ;;  %v2558_v13 = vsel %vm2402_vm0, %v8764_v40, 0.0 }
 0xb48   : > { %6915 = vpow2.f32 %v4176_v21  ;;  %v4178_v0 = vmul.f32 1.442695, %v4169_v1  ;;  %v4171_v52 = vsub.f32 %v8191_v19, %v4155_v60 }
 0xb49   : > { %v4229_v15 = vpop.permute.xlu1 %4228 }
 0xb4a   : > { %6917 = vpow2.f32 %v4178_v0  ;;  %v4182_v58 = vmul.f32 1.442695, %v4171_v52  ;;  %3550 = vadd.xlane.f32.xlu1 %v3549_v23 }
 0xb4b   : > { %v4164_v49 = vpop.xlane.xlu0 %4163 }
 0xb4c   : > { %v4174_v48 = vsub.f32 %v8201_v31, %v4164_v49  ;;  %6919 = vpow2.f32 %v4182_v58 }
 0xb4d   : > { %v4227_v20 = vpop.permute.xlu1 %4226 }
 0xb4e   : > { %v4188_v47 = vmul.f32 1.442695, %v4174_v48  ;;  %3874 = vadd.xlane.f32.xlu1 %v3873_v28 }
 0xb4f   : > { %v4158_v59 = vpop.xlane.xlu0 %4157 }
 0xb50   : > { %v4172_v29 = vsub.f32 %v8205_v61, %v4158_v59  ;;  %6921 = vpow2.f32 %v4188_v47  ;;  %v3885_v61 = vsel %vm2402_vm0, %v8151_v35, 0.0  ;;  %v8760_v35 = vld [vmem:[#allocation22_spill] sm:$0xff] }
 0xb51   : > { %v8285_v41 = vpop.eup %6913  ;;  %v2543_v12 = vsel %vm2402_vm0, %v8760_v35, 0.0 }
 0xb52   : > { %v4184_v19 = vmul.f32 1.442695, %v4172_v29  ;;  %3880 = vadd.xlane.f32.xlu1 %v3879_v56  ;;  %v4198_v31 = vsel %vm2402_vm0, %v8285_v41, 0.0 }
 0xb53   : > { %4199 = vadd.xlane.f32.xlu0 %v4198_v31  ;;  %v4231_v24 = vpop.permute.xlu0 %4230 }
 0xb54   : > { %6236 = vmatprep.subr.bf16.mxu0 %v4231_v24  ;;  %6923 = vpow2.f32 %v4184_v19 }
 0xb55   : > { %v6916_v57 = vpop.eup %6915  ;;  %6237 = vmatpush3.bf16.msra.mxu0 %v4231_v24 }
 0xb56   : > { %3886 = vadd.xlane.f32.xlu1 %v3885_v61  ;;  %6238 = vmatprep.subr.bf16.mxu0 %v4229_v15  ;;  %v4192_v26 = vsel %vm2402_vm0, %v6916_v57, 0.0 }
 0xb57   : > { %v6918_v55 = vpop.eup %6917  ;;  %4193 = vadd.xlane.f32.xlu0 %v4192_v26 }
 0xb58   : > { %v4216_v18 = vpack.c.bf16 %v6918_v55, %v6916_v57  ;;  %v4195_v43 = vsel %vm2402_vm0, %v6918_v55, 0.0 }
 0xb59   : > { %6239 = vmatpush3.bf16.msra.mxu0 %v4229_v15  ;;  %v6920_v63 = vpop.eup %6919 }
 0xb5a   : > { %3892 = vadd.xlane.f32.xlu1 %v3891_v36  ;;  %6240 = vmatprep.subr.bf16.mxu0 %v4227_v20  ;;  %v4201_v46 = vsel %vm2402_vm0, %v6920_v63, 0.0  ;;  %v4217_v49 = vpack.c.bf16 %v6920_v63, %v8285_v41 }
 0xb5b   : > { %6244 = vmatprep.mubr.msk.bf16.mxu0 %vm2402_vm0, %v4216_v18  ;;  %3219 = vadd.xlane.f32.xlu0 %v3218_v6 }
 0xb5d   : > { %6241 = vmatpush3.bf16.msra.mxu0 %v4227_v20  ;;  %v6922_v3 = vpop.eup %6921 }
 0xb5e   : > { %2544 = vadd.xlane.f32.xlu1 %v2543_v12  ;;  %v4210_v33 = vsel %vm2402_vm0, %v6922_v3, 0.0 }
 0xb5f   : > { %4202 = vadd.xlane.f32.xlu0 %v4201_v46 }
 0xb61   : > { %v6924_v16 = vpop.eup %6923 }
 0xb62   : > { %3210 = vadd.xlane.f32.xlu1 %v3209_v9  ;;  %v4204_v25 = vsel %vm2402_vm0, %v6924_v16, 0.0 }
 0xb63   : > { %4211 = vadd.xlane.f32.xlu0 %v4210_v33 }
 0xb66   : > { %2547 = vadd.xlane.f32.xlu1 %v2546_v11 }
 0xb67   : > { %4205 = vadd.xlane.f32.xlu0 %v4204_v25 }
 0xb6a   : > { %3216 = vadd.xlane.f32.xlu1 %v3215_v42 }
 0xb6b   : > { %2562 = vadd.xlane.f32.xlu0 %v2561_v51 }
 0xb6e   : > { %2553 = vadd.xlane.f32.xlu1 %v2552_v22 }
 0xb72   : > { %3222 = vadd.xlane.f32.xlu1 %v3221_v30 }
 0xb76   : > { %4196 = vadd.xlane.f32.xlu1 %v4195_v43 }
 0xb7a   : > { %2559 = vadd.xlane.f32.xlu1 %v2558_v13 }
 0xb7e   : > { %v4167_v37 = vpop.xlane.xlu1 %4166 }
 0xb7f   : > { %v4175_v21 = vsub.f32 %v8217_v62, %v4167_v37 }
 0xb81   : > { %v4190_v1 = vmul.f32 1.442695, %v4175_v21 }
 0xb82   : > { %v4161_v60 = vpop.xlane.xlu1 %4160 }
 0xb83   : > { %6925 = vpow2.f32 %v4190_v1  ;;  %v4173_v0 = vsub.f32 %v8219_v27, %v4161_v60  ;;  %v8766_v1 = vld [vmem:[#allocation29_spill] sm:$0xff] }
 0xb84   : > { %v8321_v52 = vpop.xlane.xlu0 %2864 }
 0xb85   : > { %v4186_v23 = vmul.f32 1.442695, %v4173_v0 }
 0xb86   : > { %v4225_v4 = vpop.permute.xlu1 %4224 }
 0xb87   : > { %6927 = vpow2.f32 %v4186_v23  ;;  %6242 = vmatprep.subr.bf16.mxu0 %v4225_v4 }
 0xb88   : > { %v8323_v58 = vpop.xlane.xlu0 %3529  ;;  %6243 = vmatpush3.bf16.msra.mxu0 %v4225_v4 }
 0xb8b   : > { %6245 = vmatmul.mubr.msk.bf16.vlgmr.msra.gmra.mxu0 %vm2402_vm0, %v4217_v49 }
 0xb8c   : > { %v8327_v48 = vpop.xlane.xlu0 %2870 }
 0xb90   : > { %v6926_v62 = vpop.eup %6925  ;;  %v8329_v28 = vpop.xlane.xlu0 %3535 }
 0xb91   : > { %v4213_v27 = vsel %vm2402_vm0, %v6926_v62, 0.0  ;;  %v4219_v19 = vpack.c.bf16 %v6926_v62, %v6922_v3 }
 0xb92   : > { %4214 = vadd.xlane.f32.xlu1 %v4213_v27 }
 0xb94   : > { %v6928_v47 = vpop.eup %6927  ;;  %v8332_v59 = vpop.xlane.xlu0 %2876 }
 0xb95   : > { %v4207_v29 = vsel %vm2402_vm0, %v6928_v47, 0.0  ;;  %v4218_v56 = vpack.c.bf16 %v6928_v47, %v6924_v16  ;;  %v8767_v47 = vld [vmem:[#allocation34_spill] sm:$0xff] }
 0xb96   : > { %4208 = vadd.xlane.f32.xlu1 %v4207_v29 }
 0xb97   : > { %6248 = vmatprep.mubr.msk.bf16.mxu0 %vm2402_vm0, %v4218_v56 }
 0xb98   : > { %v8336_v41 = vpop.xlane.xlu0 %3541  ;;  %6249 = vmatmul.mubr.msk.bf16.gmra.mxu0 %vm2402_vm0, %v4219_v19 }
 0xb9c   : > { %v8339_v31 = vpop.xlane.xlu0 %2882 }
 0xba0   : > { %v8341_v15 = vpop.xlane.xlu0 %3547 }
 0xba4   : > { %v3872_v24 = vpop.xlane.xlu0 %3871 }
 0xba5   : > { %6929 = vrcp.f32 %v3872_v24 }
 0xba8   : > { %v3878_v57 = vpop.xlane.xlu0 %3877 }
 0xba9   : > { %6931 = vrcp.f32 %v3878_v57 }
 0xbac   : > { %v3884_v61 = vpop.xlane.xlu0 %3883 }
 0xbad   : > { %6933 = vrcp.f32 %v3884_v61 }
 0xbb0   : > { %v3890_v26 = vpop.xlane.xlu0 %3889 }
 0xbb1   : > { %6935 = vrcp.f32 %v3890_v26 }
 0xbb2   : > { %v6930_v55 = vpop.eup %6929 }
 0xbb3   : > { %v3983_v18 = vmul.f32 %v6930_v55, %v8168_v44 }
 0xbb4   : > { %v2542_v20 = vpop.xlane.xlu0 %2541 }
 0xbb5   : > { %6937 = vrcp.f32 %v2542_v20  ;;  %v5820_v36 = vpack.c.bf16 %v3983_v18, %v3983_v18 }
 0xbb6   : > { %v6932_v6 = vpop.eup %6931 }
 0xbb7   : > { %v8344_v63 = vpop.xlane.xlu1 %2867  ;;  %v3985_v35 = vmul.f32 %v6932_v6, %v8166_v50  ;;  %4023 = vst.msk [vmem:[#allocation2 + $0x8] sm:$0xf] %vm2693_vm1, %v5820_v36 }
 0xbb8   : > { %v3208_v12 = vpop.xlane.xlu0 %3207 }
 0xbb9   : > { %6939 = vrcp.f32 %v3208_v12  ;;  %v5822_v46 = vpack.c.bf16 %v3985_v35, %v3985_v35 }
 0xbba   : > { %v6934_v3 = vpop.eup %6933 }
 0xbbb   : > { %v8348_v9 = vpop.xlane.xlu1 %3532  ;;  %4025 = vst.msk [vmem:[#allocation2 + $0x20] sm:$0xf] %vm2693_vm1, %v5822_v46  ;;  %v3987_v44 = vmul.f32 %v6934_v3, %v8176_v39 }
 0xbbc   : > { %v2551_v33 = vpop.xlane.xlu0 %2550 }
 0xbbd   : > { %6941 = vrcp.f32 %v2551_v33  ;;  %v5824_v16 = vpack.c.bf16 %v3987_v44, %v3987_v44 }
 0xbbe   : > { %v6936_v8 = vpop.eup %6935 }
 0xbbf   : > { %v8352_v11 = vpop.xlane.xlu1 %2873  ;;  %4027 = vst.msk [vmem:[#allocation2 + $0x38] sm:$0xf] %vm2693_vm1, %v5824_v16  ;;  %v3989_v50 = vmul.f32 %v6936_v8, %v8174_v10 }
 0xbc0   : > { %v3214_v25 = vpop.xlane.xlu0 %3213 }
 0xbc1   : > { %6943 = vrcp.f32 %v3214_v25  ;;  %v5826_v42 = vpack.c.bf16 %v3989_v50, %v3989_v50 }
 0xbc2   : > { %v6938_v38 = vpop.eup %6937 }
 0xbc3   : > { %v8356_v51 = vpop.xlane.xlu1 %3538  ;;  %4029 = vst.msk [vmem:[#allocation2 + $0x50] sm:$0xf] %vm2693_vm1, %v5826_v42  ;;  %v2653_v39 = vmul.f32 %v6938_v38, %v8765_v17 }
 0xbc4   : > { %v2557_v22 = vpop.xlane.xlu0 %2556 }
 0xbc5   : > { %6945 = vrcp.f32 %v2557_v22  ;;  %v5788_v30 = vpack.c.bf16 %v2653_v39, %v2653_v39 }
 0xbc6   : > { %v6940_v43 = vpop.eup %6939 }
 0xbc7   : > { %v8360_v40 = vpop.xlane.xlu1 %2879  ;;  %v3319_v13 = vmul.f32 %v6940_v43, %v7973_v54  ;;  %2694 = vst.msk [vmem:[#allocation2] sm:$0xf] %vm2693_vm1, %v5788_v30 }
 0xbc9   : > { %v5804_v10 = vpack.c.bf16 %v3319_v13, %v3319_v13  ;;  %v8768_v13 = vld [vmem:[#allocation30_spill] sm:$0xff] }
 0xbca   : > { %v6942_v37 = vpop.eup %6941 }
 0xbcb   : > { %v8364_v21 = vpop.xlane.xlu1 %3544  ;;  %3359 = vst.msk [vmem:[#allocation2 + $0x4] sm:$0xf] %vm2693_vm1, %v5804_v10  ;;  %v2656_v60 = vmul.f32 %v6942_v37, %v8766_v1 }
 0xbcd   : > { %v5791_v0 = vpack.c.bf16 %v2656_v60, %v2656_v60 }
 0xbce   : > { %v6944_v23 = vpop.eup %6943 }
 0xbcf   : > { %v8368_v4 = vpop.xlane.xlu1 %2885  ;;  %v3321_v49 = vmul.f32 %v6944_v23, %v7971_v7  ;;  %2697 = vst.msk [vmem:[#allocation2 + $0x24] sm:$0xf] %vm2693_vm1, %v5791_v0 }
 0xbd1   : > { %v5806_v62 = vpack.c.bf16 %v3321_v49, %v3321_v49  ;;  %v8769_v49 = vld [vmem:[#allocation27_spill] sm:$0xff] }
 0xbd2   : > { %v6946_v54 = vpop.eup %6945 }
 0xbd3   : > { %v8372_v27 = vpop.xlane.xlu1 %3550  ;;  %3361 = vst.msk [vmem:[#allocation2 + $0x1c] sm:$0xf] %vm2693_vm1, %v5806_v62  ;;  %v2658_v29 = vmul.f32 %v6946_v54, %v8767_v47 }
 0xbd5   : > { %v5793_v56 = vpack.c.bf16 %v2658_v29, %v2658_v29 }
 0xbd7   : > { %v3875_v19 = vpop.xlane.xlu1 %3874  ;;  %2699 = vst.msk [vmem:[#allocation2 + $0x3c] sm:$0xf] %vm2693_vm1, %v5793_v56 }
 0xbd8   : > { %6947 = vrcp.f32 %v3875_v19 }
 0xbdb   : > { %v3881_v24 = vpop.xlane.xlu1 %3880 }
 0xbdc   : > { %6949 = vrcp.f32 %v3881_v24  ;;  %v8377_v57 = vpop.xlane.xlu0 %4199 }
 0xbdf   : > { %v3887_v7 = vpop.xlane.xlu1 %3886 }
 0xbe0   : > { %6951 = vrcp.f32 %v3887_v7  ;;  %v8379_v61 = vpop.xlane.xlu0 %4193  ;;  %v8770_v7 = vld [vmem:[#allocation33_spill] sm:$0xff] }
 0xbe3   : > { %v3893_v26 = vpop.xlane.xlu1 %3892 }
 0xbe4   : > { %6953 = vrcp.f32 %v3893_v26  ;;  %v3220_v55 = vpop.xlane.xlu0 %3219 }
 0xbe5   : > { %v6948_v18 = vpop.eup %6947  ;;  %6955 = vrcp.f32 %v3220_v55 }
 0xbe6   : > { %v3984_v20 = vmul.f32 %v6948_v18, %v8172_v14 }
 0xbe7   : > { %v2545_v36 = vpop.xlane.xlu1 %2544 }
 0xbe8   : > { %6957 = vrcp.f32 %v2545_v36  ;;  %v8382_v6 = vpop.xlane.xlu0 %4202  ;;  %v5821_v35 = vpack.c.bf16 %v3984_v20, %v3984_v20  ;;  %v8771_v20 = vld [vmem:[#allocation32_spill] sm:$0xff] }
 0xbe9   : > { %v6950_v12 = vpop.eup %6949 }
 0xbea   : > { %v3986_v46 = vmul.f32 %v6950_v12, %v8170_v32  ;;  %4024 = vst.msk [vmem:[#allocation2 + $0x14] sm:$0xf] %vm2693_vm1, %v5821_v35 }
 0xbeb   : > { %v3211_v3 = vpop.xlane.xlu1 %3210 }
 0xbec   : > { %6959 = vrcp.f32 %v3211_v3  ;;  %v8386_v44 = vpop.xlane.xlu0 %4211  ;;  %v5823_v33 = vpack.c.bf16 %v3986_v46, %v3986_v46  ;;  %v8772_v46 = vld [vmem:[#allocation47_spill] sm:$0xff] }
 0xbed   : > { %v6952_v16 = vpop.eup %6951 }
 0xbee   : > { %4026 = vst.msk [vmem:[#allocation2 + $0x2c] sm:$0xf] %vm2693_vm1, %v5823_v33  ;;  %v3988_v14 = vmul.f32 %v6952_v16, %v8180_v2  ;;  %v8773_v16 = vld [vmem:[#allocation31_spill] sm:$0xff] }
 0xbef   : > { %v2548_v8 = vpop.xlane.xlu1 %2547 }
 0xbf0   : > { %6961 = vrcp.f32 %v2548_v8  ;;  %v8390_v50 = vpop.xlane.xlu0 %4205  ;;  %v5825_v25 = vpack.c.bf16 %v3988_v14, %v3988_v14 }
 0xbf1   : > { %v6954_v42 = vpop.eup %6953 }
 0xbf2   : > { %v6956_v38 = vpop.eup %6955  ;;  %4028 = vst.msk [vmem:[#allocation2 + $0x44] sm:$0xf] %vm2693_vm1, %v5825_v25  ;;  %v3990_v32 = vmul.f32 %v6954_v42, %v8178_v53  ;;  %v6721_v25 = vld [vmem:[#allocation9 + $0x228] ss:$12 sps:$4 sm:$0xff]   ;;  %v6723_v42 = vld [vmem:[#allocation9 + $0x22c] ss:$12 sps:$4 sm:$0xff]  }
 0xbf3   : > { %v3217_v17 = vpop.xlane.xlu1 %3216  ;;  %v3323_v39 = vmul.f32 %v6956_v38, %v7981_v34  ;;  %5035 = vmatprep.subr.bf16.mxu1 %v6723_v42  ;;  %v6724_v38 = vld [vmem:[#allocation9 + $0x210] ss:$12 sps:$4 sm:$0xff]   ;;  %v6764_v42 = vld [vmem:[#allocation9 + $0x34] ss:$12 sps:$4 sm:$0xff]  }
 0xbf4   : > { %6963 = vrcp.f32 %v3217_v17  ;;  %v2563_v22 = vpop.xlane.xlu0 %2562  ;;  %v5827_v30 = vpack.c.bf16 %v3990_v32, %v3990_v32  ;;  %5036 = vmatpush1.bf16.msra.mxu1 %v6721_v25  ;;  %v6726_v32 = vld [vmem:[#allocation9 + $0x214] ss:$12 sps:$4 sm:$0xff]   ;;  %v6729_v17 = vld [vmem:[#allocation9 + $0x1fc] ss:$12 sps:$4 sm:$0xff]  }
 0xbf5   : > { %v6958_v43 = vpop.eup %6957  ;;  %6965 = vrcp.f32 %v2563_v22  ;;  %v5808_v2 = vpack.c.bf16 %v3323_v39, %v3323_v39  ;;  %5037 = vmatprep.subr.bf16.mxu1 %v6726_v32  ;;  %v6727_v39 = vld [vmem:[#allocation9 + $0x1f8] ss:$12 sps:$4 sm:$0xff]   ;;  %v6759_v25 = vld [vmem:[#allocation9 + $0x48] ss:$12 sps:$4 sm:$0xff]  }
 0xbf6   : > { %4030 = vst.msk [vmem:[#allocation2 + $0x5c] sm:$0xf] %vm2693_vm1, %v5827_v30  ;;  %v2654_v10 = vmul.f32 %v6958_v43, %v8768_v13  ;;  %v6732_v22 = vld [vmem:[#allocation9 + $0x1e4] ss:$12 sps:$4 sm:$0xff]   ;;  %v6730_v30 = vld [vmem:[#allocation9 + $0x1e0] ss:$12 sps:$4 sm:$0xff]  }
 0xbf7   : > { %v2554_v37 = vpop.xlane.xlu1 %2553  ;;  %3363 = vst.msk [vmem:[#allocation2 + $0x34] sm:$0xf] %vm2693_vm1, %v5808_v2  ;;  %v6733_v43 = vld [vmem:[#allocation9 + $0x1c8] ss:$12 sps:$4 sm:$0xff]   ;;  %v6735_v2 = vld [vmem:[#allocation9 + $0x1cc] ss:$12 sps:$4 sm:$0xff]  }
 0xbf8   : > { %6967 = vrcp.f32 %v2554_v37  ;;  %v5789_v1 = vpack.c.bf16 %v2654_v10, %v2654_v10  ;;  %5038 = vmatpush1.bf16.msra.mxu1 %v6724_v38  ;;  %v6736_v13 = vld [vmem:[#allocation9 + $0x1b0] ss:$12 sps:$4 sm:$0xff]   ;;  %v6738_v10 = vld [vmem:[#allocation9 + $0x1b4] ss:$12 sps:$4 sm:$0xff]  }
 0xbf9   : > { %v6960_v60 = vpop.eup %6959  ;;  %5039 = vmatprep.subr.bf16.mxu1 %v6729_v17  ;;  %v6762_v38 = vld [vmem:[#allocation9 + $0x30] ss:$12 sps:$4 sm:$0xff]  }
 0xbfa   : > { %2695 = vst.msk [vmem:[#allocation2 + $0xc] sm:$0xf] %vm2693_vm1, %v5789_v1  ;;  %v3320_v34 = vmul.f32 %v6960_v60, %v7977_v5  ;;  %v6739_v60 = vld [vmem:[#allocation9 + $0x198] ss:$12 sps:$4 sm:$0xff]   ;;  %v6767_v17 = vld [vmem:[#allocation9 + $0x1c] ss:$12 sps:$4 sm:$0xff]  }
 0xbfb   : > { %v3223_v53 = vpop.xlane.xlu1 %3222 }
 0xbfc   : > { %6969 = vrcp.f32 %v3223_v53  ;;  %v5805_v0 = vpack.c.bf16 %v3320_v34, %v3320_v34  ;;  %5040 = vmatpush1.bf16.msra.mxu1 %v6727_v39  ;;  %v6741_v34 = vld [vmem:[#allocation9 + $0x19c] ss:$12 sps:$4 sm:$0xff]   ;;  %v6765_v39 = vld [vmem:[#allocation9 + $0x18] ss:$12 sps:$4 sm:$0xff]  }
 0xbfd   : > { %v6962_v23 = vpop.eup %6961  ;;  %5041 = vmatprep.subr.bf16.mxu1 %v6732_v22  ;;  %v6770_v22 = vld [vmem:[#allocation9 + $0x4] ss:$12 sps:$4 sm:$0xff]  }
 0xbfe   : > { %v2655_v62 = vmul.f32 %v6962_v23, %v8769_v49  ;;  %3360 = vst.msk [vmem:[#allocation2 + $0x10] sm:$0xf] %vm2693_vm1, %v5805_v0  ;;  %v6742_v49 = vld [vmem:[#allocation9 + $0x180] ss:$12 sps:$4 sm:$0xff]  }
 0xbff   : > { %v4197_v54 = vpop.xlane.xlu1 %4196 }
 0xc00   : > { %v5790_v47 = vpack.c.bf16 %v2655_v62, %v2655_v62  ;;  %5042 = vmatpush1.bf16.msra.mxu1 %v6730_v30 }
 0xc01   : > { %v6964_v29 = vpop.eup %6963  ;;  %5043 = vmatprep.subr.bf16.mxu1 %v6735_v2  ;;  %v6773_v2 = vld [vmem:[#allocation9 + $0x16c] ss:$12 sps:$4 sm:$0xff]  }
 0xc02   : > { %v6966_v56 = vpop.eup %6965  ;;  %2696 = vst.msk [vmem:[#allocation2 + $0x18] sm:$0xf] %vm2693_vm1, %v5790_v47  ;;  %v3322_v19 = vmul.f32 %v6964_v29, %v7975_v45 }
 0xc03   : > { %v2560_v24 = vpop.xlane.xlu1 %2559  ;;  %v2660_v26 = vmul.f32 %v6966_v56, %v8770_v7 }
 0xc04   : > { %6971 = vrcp.f32 %v2560_v24  ;;  %v5807_v5 = vpack.c.bf16 %v3322_v19, %v3322_v19  ;;  %5044 = vmatpush1.bf16.msra.mxu1 %v6733_v43  ;;  %v6768_v43 = vld [vmem:[#allocation9] ss:$12 sps:$4 sm:$0xff]  }
 0xc05   : > { %v6968_v55 = vpop.eup %6967  ;;  %v5795_v18 = vpack.c.bf16 %v2660_v26, %v2660_v26  ;;  %6973 = vrcp.f32 %v8377_v57  ;;  %5045 = vmatprep.subr.bf16.mxu1 %v6738_v10  ;;  %v6744_v57 = vld [vmem:[#allocation9 + $0x184] ss:$12 sps:$4 sm:$0xff]  }
 0xc06   : > { %v2657_v36 = vmul.f32 %v6968_v55, %v8771_v20  ;;  %3362 = vst.msk [vmem:[#allocation2 + $0x28] sm:$0xf] %vm2693_vm1, %v5807_v5  ;;  %6975 = vrcp.f32 %v8379_v61  ;;  %v6747_v20 = vld [vmem:[#allocation9 + $0xa8] ss:$12 sps:$4 sm:$0xff]  }
 0xc07   : > { %2701 = vst.msk [vmem:[#allocation2 + $0x54] sm:$0xf] %vm2693_vm1, %v5795_v18  ;;  %6977 = vrcp.f32 %v8382_v6 }
 0xc08   : > { %v5792_v35 = vpack.c.bf16 %v2657_v36, %v2657_v36  ;;  %6979 = vrcp.f32 %v4197_v54  ;;  %5046 = vmatpush1.bf16.msra.mxu1 %v6736_v13  ;;  %v6749_v36 = vld [vmem:[#allocation9 + $0xac] ss:$12 sps:$4 sm:$0xff]  }
 0xc09   : > { %v6970_v12 = vpop.eup %6969  ;;  %6981 = vrcp.f32 %v8390_v50  ;;  %5047 = vmatprep.subr.bf16.mxu1 %v6741_v34  ;;  %4962 = vmatprep.subr.bf16.mxu0 %v6749_v36  ;;  %v8774_v13 = vld [vmem:[#allocation43_spill] sm:$0xff] }
 0xc0a   : > { %2698 = vst.msk [vmem:[#allocation2 + $0x30] sm:$0xf] %vm2693_vm1, %v5792_v35  ;;  %v3324_v3 = vmul.f32 %v6970_v12, %v8772_v46  ;;  %v6752_v12 = vld [vmem:[#allocation9 + $0x94] ss:$12 sps:$4 sm:$0xff]   ;;  %4963 = vmatpush1.bf16.msra.mxu0 %v6747_v20  ;;  %v6750_v46 = vld [vmem:[#allocation9 + $0x90] ss:$12 sps:$4 sm:$0xff]  }
 0xc0b   : > { %4964 = vmatprep.subr.bf16.mxu0 %v6752_v12  ;;  %v3227_v10 = vsel %vm2402_vm0, %v8774_v13, 0.0  ;;  %v8779_v20 = vld [vmem:[#allocation35_spill] sm:$0xff]  ;;  %v8780_v12 = vld [vmem:[#allocation16_spill] sm:$0xff] }
 0xc0c   : > { %v5809_v45 = vpack.c.bf16 %v3324_v3, %v3324_v3  ;;  %5048 = vmatpush1.bf16.msra.mxu1 %v6739_v60  ;;  %v6755_v3 = vld [vmem:[#allocation9 + $0x7c] ss:$12 sps:$4 sm:$0xff]   ;;  %v6810_v13 = vld [vmem:[#allocation9 + $0xc4] ss:$12 sps:$4 sm:$0xff]  }
 0xc0d   : > { %5049 = vmatprep.subr.bf16.mxu1 %v6744_v57 }
 0xc0e   : > { %3364 = vst.msk [vmem:[#allocation2 + $0x40] sm:$0xf] %vm2693_vm1, %v5809_v45  ;;  %v6774_v45 = vld [vmem:[#allocation9 + $0x170] ss:$12 sps:$4 sm:$0xff]   ;;  %4965 = vmatpush1.bf16.msra.mxu0 %v6750_v46 }
 0xc0f   : > { %4966 = vmatprep.subr.bf16.mxu0 %v6755_v3  ;;  %v6799_v3 = vld [vmem:[#allocation9 + $0xf4] ss:$12 sps:$4 sm:$0xff]  }
 0xc10   : > { %5050 = vmatpush1.bf16.msra.mxu1 %v6742_v49  ;;  %v6781_v49 = vld [vmem:[#allocation9 + $0x138] ss:$12 sps:$4 sm:$0xff]  }
 0xc11   : > { %v6972_v33 = vpop.eup %6971  ;;  %5984 = vmatprep.subr.bf16.mxu1 %v6774_v45 }
 0xc12   : > { %v2659_v14 = vmul.f32 %v6972_v33, %v8773_v16  ;;  %v6974_v37 = vpop.eup %6973  ;;  %v6753_v33 = vld [vmem:[#allocation9 + $0x78] ss:$12 sps:$4 sm:$0xff]  }
 0xc13   : > { %v6976_v0 = vpop.eup %6975  ;;  %v6758_v16 = vld [vmem:[#allocation9 + $0x64] ss:$12 sps:$4 sm:$0xff]   ;;  %4967 = vmatpush1.bf16.msra.mxu0 %v6753_v33 }
 0xc14   : > { %v5794_v8 = vpack.c.bf16 %v2659_v14, %v2659_v14  ;;  %v6978_v62 = vpop.eup %6977  ;;  %v6756_v14 = vld [vmem:[#allocation9 + $0x60] ss:$12 sps:$4 sm:$0xff]   ;;  %4968 = vmatprep.subr.bf16.mxu0 %v6758_v16  ;;  %v6797_v33 = vld [vmem:[#allocation9 + $0xf0] ss:$12 sps:$4 sm:$0xff]  }
 0xc15   : > { %v6980_v29 = vpop.eup %6979  ;;  %v8781_v16 = vld [vmem:[#allocation21_spill] sm:$0xff] }
 0xc16   : > { %2700 = vst.msk [vmem:[#allocation2 + $0x48] sm:$0xf] %vm2693_vm1, %v5794_v8  ;;  %v6982_v5 = vpop.eup %6981  ;;  %v6761_v8 = vld [vmem:[#allocation9 + $0x4c] ss:$12 sps:$4 sm:$0xff]  }
 0xc17   : > { %4969 = vmatpush1.bf16.msra.mxu0 %v6756_v14 }
 0xc18   : > { %4970 = vmatprep.subr.bf16.mxu0 %v6761_v8 }
 0xc1b   : > { %4971 = vmatpush1.bf16.msra.mxu0 %v6759_v25  ;;  %v4215_v32 = vpop.xlane.xlu1 %4214  ;;  %v8782_v25 = vld [vmem:[#allocation37_spill] sm:$0xff] }
 0xc1c   : > { %4972 = vmatprep.subr.bf16.mxu0 %v6764_v42 }
 0xc1f   : > { %4973 = vmatpush1.bf16.msra.mxu0 %v6762_v38  ;;  %v4209_v30 = vpop.xlane.xlu1 %4208  ;;  %v6805_v38 = vld [vmem:[#allocation9 + $0xdc] ss:$12 sps:$4 sm:$0xff]  }
 0xc20   : > { %4974 = vmatprep.subr.bf16.mxu0 %v6767_v17  ;;  %6983 = vrcp.f32 %v4209_v30  ;;  %v6803_v17 = vld [vmem:[#allocation9 + $0xd8] ss:$12 sps:$4 sm:$0xff]  }
 0xc21   : > { %6985 = vrcp.f32 %v4215_v32 }
 0xc22   : > { %6987 = vrcp.f32 %v8321_v52 }
 0xc23   : > { %4975 = vmatpush1.bf16.msra.mxu0 %v6765_v39  ;;  %6989 = vrcp.f32 %v8386_v44  ;;  %v6783_v44 = vld [vmem:[#allocation9 + $0x13c] ss:$12 sps:$4 sm:$0xff]  }
 0xc24   : > { %4976 = vmatprep.subr.bf16.mxu0 %v6770_v22  ;;  %6991 = vrcp.f32 %v8323_v58 }
 0xc25   : > { %6993 = vrcp.f32 %v8344_v63 }
 0xc26   : > { %6995 = vrcp.f32 %v8327_v48 }
 0xc27   : > { %4977 = vmatpush1.bf16.msra.mxu0 %v6768_v43  ;;  %6997 = vrcp.f32 %v8348_v9 }
 0xc28   : > { %4978 = vmatprep.subr.bf16.mxu0 %v6773_v2  ;;  %6999 = vrcp.f32 %v8329_v28 }
 0xc29   : > { %7001 = vrcp.f32 %v8352_v11 }
 0xc2a   : > { %7003 = vrcp.f32 %v8332_v59 }
 0xc2b   : > { %7005 = vrcp.f32 %v8356_v51  ;;  %v8778_v51 = vld [vmem:[#allocation38_spill] sm:$0xff] }
 0xc2c   : > { %7007 = vrcp.f32 %v8336_v41 }
 0xc2d   : > { %v6984_v57 = vpop.eup %6983  ;;  %7009 = vrcp.f32 %v8360_v40 }
 0xc2e   : > { %7011 = vrcp.f32 %v8339_v31 }
 0xc2f   : > { %7013 = vrcp.f32 %v8364_v21 }
 0xc30   : > { %7015 = vrcp.f32 %v8341_v15  ;;  %v8783_v15 = vld [vmem:[#allocation40_spill] sm:$0xff] }
 0xc4b   : > { %v6246_v1 = vpop.f32.mrf.mxu0 }
 0xc4c   : > { %v4323_v53 = vmul.f32 %v6974_v37, %v6246_v1  ;;  %v6771_v37 = vld [vmem:[#allocation9 + $0x168] ss:$12 sps:$4 sm:$0xff]   ;;  %v8775_v1 = vld [vmem:[#allocation44_spill] sm:$0xff] }
 0xc4d   : > { %v4282_v61 = vpop.f32.mrf.mxu0  ;;  %v3224_v60 = vsel %vm2402_vm0, %v8775_v1, 0.0  ;;  %4979 = vmatpush2.bf16.msra.mxu0 %v6771_v37  ;;  %v6808_v37 = vld [vmem:[#allocation9 + $0xc0] ss:$12 sps:$4 sm:$0xff]  }
 0xc4e   : > { %v5830_v6 = vpack.c.bf16 %v4323_v53, %v4323_v53  ;;  %v4321_v23 = vmul.f32 %v6976_v0, %v4282_v61  ;;  %v6778_v61 = vld [vmem:[#allocation9 + $0x154] ss:$12 sps:$4 sm:$0xff]  }
 0xc4f   : > { %v6247_v54 = vpop.f32.mrf.mxu0  ;;  %4980 = vmatprep.subr.bf16.mxu0 %v6778_v61 }
 0xc50   : > { %v4324_v47 = vmul.f32 %v6978_v62, %v6247_v54  ;;  %4357 = vrot.lane.b32.xlu0 %v5830_v6, %s7226_s24  ;;  %v5828_v19 = vpack.c.bf16 %v4321_v23, %v4321_v23  ;;  %v6776_v6 = vld [vmem:[#allocation9 + $0x150] ss:$12 sps:$4 sm:$0xff]   ;;  %v6986_v23 = vpop.eup %6985  ;;  %v8776_v54 = vld [vmem:[#allocation36_spill] sm:$0xff]  ;;  %7017 = vrcp.f32 %v8368_v4 }
 0xc51   : > { %v4285_v56 = vpop.f32.mrf.mxu0  ;;  %4981 = vmatpush2.bf16.msra.mxu0 %v6776_v6  ;;  %v6988_v63 = vpop.eup %6987  ;;  %7019 = vrcp.f32 %v8372_v27  ;;  %v8784_v4 = vld [vmem:[#allocation20_spill] sm:$0xff]  ;;  %v8467_v27 = vld [vmem:[#allocation9 + $0x230] ss:$12 sps:$4 sm:$0xff]  }
 0xc52   : > { %v5831_v24 = vpack.c.bf16 %v4324_v47, %v4324_v47  ;;  %v4322_v7 = vmul.f32 %v6980_v29, %v4285_v56  ;;  %v6990_v62 = vpop.eup %6989  ;;  %4982 = vmatprep.subr.bf16.mxu0 %v6783_v44  ;;  %v2992_v11 = vmul.f32 %v6988_v63, %v8776_v54  ;;  %v6788_v47 = vld [vmem:[#allocation9 + $0x124] ss:$12 sps:$4 sm:$0xff]   ;;  %v6786_v56 = vld [vmem:[#allocation9 + $0x120] ss:$12 sps:$4 sm:$0xff]  }
 0xc53   : > { %v6992_v9 = vpop.eup %6991 }
 0xc54   : > { %4353 = vrot.lane.b32.xlu0 %v5828_v19, %s7226_s24  ;;  %4359 = vrot.lane.b32.xlu1 %v5831_v24, %s7226_s24  ;;  %v5829_v50 = vpack.c.bf16 %v4322_v7, %v4322_v7  ;;  %v6994_v29 = vpop.eup %6993  ;;  %v8777_v24 = vld [vmem:[#allocation19_spill] sm:$0xff] }
 0xc55   : > { %4983 = vmatpush2.bf16.msra.mxu0 %v6781_v49  ;;  %v3657_v59 = vmul.f32 %v6992_v9, %v8777_v24  ;;  %v6996_v7 = vpop.eup %6995  ;;  %v8788_v49 = vld [vmem:[#allocation49_spill] sm:$0xff] }
 0xc56   : > { %4984 = vmatprep.subr.bf16.mxu0 %v6788_v47  ;;  %v2994_v36 = vmul.f32 %v6996_v7, %v8779_v20  ;;  %v8790_v47 = vld [vmem:[#allocation41_spill] sm:$0xff] }
 0xc57   : > { %v5812_v41 = vpack.c.bf16 %v3657_v59, %v3657_v59  ;;  %v8791_v59 = vld [vmem:[#allocation48_spill] sm:$0xff] }
 0xc58   : > { %v8420_v26 = vpop.f32.mrf.mxu0  ;;  %4355 = vrot.lane.b32.xlu1 %v5829_v50, %s7226_s24  ;;  %v5796_v50 = vpack.c.bf16 %v2992_v11, %v2992_v11  ;;  %v5798_v31 = vpack.c.bf16 %v2994_v36, %v2994_v36  ;;  %v6779_v36 = vld [vmem:[#allocation9 + $0x158] ss:$12 sps:$4 sm:$0xff]  }
 0xc59   : > { %v4327_v48 = vmul.f32 %v6990_v62, %v8420_v26  ;;  %4985 = vmatpush2.bf16.msra.mxu0 %v6786_v56  ;;  %v2993_v26 = vmul.f32 %v6994_v29, %v8778_v51 }
 0xc5a   : > { %v4298_v55 = vpop.f32.mrf.mxu0 }
 0xc5b   : > { %v4325_v18 = vmul.f32 %v6982_v5, %v4298_v55  ;;  %v5834_v19 = vpack.c.bf16 %v4327_v48, %v4327_v48  ;;  %v6794_v5 = vld [vmem:[#allocation9 + $0x10c] ss:$12 sps:$4 sm:$0xff]   ;;  %v6998_v55 = vpop.eup %6997  ;;  %v5797_v40 = vpack.c.bf16 %v2993_v26, %v2993_v26 }
 0xc5c   : > { %v6251_v34 = vpop.f32.mrf.mxu0  ;;  %4986 = vmatprep.subr.bf16.mxu0 %v6794_v5  ;;  %v3658_v46 = vmul.f32 %v6998_v55, %v8780_v12  ;;  %v6784_v12 = vld [vmem:[#allocation9 + $0x140] ss:$12 sps:$4 sm:$0xff]  }
 0xc5d   : > { %v5832_v35 = vpack.c.bf16 %v4325_v18, %v4325_v18  ;;  %v4328_v52 = vmul.f32 %v6986_v23, %v6251_v34  ;;  %v6792_v18 = vld [vmem:[#allocation9 + $0x108] ss:$12 sps:$4 sm:$0xff]  }
 0xc5e   : > { %v4301_v53 = vpop.f32.mrf.mxu0  ;;  %4987 = vmatpush2.bf16.msra.mxu0 %v6792_v18  ;;  %v5813_v21 = vpack.c.bf16 %v3658_v46, %v3658_v46  ;;  %v6785_v46 = vld [vmem:[#allocation9 + $0x80] ss:$12 sps:$4 sm:$0xff]  }
 0xc5f   : > { %4361 = vrot.lane.b32.xlu0 %v5832_v35, %s7226_s24  ;;  %v4326_v0 = vmul.f32 %v6984_v57, %v4301_v53  ;;  %v5835_v28 = vpack.c.bf16 %v4328_v52, %v4328_v52  ;;  %v7000_v35 = vpop.eup %6999  ;;  %4988 = vmatprep.subr.bf16.mxu0 %v6799_v3  ;;  %v8787_v52 = vld [vmem:[#allocation39_spill] sm:$0xff] }
 0xc60   : > { %v7002_v45 = vpop.eup %7001  ;;  %v3659_v14 = vmul.f32 %v7000_v35, %v8781_v16  ;;  %v8792_v35 = vmov 0   ;;  %v6796_v16 = vld [vmem:[#allocation9 + $0x50] ss:$12 sps:$4 sm:$0xff]  }
 0xc61   : > { %v5833_v58 = vpack.c.bf16 %v4326_v0, %v4326_v0  ;;  %v7004_v8 = vpop.eup %7003  ;;  %v2995_v42 = vmul.f32 %v7002_v45, %v8782_v25  ;;  %v8786_v0 = vld [vmem:[#allocation42_spill] sm:$0xff]  ;;  %v6807_v25 = vld [vmem:[#allocation9 + $0x20] ss:$12 sps:$4 sm:$0xff]  }
 0xc62   : > { %4989 = vmatpush2.bf16.msra.mxu0 %v6797_v33  ;;  %v7006_v32 = vpop.eup %7005  ;;  %v5814_v39 = vpack.c.bf16 %v3659_v14, %v3659_v14  ;;  %v2996_v22 = vmul.f32 %v7004_v8, %v8783_v15  ;;  %v6789_v45 = vld [vmem:[#allocation9 + $0x128] ss:$12 sps:$4 sm:$0xff]   ;;  %v6800_v14 = vld [vmem:[#allocation9 + $0xf8] ss:$12 sps:$4 sm:$0xff]  }
 0xc63   : > { %4990 = vmatprep.subr.bf16.mxu0 %v6805_v38  ;;  %v7008_v30 = vpop.eup %7007  ;;  %v5799_v43 = vpack.c.bf16 %v2995_v42, %v2995_v42  ;;  %v3660_v2 = vmul.f32 %v7006_v32, %v8784_v4  ;;  %v6790_v33 = vld [vmem:[#allocation9 + $0x68] ss:$12 sps:$4 sm:$0xff]   ;;  %v6801_v8 = vld [vmem:[#allocation9 + $0x38] ss:$12 sps:$4 sm:$0xff]  }
 0xc64   : > { %v5800_v1 = vpack.c.bf16 %v2996_v22, %v2996_v22  ;;  %v6811_v42 = vld [vmem:[#allocation9 + $0xc8] ss:$12 sps:$4 sm:$0xff]  }
 0xc65   : > { %v5815_v57 = vpack.c.bf16 %v3660_v2, %v3660_v2  ;;  %v6812_v38 = vld [vmem:[#allocation9 + $0x8] ss:$12 sps:$4 sm:$0xff]  }
 0xc66   : > { %4991 = vmatpush2.bf16.msra.mxu0 %v6803_v17 }
 0xc67   : > { %4992 = vmatprep.subr.bf16.mxu0 %v6810_v13 }
 0xc6a   : > { %4993 = vmatpush2.bf16.msra.mxu0 %v6808_v37 }
 0xc6b   : > { %6252 = vmatprep.subr.bf16.mxu0 %v8467_v27 }
 0xc7c   : > { %3228 = vadd.xlane.f32.xlu1 %v3227_v10  ;;  %v7010_v10 = vpop.eup %7009 }
 0xc7d   : > { %v7012_v53 = vpop.eup %7011  ;;  %v2997_v61 = vmul.f32 %v7010_v10, %v8786_v0  ;;  %v8793_v10 = vld [vmem:[#allocation46_spill] sm:$0xff] }
 0xc7e   : > { %3225 = vadd.xlane.f32.xlu0 %v3224_v60  ;;  %v8785_v60 = vld [vmem:[#allocation18_spill] sm:$0xff]  ;;  %v7014_v6 = vpop.eup %7013 }
 0xc7f   : > { %v3661_v34 = vmul.f32 %v7008_v30, %v8785_v60  ;;  %v7016_v44 = vpop.eup %7015  ;;  %v5801_v63 = vpack.c.bf16 %v2997_v61, %v2997_v61  ;;  %v3662_v62 = vmul.f32 %v7014_v6, %v8788_v49 }
 0xc80   : > { %v7018_v48 = vpop.eup %7017 }
 0xc81   : > { %v5816_v23 = vpack.c.bf16 %v3661_v34, %v3661_v34  ;;  %v5817_v11 = vpack.c.bf16 %v3662_v62, %v3662_v62  ;;  %v2999_v29 = vmul.f32 %v7018_v48, %v8790_v47  ;;  %v7020_v56 = vpop.eup %7019  ;;  %v8794_v34 = vld [vmem:[#allocation45_spill] sm:$0xff]  ;;  %v6817_v48 = vld [vmem:[#allocation9 + $0x218] ss:$12 sps:$4 sm:$0xff]  }
 0xc82   : > { %v3664_v7 = vmul.f32 %v7020_v56, %v8791_v59 }
 0xc83   : > { %v5803_v24 = vpack.c.bf16 %v2999_v29, %v2999_v29 }
 0xc8d   : > { %4363 = vrot.lane.b32.xlu1 %v5833_v58, %s7226_s24  ;;  %v2998_v58 = vmul.f32 %v7012_v53, %v8787_v52 }
 0xc8f   : > { %v5802_v9 = vpack.c.bf16 %v2998_v58, %v2998_v58 }
 0xc91   : > { %4367 = vrot.lane.b32.xlu1 %v5835_v28, %s7226_s24  ;;  %v8789_v28 = vld [vmem:[#allocation17_spill] sm:$0xff] }
 0xc92   : > { %v3663_v54 = vmul.f32 %v7016_v44, %v8789_v28 }
 0xc94   : > { %4365 = vrot.lane.b32.xlu0 %v5834_v19, %s7226_s24  ;;  %v5818_v19 = vpack.c.bf16 %v3663_v54, %v3663_v54  ;;  %v6821_v54 = vld [vmem:[#allocation9 + $0x200] ss:$12 sps:$4 sm:$0xff]  }
 0xc95   : > { %3024 = vrot.lane.b32.xlu1 %v5796_v50, %s7226_s24  ;;  %v5819_v50 = vpack.c.bf16 %v3664_v7, %v3664_v7 }
 0xc98   : > { %3689 = vrot.lane.b32.xlu0 %v5812_v41, %s7226_s24  ;;  %v6775_v41 = vld [vmem:[#allocation9 + $0xb0] ss:$12 sps:$4 sm:$0xff]  }
 0xc99   : > { %3026 = vrot.lane.b32.xlu1 %v5797_v40, %s7226_s24  ;;  %v6780_v40 = vld [vmem:[#allocation9 + $0x98] ss:$12 sps:$4 sm:$0xff]  }
 0xc9c   : > { %3028 = vrot.lane.b32.xlu0 %v5798_v31, %s7226_s24  ;;  %v6795_v31 = vld [vmem:[#allocation9 + $0x110] ss:$12 sps:$4 sm:$0xff]  }
 0xc9d   : > { %3691 = vrot.lane.b32.xlu1 %v5813_v21, %s7226_s24  ;;  %v6806_v21 = vld [vmem:[#allocation9 + $0xe0] ss:$12 sps:$4 sm:$0xff]  }
 0xca0   : > { %3693 = vrot.lane.b32.xlu0 %v5814_v39, %s7226_s24 }
 0xca1   : > { %3030 = vrot.lane.b32.xlu1 %v5799_v43, %s7226_s24 }
 0xca4   : > { %3032 = vrot.lane.b32.xlu0 %v5800_v1, %s7226_s24 }
 0xca5   : > { %3695 = vrot.lane.b32.xlu1 %v5815_v57, %s7226_s24 }
 0xca8   : > { %3697 = vrot.lane.b32.xlu0 %v5816_v23, %s7226_s24 }
 0xca9   : > { %3034 = vrot.lane.b32.xlu1 %v5801_v63, %s7226_s24 }
 0xcac   : > { %3036 = vrot.lane.b32.xlu0 %v5802_v9, %s7226_s24 }
 0xcad   : > { %3699 = vrot.lane.b32.xlu1 %v5817_v11, %s7226_s24 }
 0xcb0   : > { %3701 = vrot.lane.b32.xlu0 %v5818_v19, %s7226_s24  ;;  %v6822_v19 = vld [vmem:[#allocation9 + $0x1e8] ss:$12 sps:$4 sm:$0xff]  }
 0xcb1   : > { %3038 = vrot.lane.b32.xlu1 %v5803_v24, %s7226_s24  ;;  %v6826_v24 = vld [vmem:[#allocation9 + $0x1d0] ss:$12 sps:$4 sm:$0xff]  }
 0xcb5   : > { %3703 = vrot.lane.b32.xlu1 %v5819_v50, %s7226_s24 }
 0xcc2   : > { %v4358_v51 = vpop.permute.xlu0 %4357 }
 0xcc3   : > { %4379 = vst.msk [vmem:[#allocation2 + $0x20] sm:$0xf] %vm3048_vm2, %v4358_v51  ;;  %v6827_v51 = vld [vmem:[#allocation9 + $0x1b8] ss:$12 sps:$4 sm:$0xff]  }
 0xcc6   : > { %v4354_v26 = vpop.permute.xlu0 %4353  ;;  %v4360_v5 = vpop.permute.xlu1 %4359 }
 0xcc7   : > { %4377 = vst.msk [vmem:[#allocation2 + $0x8] sm:$0xf] %vm3048_vm2, %v4354_v26  ;;  %4380 = vst.msk [vmem:[#allocation2 + $0x2c] sm:$0xf] %vm3048_vm2, %v4360_v5  ;;  %v6831_v26 = vld [vmem:[#allocation9 + $0x1a0] ss:$12 sps:$4 sm:$0xff]  }
 0xcca   : > { %v4356_v55 = vpop.permute.xlu1 %4355 }
 0xccb   : > { %4378 = vst.msk [vmem:[#allocation2 + $0x14] sm:$0xf] %vm3048_vm2, %v4356_v55 }
 0xcce   : > { %v8493_v3 = vld [vmem:[#allocation2 + $0x20] ss:$12 sps:$4 sm:$0xff]  }
 0xcd1   : > { %v4362_v18 = vpop.permute.xlu0 %4361 }
 0xcd2   : > { %4381 = vst.msk [vmem:[#allocation2 + $0x38] sm:$0xf] %vm3048_vm2, %v4362_v18  ;;  %v8489_v20 = vld [vmem:[#allocation2 + $0x8] ss:$12 sps:$4 sm:$0xff]  }
 0xcd3   : > { %5068 = vmatmul.mubr.bf16.vlgmr.msra.gmra.mxu1 %v8489_v20  ;;  %v6832_v18 = vld [vmem:[#allocation9 + $0x188] ss:$12 sps:$4 sm:$0xff]  }
 0xcd4   : > { %5077 = vmatprep.mubr.bf16.mxu1 %v8792_v35  ;;  %5985 = vmatpush3.bf16.msra.mxu1 %v6775_v41 }
 0xcd5   : > { %5986 = vmatprep.subr.bf16.mxu1 %v6779_v36 }
 0xcd8   : > { %5987 = vmatpush3.bf16.msra.mxu1 %v6780_v40 }
 0xcd9   : > { %5988 = vmatprep.subr.bf16.mxu1 %v6784_v12 }
 0xcdb   : > { %5078 = vmatmul.mubr.bf16.gmra.mxu1 %v8493_v3 }
 0xcdc   : > { %5989 = vmatpush3.bf16.msra.mxu1 %v6785_v46  ;;  %5087 = vmatprep.mubr.bf16.mxu1 %v8792_v35 }
 0xcdd   : > { %5990 = vmatprep.subr.bf16.mxu1 %v6789_v45 }
 0xce0   : > { %5991 = vmatpush3.bf16.msra.mxu1 %v6790_v33 }
 0xce1   : > { %5992 = vmatprep.subr.bf16.mxu1 %v6795_v31 }
 0xce4   : > { %5993 = vmatpush3.bf16.msra.mxu1 %v6796_v16  ;;  %v4499_v16 = vlaneseq }
 0xce5   : > { %5994 = vmatprep.subr.bf16.mxu1 %v6800_v14 }
 0xce8   : > { %5995 = vmatpush3.bf16.msra.mxu1 %v6801_v8 }
 0xce9   : > { %5996 = vmatprep.subr.bf16.mxu1 %v6806_v21  ;;  %v8540_v21 = vshrl.u32 %v4499_v16, 7 }
 0xcec   : > { %5997 = vmatpush3.bf16.msra.mxu1 %v6807_v25 }
 0xced   : > { %5998 = vmatprep.subr.bf16.mxu1 %v6811_v42  ;;  %v4501_v42 = vsub.s32 0, %v8540_v21 }
 0xcf0   : > { %5999 = vmatpush3.bf16.msra.mxu1 %v6812_v38  ;;  %v8550_v38 = vld [vmem:[%s8682_s4] sm:$0x7] }
 0xcf1   : > { %6276 = vmatprep.subr.bf16.mxu1 %v8467_v27 }
 0xd05   : > { %v3229_v32 = vpop.xlane.xlu1 %3228 }
 0xd06   : > { %7021 = vrcp.f32 %v3229_v32 }
 0xd07   : > { %v3226_v17 = vpop.xlane.xlu0 %3225 }
 0xd08   : > { %7023 = vrcp.f32 %v3226_v17  ;;  %v4505_v17 = vsub.s32 1, %v8540_v21 }
 0xd09   : > { %v4364_v39 = vpop.permute.xlu1 %4363 }
 0xd0a   : > { %4382 = vst.msk [vmem:[#allocation2 + $0x44] sm:$0xf] %vm3048_vm2, %v4364_v39 }
 0xd0b   : > { %v4366_v15 = vpop.permute.xlu0 %4365 }
 0xd0c   : > { %4383 = vst.msk [vmem:[#allocation2 + $0x50] sm:$0xf] %vm3048_vm2, %v4366_v15  ;;  %v8558_v15 = vrot.slane %v8550_v38, %v4501_v42 }
 0xd0d   : > { %v4368_v22 = vpop.permute.xlu1 %4367 }
 0xd0e   : > { %4384 = vst.msk [vmem:[#allocation2 + $0x5c] sm:$0xf] %vm3048_vm2, %v4368_v22  ;;  %v8561_v22 = vrot.slane %v8550_v38, %v4505_v17 }
 0xd0f   : > { %v3690_v30 = vpop.permute.xlu0 %3689 }
 0xd10   : > { %3713 = vst.msk [vmem:[#allocation2 + $0x4] sm:$0xf] %vm3048_vm2, %v3690_v30 }
 0xd11   : > { %v3025_v43 = vpop.permute.xlu1 %3024  ;;  %v8502_v4 = vld [vmem:[#allocation2 + $0x38] ss:$12 sps:$4 sm:$0xff]  }
 0xd12   : > { %3049 = vst.msk [vmem:[#allocation2] sm:$0xf] %vm3048_vm2, %v3025_v43  ;;  %5088 = vmatmul.mubr.bf16.gmra.mxu1 %v8502_v4 }
 0xd13   : > { %v7022_v2 = vpop.eup %7021  ;;  %v3029_v13 = vpop.permute.xlu0 %3028  ;;  %5097 = vmatprep.mubr.bf16.mxu1 %v8792_v35 }
 0xd14   : > { %3051 = vst.msk [vmem:[#allocation2 + $0x18] sm:$0xf] %vm3048_vm2, %v3029_v13  ;;  %v3326_v37 = vmul.f32 %v7022_v2, %v8793_v10 }
 0xd15   : > { %v7024_v1 = vpop.eup %7023  ;;  %v3027_v60 = vpop.permute.xlu1 %3026  ;;  %v8513_v23 = vld [vmem:[#allocation2 + $0x50] ss:$12 sps:$4 sm:$0xff]  }
 0xd16   : > { %3050 = vst.msk [vmem:[#allocation2 + $0xc] sm:$0xf] %vm3048_vm2, %v3027_v60  ;;  %v3325_v53 = vmul.f32 %v7024_v1, %v8794_v34  ;;  %v5811_v57 = vpack.c.bf16 %v3326_v37, %v3326_v37 }
 0xd17   : > { %v3694_v0 = vpop.permute.xlu0 %3693 }
 0xd18   : > { %3715 = vst.msk [vmem:[#allocation2 + $0x1c] sm:$0xf] %vm3048_vm2, %v3694_v0  ;;  %v5810_v61 = vpack.c.bf16 %v3325_v53, %v3325_v53 }
 0xd19   : > { %3366 = vst.msk [vmem:[#allocation2 + $0x58] sm:$0xf] %vm2693_vm1, %v5811_v57  ;;  %v3692_v6 = vpop.permute.xlu1 %3691 }
 0xd1a   : > { %3714 = vst.msk [vmem:[#allocation2 + $0x10] sm:$0xf] %vm3048_vm2, %v3692_v6  ;;  %5098 = vmatmul.mubr.bf16.gmra.mxu1 %v8513_v23 }
 0xd1b   : > { %3365 = vst.msk [vmem:[#allocation2 + $0x4c] sm:$0xf] %vm2693_vm1, %v5810_v61  ;;  %v3033_v52 = vpop.permute.xlu0 %3032 }
 0xd1c   : > { %3053 = vst.msk [vmem:[#allocation2 + $0x30] sm:$0xf] %vm3048_vm2, %v3033_v52 }
 0xd1d   : > { %v3031_v58 = vpop.permute.xlu1 %3030  ;;  %v6813_v49 = vld [vmem:[#allocation2] ss:$12 sps:$4 sm:$0xff]  }
 0xd1e   : > { %3052 = vst.msk [vmem:[#allocation2 + $0x24] sm:$0xf] %vm3048_vm2, %v3031_v58 }
 0xd1f   : > { %v3698_v44 = vpop.permute.xlu0 %3697 }
 0xd20   : > { %3717 = vst.msk [vmem:[#allocation2 + $0x34] sm:$0xf] %vm3048_vm2, %v3698_v44 }
 0xd21   : > { %v3696_v63 = vpop.permute.xlu1 %3695  ;;  %v6815_v62 = vld [vmem:[#allocation2 + $0x4] ss:$12 sps:$4 sm:$0xff]  }
 0xd22   : > { %3716 = vst.msk [vmem:[#allocation2 + $0x28] sm:$0xf] %vm3048_vm2, %v3696_v63  ;;  %4994 = vmatprep.mubr.bf16.mxu0 %v6815_v62  ;;  %5140 = vmatprep.mubr.bf16.mxu1 %v6815_v62 }
 0xd23   : > { %v3037_v9 = vpop.permute.xlu0 %3036  ;;  %4995 = vmatmul.mubr.bf16.vlgmr.msra.gmra.mxu0 %v6813_v49  ;;  %5141 = vmatmul.mubr.bf16.vlgmr.msra.gmra.mxu1 %v6813_v49 }
 0xd24   : > { %3055 = vst.msk [vmem:[#allocation2 + $0x48] sm:$0xf] %vm3048_vm2, %v3037_v9  ;;  %6253 = vmatpush3.bf16.msra.mxu0 %v8467_v27  ;;  %6284 = vmatpush3.bf16.msra.mxu1 %v8467_v27 }
 0xd25   : > { %v3035_v28 = vpop.permute.xlu1 %3034  ;;  %6254 = vmatprep.subr.bf16.mxu0 %v6817_v48  ;;  %6277 = vmatprep.subr.bf16.mxu1 %v6817_v48  ;;  %v6818_v29 = vld [vmem:[#allocation2 + $0x18] ss:$12 sps:$4 sm:$0xff]  }
 0xd26   : > { %3054 = vst.msk [vmem:[#allocation2 + $0x3c] sm:$0xf] %vm3048_vm2, %v3035_v28 }
 0xd27   : > { %v3702_v11 = vpop.permute.xlu0 %3701 }
 0xd28   : > { %3719 = vst.msk [vmem:[#allocation2 + $0x4c] sm:$0xf] %vm3048_vm2, %v3702_v11  ;;  %6255 = vmatpush3.bf16.msra.mxu0 %v6817_v48  ;;  %6285 = vmatpush3.bf16.msra.mxu1 %v6817_v48 }
 0xd29   : > { %v3700_v47 = vpop.permute.xlu1 %3699  ;;  %v6820_v56 = vld [vmem:[#allocation2 + $0x1c] ss:$12 sps:$4 sm:$0xff]   ;;  %6256 = vmatprep.subr.bf16.mxu0 %v6821_v54  ;;  %6278 = vmatprep.subr.bf16.mxu1 %v6821_v54 }
 0xd2a   : > { %3718 = vst.msk [vmem:[#allocation2 + $0x40] sm:$0xf] %vm3048_vm2, %v3700_v47  ;;  %5004 = vmatprep.mubr.bf16.mxu0 %v6820_v56  ;;  %5148 = vmatprep.mubr.bf16.mxu1 %v6820_v56 }
 0xd2b   : > { %5005 = vmatmul.mubr.bf16.gmra.mxu0 %v6818_v29  ;;  %5149 = vmatmul.mubr.bf16.gmra.mxu1 %v6818_v29 }
 0xd2c   : > { %6257 = vmatpush3.bf16.msra.mxu0 %v6821_v54  ;;  %6286 = vmatpush3.bf16.msra.mxu1 %v6821_v54 }
 0xd2d   : > { %v3039_v27 = vpop.permute.xlu1 %3038  ;;  %6258 = vmatprep.subr.bf16.mxu0 %v6822_v19  ;;  %6279 = vmatprep.subr.bf16.mxu1 %v6822_v19  ;;  %v6823_v7 = vld [vmem:[#allocation2 + $0x30] ss:$12 sps:$4 sm:$0xff]  }
 0xd2e   : > { %3056 = vst.msk [vmem:[#allocation2 + $0x54] sm:$0xf] %vm3048_vm2, %v3039_v27 }
 0xd30   : > { %6259 = vmatpush3.bf16.msra.mxu0 %v6822_v19  ;;  %6287 = vmatpush3.bf16.msra.mxu1 %v6822_v19 }
 0xd31   : > { %v3704_v59 = vpop.permute.xlu1 %3703  ;;  %v6825_v50 = vld [vmem:[#allocation2 + $0x34] ss:$12 sps:$4 sm:$0xff]   ;;  %6260 = vmatprep.subr.bf16.mxu0 %v6826_v24  ;;  %6280 = vmatprep.subr.bf16.mxu1 %v6826_v24 }
 0xd32   : > { %3720 = vst.msk [vmem:[#allocation2 + $0x58] sm:$0xf] %vm3048_vm2, %v3704_v59  ;;  %5014 = vmatprep.mubr.bf16.mxu0 %v6825_v50  ;;  %5156 = vmatprep.mubr.bf16.mxu1 %v6825_v50 }
 0xd33   : > { %5015 = vmatmul.mubr.bf16.gmra.mxu0 %v6823_v7  ;;  %5157 = vmatmul.mubr.bf16.gmra.mxu1 %v6823_v7 }
 0xd34   : > { %6261 = vmatpush3.bf16.msra.mxu0 %v6826_v24  ;;  %6288 = vmatpush3.bf16.msra.mxu1 %v6826_v24 }
 0xd35   : > { %6262 = vmatprep.subr.bf16.mxu0 %v6827_v51  ;;  %6281 = vmatprep.subr.bf16.mxu1 %v6827_v51  ;;  %v6828_v5 = vld [vmem:[#allocation2 + $0x48] ss:$12 sps:$4 sm:$0xff]  }
 0xd38   : > { %6263 = vmatpush3.bf16.msra.mxu0 %v6827_v51  ;;  %6289 = vmatpush3.bf16.msra.mxu1 %v6827_v51 }
 0xd39   : > { %v6830_v55 = vld [vmem:[#allocation2 + $0x4c] ss:$12 sps:$4 sm:$0xff]   ;;  %6264 = vmatprep.subr.bf16.mxu0 %v6831_v26  ;;  %6282 = vmatprep.subr.bf16.mxu1 %v6831_v26 }
 0xd3a   : > { %5024 = vmatprep.mubr.bf16.mxu0 %v6830_v55  ;;  %5164 = vmatprep.mubr.bf16.mxu1 %v6830_v55 }
 0xd3b   : > { %5025 = vmatmul.mubr.bf16.gmra.mxu0 %v6828_v5  ;;  %5165 = vmatmul.mubr.bf16.gmra.mxu1 %v6828_v5 }
 0xd3c   : > { %6265 = vmatpush3.bf16.msra.mxu0 %v6831_v26  ;;  %6290 = vmatpush3.bf16.msra.mxu1 %v6831_v26 }
 0xd3d   : > { %6268 = vmatprep.mubr.bf16.mxu0 %v8489_v20  ;;  %6272 = vmatprep.mubr.bf16.mxu1 %v8502_v4 }
 0xd3e   : > { %6266 = vmatprep.subr.bf16.mxu0 %v6832_v18  ;;  %6283 = vmatprep.subr.bf16.mxu1 %v6832_v18 }
 0xd40   : > { %6267 = vmatpush3.bf16.msra.mxu0 %v6832_v18  ;;  %6291 = vmatpush3.bf16.msra.mxu1 %v6832_v18 }
 0xd43   : > { %6269 = vmatmul.mubr.bf16.vlgmr.msra.gmra.mxu0 %v8493_v3  ;;  %6273 = vmatmul.mubr.bf16.vlgmr.msra.gmra.mxu1 %v8513_v23 }
 0xd93   : > { %v5069_v41 = vpop.f32.mrf.mxu1 }
 0xd95   : > { %v5071_v36 = vpop.f32.mrf.mxu1 }
 0xd97   : > { %v5073_v35 = vpop.f32.mrf.mxu1 }
 0xd99   : > { %v5075_v40 = vpop.f32.mrf.mxu1 }
 0xd9b   : > { %v5079_v12 = vpop.f32.mrf.mxu1 }
 0xd9d   : > { %v5081_v46 = vpop.f32.mrf.mxu1 }
 0xd9f   : > { %v5083_v45 = vpop.f32.mrf.mxu1 }
 0xda1   : > { %v5085_v33 = vpop.f32.mrf.mxu1 }
 0xdd2   : > { %v5089_v31 = vpop.f32.mrf.mxu1 }
 0xdd4   : > { %v8534_v20 = vpop.f32.mrf.mxu1 }
 0xdd6   : > { %v8536_v14 = vpop.f32.mrf.mxu1 }
 0xdd8   : > { %v8538_v8 = vpop.f32.mrf.mxu1 }
 0xdda   : > { %v8542_v3 = vpop.f32.mrf.mxu1 }
 0xddc   : > { %v8544_v25 = vpop.f32.mrf.mxu1 }
 0xdde   : > { %v8552_v32 = vpop.f32.mrf.mxu1 }
 0xde0   : > { %v8555_v39 = vpop.f32.mrf.mxu1 }
 0xde3   : > { %v4996_v30 = vpop.f32.mrf.mxu0  ;;  %v8563_v43 = vpop.f32.mrf.mxu1 }
 0xde4   : > { %v4997_v4 = vadd.f32 %v4996_v30, %v8558_v15 }
 0xde5   : > { %v4998_v2 = vpop.f32.mrf.mxu0  ;;  %v8566_v13 = vpop.f32.mrf.mxu1 }
 0xde6   : > { %v5070_v10 = vadd.f32 %v5069_v41, %v4997_v4  ;;  %v4999_v37 = vadd.f32 %v4998_v2, %v8561_v22 }
 0xde7   : > { %v5000_v1 = vpop.f32.mrf.mxu0  ;;  %v8569_v60 = vpop.f32.mrf.mxu1 }
 0xde8   : > { %5238 = vst [vmem:[%s8573_s23] sm:$0xff] %v5070_v10  ;;  %v5072_v34 = vadd.f32 %v5071_v36, %v4999_v37  ;;  %v5001_v53 = vadd.f32 %v5000_v1, %v8558_v15  ;;  %v6002_v10 = vadd.f32 %v8566_v13, %v8563_v43 }
 0xde9   : > { %v5002_v57 = vpop.f32.mrf.mxu0  ;;  %v8577_v0 = vpop.f32.mrf.mxu1 }
 0xdea   : > { %5239 = vst [vmem:[%s8573_s23 + $0x8] sm:$0xff] %v5072_v34  ;;  %v5074_v61 = vadd.f32 %v5073_v35, %v5001_v53  ;;  %v5003_v6 = vadd.f32 %v5002_v57, %v8561_v22 }
 0xdeb   : > { %v5006_v23 = vpop.f32.mrf.mxu0  ;;  %v6006_v52 = vpop.f32.mrf.mxu1 }
 0xdec   : > { %5241 = vst [vmem:[%s8573_s23 + $0x18] sm:$0xff] %v5074_v61  ;;  %v5076_v58 = vadd.f32 %v5075_v40, %v5003_v6  ;;  %v5007_v44 = vadd.f32 %v5006_v23, %v8558_v15 }
 0xded   : > { %v5008_v63 = vpop.f32.mrf.mxu0  ;;  %v6007_v49 = vpop.f32.mrf.mxu1 }
 0xdee   : > { %5242 = vst [vmem:[%s8573_s23 + $0x20] sm:$0xff] %v5076_v58  ;;  %v5080_v62 = vadd.f32 %v5079_v12, %v5007_v44  ;;  %v5009_v48 = vadd.f32 %v5008_v63, %v8561_v22  ;;  %v6008_v42 = vadd.f32 %v6007_v49, %v6006_v52 }
 0xdef   : > { %v5010_v9 = vpop.f32.mrf.mxu0  ;;  %v6009_v28 = vpop.f32.mrf.mxu1 }
 0xdf0   : > { %5244 = vst [vmem:[%s8573_s23 + $0x30] sm:$0xff] %v5080_v62  ;;  %v5082_v54 = vadd.f32 %v5081_v46, %v5009_v48  ;;  %v5011_v11 = vadd.f32 %v5010_v9, %v8558_v15 }
 0xdf1   : > { %v5012_v47 = vpop.f32.mrf.mxu0  ;;  %v6010_v29 = vpop.f32.mrf.mxu1 }
 0xdf2   : > { %5245 = vst [vmem:[%s8573_s23 + $0x38] sm:$0xff] %v5082_v54  ;;  %v5084_v56 = vadd.f32 %v5083_v45, %v5011_v11  ;;  %v5013_v19 = vadd.f32 %v5012_v47, %v8561_v22  ;;  %v6011_v57 = vadd.f32 %v6010_v29, %v6009_v28 }
 0xdf3   : > { %v5016_v27 = vpop.f32.mrf.mxu0  ;;  %v6012_v24 = vpop.f32.mrf.mxu1 }
 0xdf4   : > { %5247 = vst [vmem:[%s8573_s23 + $0x48] sm:$0xff] %v5084_v56  ;;  %v5086_v59 = vadd.f32 %v5085_v33, %v5013_v19  ;;  %v5017_v7 = vadd.f32 %v5016_v27, %v8558_v15 }
 0xdf5   : > { %v5018_v50 = vpop.f32.mrf.mxu0  ;;  %v6013_v51 = vpop.f32.mrf.mxu1 }
 0xdf6   : > { %5248 = vst [vmem:[%s8573_s23 + $0x50] sm:$0xff] %v5086_v59  ;;  %v5090_v26 = vadd.f32 %v5089_v31, %v5017_v7  ;;  %v5019_v5 = vadd.f32 %v5018_v50, %v8561_v22  ;;  %v4509_v31 = vsub.s32 2, %v8540_v21  ;;  %v6014_v21 = vadd.f32 %v6013_v51, %v6012_v24 }
 0xdf7   : > { %v5020_v55 = vpop.f32.mrf.mxu0  ;;  %v6015_v18 = vpop.f32.mrf.mxu1 }
 0xdf8   : > { %5250 = vst [vmem:[%s8573_s23 + $0x60] sm:$0xff] %v5090_v26  ;;  %v5092_v41 = vadd.f32 %v8534_v20, %v5019_v5  ;;  %v5021_v36 = vadd.f32 %v5020_v55, %v8558_v15 }
 0xdf9   : > { %v5022_v35 = vpop.f32.mrf.mxu0  ;;  %v6016_v40 = vpop.f32.mrf.mxu1 }
 0xdfa   : > { %5251 = vst [vmem:[%s8573_s23 + $0x68] sm:$0xff] %v5092_v41  ;;  %v5094_v12 = vadd.f32 %v8536_v14, %v5021_v36  ;;  %v5023_v46 = vadd.f32 %v5022_v35, %v8561_v22  ;;  %v6017_v63 = vadd.f32 %v6016_v40, %v6015_v18 }
 0xdfb   : > { %v5026_v45 = vpop.f32.mrf.mxu0  ;;  %v6018_v33 = vpop.f32.mrf.mxu1 }
 0xdfc   : > { %5253 = vst [vmem:[%s8573_s23 + $0x78] sm:$0xff] %v5094_v12  ;;  %v5096_v16 = vadd.f32 %v8538_v8, %v5023_v46  ;;  %v5027_v20 = vadd.f32 %v5026_v45, %v8558_v15  ;;  %v4510_v8 = vrot.slane %v8550_v38, %v4509_v31 }
 0xdfd   : > { %v5028_v17 = vpop.f32.mrf.mxu0  ;;  %v6019_v30 = vpop.f32.mrf.mxu1 }
 0xdfe   : > { %5254 = vst [vmem:[%s8573_s23 + $0x80] sm:$0xff] %v5096_v16  ;;  %v5100_v4 = vadd.f32 %v8542_v3, %v5027_v20  ;;  %v5029_v14 = vadd.f32 %v5028_v17, %v8561_v22  ;;  %v6020_v2 = vadd.f32 %v6019_v30, %v6018_v33  ;;  %v5151_v6 = vadd.f32 %v6008_v42, %v4510_v8 }
 0xdff   : > { %v5030_v37 = vpop.f32.mrf.mxu0  ;;  %v6021_v1 = vpop.f32.mrf.mxu1  ;;  %v5143_v58 = vadd.f32 %v6002_v10, %v4510_v8  ;;  %v5159_v44 = vadd.f32 %v6014_v21, %v4510_v8  ;;  %v5154_v9 = vadd.f32 %v6011_v57, %v4510_v8  ;;  %v5162_v56 = vadd.f32 %v6017_v63, %v4510_v8 }
 0xe00   : > { %5256 = vst [vmem:[%s8573_s23 + $0x90] sm:$0xff] %v5100_v4  ;;  %v5102_v34 = vadd.f32 %v8544_v25, %v5029_v14  ;;  %v5031_v53 = vadd.f32 %v5030_v37, %v8558_v15  ;;  %v5167_v38 = vadd.f32 %v6020_v2, %v4510_v8  ;;  %v6005_v25 = vadd.f32 %v8577_v0, %v8569_v60 }
 0xe01   : > { %v5032_v61 = vpop.f32.mrf.mxu0  ;;  %v6022_v3 = vpop.f32.mrf.mxu1 }
 0xe02   : > { %5257 = vst [vmem:[%s8573_s23 + $0x98] sm:$0xff] %v5102_v34  ;;  %v5104_v23 = vadd.f32 %v8552_v32, %v5031_v53  ;;  %v5033_v43 = vadd.f32 %v5032_v61, %v8561_v22  ;;  %v6023_v13 = vadd.f32 %v6022_v3, %v6021_v1  ;;  %v5146_v29 = vadd.f32 %v6005_v25, %v4510_v8 }
 0xe03   : > { %v6270_v15 = vpop.f32.mrf.mxu0  ;;  %v6274_v52 = vpop.f32.mrf.mxu1 }
 0xe04   : > { %5259 = vst [vmem:[%s8573_s23 + $0xa8] sm:$0xff] %v5104_v23  ;;  %v5106_v32 = vadd.f32 %v8555_v39, %v5033_v43  ;;  %v5216_v49 = vadd.f32 %v6270_v15, %v5151_v6  ;;  %v5232_v22 = vadd.f32 %v6274_v52, %v5167_v38  ;;  %v5170_v28 = vadd.f32 %v6023_v13, %v4510_v8 }
 0xe05   : > { %v5207_v62 = vpop.f32.mrf.mxu0  ;;  %v5223_v48 = vpop.f32.mrf.mxu1 }
 0xe06   : > { %5260 = vst [vmem:[%s8573_s23 + $0xb0] sm:$0xff] %v5106_v32  ;;  %5246 = vst [vmem:[%s8573_s23 + $0x40] sm:$0xff] %v5216_v49  ;;  %v5208_v60 = vadd.f32 %v5207_v62, %v5143_v58  ;;  %v5224_v0 = vadd.f32 %v5223_v48, %v5159_v44 }
 0xe07   : > { %5258 = vst [vmem:[%s8573_s23 + $0xa0] sm:$0xff] %v5232_v22  ;;  %v6271_v54 = vpop.f32.mrf.mxu0  ;;  %v6275_v39 = vpop.f32.mrf.mxu1 }
 0xe08   : > { %5240 = vst [vmem:[%s8573_s23 + $0x10] sm:$0xff] %v5208_v60  ;;  %5252 = vst [vmem:[%s8573_s23 + $0x70] sm:$0xff] %v5224_v0  ;;  %v5219_v11 = vadd.f32 %v6271_v54, %v5154_v9  ;;  %v5235_v47 = vadd.f32 %v6275_v39, %v5170_v28 }
 0xe09   : > { %v5210_v19 = vpop.f32.mrf.mxu0  ;;  %v5226_v27 = vpop.f32.mrf.mxu1 }
 0xe0a   : > { %5249 = vst [vmem:[%s8573_s23 + $0x58] sm:$0xff] %v5219_v11  ;;  %5261 = vst [vmem:[%s8573_s23 + $0xb8] sm:$0xff] %v5235_v47  ;;  %v5211_v24 = vadd.f32 %v5210_v19, %v5146_v29  ;;  %v5227_v59 = vadd.f32 %v5226_v27, %v5162_v56 }
 0xe0c   : > { %5243 = vst [vmem:[%s8573_s23 + $0x28] sm:$0xff] %v5211_v24  ;;  %5255 = vst [vmem:[%s8573_s23 + $0x88] sm:$0xff] %v5227_v59 }
 0xe0d   : > { %7152 = shalt.err (!%p7149_p9)
}
 0xe0e   : > { %s7153_s13 = scalar_lea.hbm %s8629_s14, 3072  ;;  %s7157_s26 = scalar_lea.hbm %s8683_s5, 6144 }
 0xe0f   : > { %p7154_p7 = scmp.ne.s32.totalorder %s8629_s14, %s7153_s13  ;;  %p7158_p2 = scmp.lt.s32.totalorder %s8629_s14, %s8683_s5 }
 0xe10   : > { %p7159_p11 = scmp.lt.s32.totalorder %s7157_s26, %s7153_s13 }
 0xe11   : > { %p7155_p4 = pnand %p7154_p7, %p8795_p0 }
 0xe12   : > { %p7160_p13 = por %p7159_p11, %p7158_p2 }
 0xe13   : > { %p7156_p8 = pneg %p7155_p4 }
 0xe15   : > { %p7161_p12 = pnand %p7160_p13, %p7156_p8 }
 0xe17   : > { %7164 = shalt.err (!%p7161_p12)
}
 0xe18   : > { %s7228_s28 = smov 384   ;;  %s7229_s22 = smov 24  }
 0xe19   : > { %6334 = dma.vmem_to_hbm [thread:$0]  (%p8795_p0), %s8631_s30, 3072, %s8629_s14, %s5263_s16, %s7228_s28, %s7228_s28, %s7229_s22  }
 0xe1a PF: > { %s5291_s29 = sand.u32 1, %s7199_s18   ;;  %p8796_p5 = scmp.ne.s32.totalorder %s8701_s25, 0 }
 0xe1b   : > { %p8797_p10 = scmp.ge.s32.totalorder %s7211_s21, 2  ;;  %s5292_s27 = scalar_lea.sflag [#allocation5], %s5291_s29 }
 0xe1d   : > { %p6351_p1 = pnand %p8797_p10, %p8796_p5 }
 0xe1f   : > { %p6352_p3 = pneg %p6351_p1 }
 0xe21   : > { %7194 = dma.done.wait (%p6352_p3), %s5292_s27, 3072  }
 0xe22   : > { %7196 = vsyncadd (%p6352_p3), %s5292_s27, 4294964224  ;;  %p20_p6 = scmp.ge.s32.totalorder %s7340_s8, 4   ;;  %s8798_s18 = smov %s7203_s19 }
 0xe23   : > { %s8799_s19 = smov %s7207_s20  ;;  %s8800_s20 = smov %s7350_s11 }
 0xe24   : > { %s8801_s21 = smov %s7340_s8  ;;  %22 = sbr.rel (!%p20_p6) target bundleno = 7 (0x7), region = 97 }
 0xe29   :  { %5297 = vsyncpa [#allocation4], 1 }
 0xe2a   :  { %5299 = vsyncpa [#allocation4 + $0x1], 1 }
 0xe2b   :  { %5300 = vsyncpa [#allocation7], 1 }
 0xe2c   :  { %5301 = vsyncpa [#allocation10], 1 }
 0xe2d   :  { %5302 = vsyncpa [#allocation5], 1 }
 0xe2e   :  { %5304 = vsyncpa [#allocation5 + $0x1], 1 }

</bundles_post_ra>
